<compile_context>
chip_gen: v5e
topology: v5e:2x2
jax: 0.10.0
libtpu: 0.0.40
codegen_flags: <defaults>
</compile_context>

<pallas_src>
import functools

import jax
import jax.numpy as jnp
from jax.experimental import pallas as pl
from jax.experimental.pallas import tpu as pltpu


def _attention_block_kernel(x_ref, mask_ref, w1_ref, b1_ref, w2_ref, b2_ref,
                            w3_ref, b3_ref, wf_ref, bf_ref, out_ref,
                            im2col_ref, *, H, W):
    """One grid step = one (N, P) channels-first slab.

    x_ref     : (1, N, P)     f32   channels on sublanes, spatial on lanes
    mask_ref  : (9, P)        f32   per-tap 3x3 boundary masks (precomputed)
    w1_ref    : (6*Nh, N)     bf16  per-unit first 1x1 conv, rows = (unit, Cout)
    b1_ref    : (6*Nh, 1)     f32
    w2_ref    : (6*Nh, 9*Nh)  bf16  per-unit im2col-packed 3x3 conv
    b2_ref    : (6*Nh, 1)     f32
    w3_ref    : (6*N, Nh)     bf16  per-unit last 1x1 conv
    b3_ref    : (6*N, 1)      f32
    wf_ref    : (N, N)        bf16  final 1x1 conv of branch b (Cout, Cin)
    bf_ref    : (N, 1)        f32
    out_ref   : (1, N, P)     f32
    im2col_ref: (9*Nh, P)     f32   VMEM scratch for the 3x3 patch matrix
    """
    f32, bf16 = jnp.float32, jnp.bfloat16
    N, P = x_ref.shape[1], x_ref.shape[2]
    Nh = N // 2

    x = x_ref[0]                                              # (N, P) f32

    # 3x3 tap lane-roll amounts, tap order ky-major (matches w2 packing).
    # s[p] = y[p + d] with d = ky*W + kx  <=>  roll by (-d) mod P (np.roll).
    tap_shifts = [(-(ky * W + kx)) % P
                  for ky in (-1, 0, 1) for kx in (-1, 0, 1)]
    center = 4                                                # (ky, kx) == (0, 0)

    def conv3x3(y, u):
        # im2col: 9 lane-rolled, boundary-masked copies of y stacked along
        # sublanes in VMEM scratch -> single (Nh, 9*Nh) @ (9*Nh, P) matmul.
        for t, shift in enumerate(tap_shifts):
            s = pltpu.roll(y, shift, axis=1) if shift else y
            if t != center:
                s = s * mask_ref[t:t + 1, :]                  # hoisted masks
            im2col_ref[t * Nh:(t + 1) * Nh, :] = s
        patches = im2col_ref[...].astype(bf16)                # (9*Nh, P)
        w2u = w2_ref[u * Nh:(u + 1) * Nh, :]
        b2u = b2_ref[u * Nh:(u + 1) * Nh, :]
        return jnp.dot(w2u, patches, preferred_element_type=f32) + b2u

    def residual_unit(t, u):
        w1u = w1_ref[u * Nh:(u + 1) * Nh, :]
        b1u = b1_ref[u * Nh:(u + 1) * Nh, :]
        w3u = w3_ref[u * N:(u + 1) * N, :]
        b3u = b3_ref[u * N:(u + 1) * N, :]
        y = jnp.dot(w1u, t.astype(bf16), preferred_element_type=f32) + b1u
        y = jnp.maximum(y, 0.0)                               # (Nh, P)
        y = jnp.maximum(conv3x3(y, u), 0.0)                   # (Nh, P)
        y = jnp.dot(w3u, y.astype(bf16), preferred_element_type=f32) + b3u
        return jnp.maximum(y + t, 0.0)                        # (N, P)

    a = x
    for u in range(3):                    # branch a: residual units 0..2
        a = residual_unit(a, u)
    b = x
    for u in range(3, 6):                 # branch b: residual units 3..5
        b = residual_unit(b, u)
    b = jnp.dot(wf_ref[...], b.astype(bf16),
                preferred_element_type=f32) + bf_ref[...]

    # sigmoid gate: exp + approximate reciprocal both run on the EUP slot.
    gate = pl.reciprocal(1.0 + jnp.exp(-b), approx=True)
    out_ref[0] = (a * gate + x).astype(out_ref.dtype)


def _multi_tensorcore_chip() -> bool:
    """True on chips exposing >1 TensorCore per chip (v7x, v4 megacore)."""
    try:
        kind = jax.devices()[0].device_kind.lower()
    except Exception:
        return False
    return ("v7" in kind) or ("7x" in kind) or ("v4" in kind)


def _full_spec(a):
    nd = a.ndim
    return pl.BlockSpec(a.shape, lambda *_, nd=nd: (0,) * nd)


def _pack_params(params):
    """Re-layout PyTorch-style weights into a few dense channels-first slabs."""
    w1, b1, w2, b2, w3, b3, wf, bf = params
    U, N, Nh = w1.shape
    bf16, f32 = jnp.bfloat16, jnp.float32
    # 1x1 convs: (Cin, Cout) -> (Cout, Cin), all units stacked along rows.
    w1p = jnp.transpose(w1, (0, 2, 1)).reshape(U * Nh, N).astype(bf16)
    w3p = jnp.transpose(w3, (0, 2, 1)).reshape(U * N, Nh).astype(bf16)
    # 3x3 convs: HWIO -> im2col-packed (Cout, 9*Cin); columns tap-major.
    w2p = jnp.transpose(w2.reshape(U, 9, Nh, Nh),
                        (0, 3, 1, 2)).reshape(U * Nh, 9 * Nh).astype(bf16)
    wfp = jnp.transpose(wf, (1, 0)).astype(bf16)
    b1p = b1.reshape(U * Nh, 1).astype(f32)
    b2p = b2.reshape(U * Nh, 1).astype(f32)
    b3p = b3.reshape(U * N, 1).astype(f32)
    bfp = bf.reshape(N, 1).astype(f32)
    return w1p, b1p, w2p, b2p, w3p, b3p, wfp, bfp


def _tap_masks(H, W, P):
    """(9, P) f32 validity masks of the 9 taps of a padded 3x3 conv over a
    row-major (b, i, j) flattening of length P (P == H*W or B*H*W)."""
    p = jnp.arange(P, dtype=jnp.int32)
    col = p % W
    row = (p // W) % H
    row_ok = {-1: row != 0, 0: jnp.ones((P,), bool), 1: row != H - 1}
    col_ok = {-1: col != 0, 0: jnp.ones((P,), bool), 1: col != W - 1}
    return jnp.stack([(row_ok[ky] & col_ok[kx]).astype(jnp.float32)
                      for ky in (-1, 0, 1) for kx in (-1, 0, 1)], axis=0)


def attention_block(x_nchw, params, fold_batch=None):
    """x_nchw: (B, N, H, W) float32 -> (B, N, H, W) float32."""
    B, N, H, W = x_nchw.shape
    Nh = N // 2
    if fold_batch is None:
        # v5e/v6e (single TC): fold batch into one step (kills per-step
        # overhead, doubles matmul lane extent).  v7x: keep a parallel grid of
        # size B so both TensorCores are used.
        fold_batch = not (_multi_tensorcore_chip() and B > 1)

    x_cf = x_nchw.reshape(B, N, H * W)             # channels-first, spatial flat
    if fold_batch:
        x_in = jnp.transpose(x_cf, (1, 0, 2)).reshape(1, N, B * H * W)
        G, P = 1, B * H * W
    else:
        x_in = x_cf
        G, P = B, H * W

    masks = _tap_masks(H, W, P)
    w1p, b1p, w2p, b2p, w3p, b3p, wfp, bfp = _pack_params(params)
    consts = (masks, w1p, b1p, w2p, b2p, w3p, b3p, wfp, bfp)

    kernel = functools.partial(_attention_block_kernel, H=H, W=W)
    out = pl.pallas_call(
        kernel,
        out_shape=jax.ShapeDtypeStruct((G, N, P), x_nchw.dtype),
        grid_spec=pltpu.PrefetchScalarGridSpec(
            num_scalar_prefetch=0,
            grid=(G,),
            in_specs=[pl.BlockSpec((1, N, P), lambda g: (g, 0, 0))]
                     + [_full_spec(c) for c in consts],
            out_specs=pl.BlockSpec((1, N, P), lambda g: (g, 0, 0)),
            scratch_shapes=[pltpu.VMEM((9 * Nh, P), jnp.float32)],
        ),
        compiler_params=pltpu.CompilerParams(
            dimension_semantics=("parallel",)),
    )(x_in, *consts)

    if fold_batch:
        out = jnp.transpose(out.reshape(N, B, H * W), (1, 0, 2))
    return out.reshape(B, N, H, W)


def ref_forward(x, params):
    """Pure-JAX f32 reference replicating the PyTorch forward (NCHW)."""
    w1, b1, w2, b2, w3, b3, wf, bf = params
    dn = ("NCHW", "HWIO", "NCHW")
    hp = jax.lax.Precision.HIGHEST

    def c1(t, w, b):
        return jax.lax.conv_general_dilated(
            t, w[None, None], (1, 1), "VALID",
            dimension_numbers=dn, precision=hp) + b.reshape(1, -1, 1, 1)

    def c3(t, w, b):
        return jax.lax.conv_general_dilated(
            t, w, (1, 1), "SAME",
            dimension_numbers=dn, precision=hp) + b.reshape(1, -1, 1, 1)

    def ru(t, u):
        y = jax.nn.relu(c1(t, w1[u], b1[u]))
        y = jax.nn.relu(c3(y, w2[u], b2[u]))
        y = c1(y, w3[u], b3[u])
        return jax.nn.relu(y + t)

    a = x
    for u in range(3):
        a = ru(a, u)
    bb = x
    for u in range(3, 6):
        bb = ru(bb, u)
    bb = c1(bb, wf, bf)
    return a * jax.nn.sigmoid(bb) + x


if __name__ == "__main__":
    N, Nh = 8, 4            # channels (PyTorch AttentionBlock(N=8))
    B, H, W = 2, 16, 16     # small spatial size

    keys = jax.random.split(jax.random.PRNGKey(0), 9)
    # Deterministic synthetic parameters: 1x1 weights as (Cin, Cout), 3x3
    # weights as HWIO, matching the pure-JAX reference.
    w1 = jax.random.normal(keys[0], (6, N, Nh), jnp.float32) * 0.2
    b1 = jax.random.normal(keys[1], (6, 1, Nh), jnp.float32) * 0.1
    w2 = jax.random.normal(keys[2], (6, 3, 3, Nh, Nh), jnp.float32) * 0.2
    b2 = jax.random.normal(keys[3], (6, 1, Nh), jnp.float32) * 0.1
    w3 = jax.random.normal(keys[4], (6, Nh, N), jnp.float32) * 0.2
    b3 = jax.random.normal(keys[5], (6, 1, N), jnp.float32) * 0.1
    wf = jax.random.normal(keys[6], (N, N), jnp.float32) * 0.2
    bf = jax.random.normal(keys[7], (1, N), jnp.float32) * 0.1
    params = (w1, b1, w2, b2, w3, b3, wf, bf)

    # Input in PyTorch's NCHW layout: (B, N, H, W).
    x = jax.random.normal(keys[8], (B, N, H, W), jnp.float32)

    out = jax.block_until_ready(attention_block(x, params))
    ref = ref_forward(x, params)

    assert out.shape == (B, N, H, W)
    # bf16 MXU operands (f32 accumulation) + approx reciprocal in the gate ->
    # slightly looser tolerance than a pure-f32 kernel would need.
    err = float(jnp.max(jnp.abs(out - ref)))
    if err > 7.5e-2:
        raise AssertionError(f"kernel/reference mismatch, max abs err = {err}")
    print("KERNEL_OK")
</pallas_src>

<mosaic_0001>
module attributes {stable_mosaic.version = 11 : i64} {
  func.func @_attention_block_kernel(%arg0: i32, %arg1: memref<1x8x512xf32, #tpu.memory_space<vmem>>, %arg2: memref<9x512xf32, #tpu.memory_space<vmem>>, %arg3: memref<24x8xbf16, #tpu.memory_space<vmem>>, %arg4: memref<24x1xf32, #tpu.memory_space<vmem>>, %arg5: memref<24x36xbf16, #tpu.memory_space<vmem>>, %arg6: memref<24x1xf32, #tpu.memory_space<vmem>>, %arg7: memref<48x4xbf16, #tpu.memory_space<vmem>>, %arg8: memref<48x1xf32, #tpu.memory_space<vmem>>, %arg9: memref<8x8xbf16, #tpu.memory_space<vmem>>, %arg10: memref<8x1xf32, #tpu.memory_space<vmem>>, %arg11: memref<1x8x512xf32, #tpu.memory_space<vmem>>, %arg12: memref<36x512xf32, #tpu.memory_space<vmem>>) attributes {dimension_semantics = [#tpu.dimension_semantics<parallel>], iteration_bounds = array<i64: 1>, scalar_prefetch = 0 : i64, scratch_operands = 1 : i64, tpu.core_type = #tpu.core_type<tc>, window_params = [{transform_indices = @transform_0, window_bounds = array<i64: 1, 8, 512>}, {pipeline_mode = #tpu.pipeline_mode<synchronous>, transform_indices = @transform_1, window_bounds = array<i64: 9, 512>}, {pipeline_mode = #tpu.pipeline_mode<synchronous>, transform_indices = @transform_2, window_bounds = array<i64: 24, 8>}, {pipeline_mode = #tpu.pipeline_mode<synchronous>, transform_indices = @transform_3, window_bounds = array<i64: 24, 1>}, {pipeline_mode = #tpu.pipeline_mode<synchronous>, transform_indices = @transform_4, window_bounds = array<i64: 24, 36>}, {pipeline_mode = #tpu.pipeline_mode<synchronous>, transform_indices = @transform_5, window_bounds = array<i64: 24, 1>}, {pipeline_mode = #tpu.pipeline_mode<synchronous>, transform_indices = @transform_6, window_bounds = array<i64: 48, 4>}, {pipeline_mode = #tpu.pipeline_mode<synchronous>, transform_indices = @transform_7, window_bounds = array<i64: 48, 1>}, {pipeline_mode = #tpu.pipeline_mode<synchronous>, transform_indices = @transform_8, window_bounds = array<i64: 8, 8>}, {pipeline_mode = #tpu.pipeline_mode<synchronous>, transform_indices = @transform_9, window_bounds = array<i64: 8, 1>}, {transform_indices = @transform_10, window_bounds = array<i64: 1, 8, 512>}]} {
    %c0 = arith.constant 0 : index
    %c0_0 = arith.constant 0 : index
    %c0_1 = arith.constant 0 : index
    %0 = vector.load %arg1[%c0, %c0_0, %c0_1] : memref<1x8x512xf32, #tpu.memory_space<vmem>>, vector<1x8x512xf32>
    %1 = vector.shape_cast %0 : vector<1x8x512xf32> to vector<8x512xf32>
    %c0_2 = arith.constant 0 : index
    %c0_3 = arith.constant 0 : index
    %2 = vector.load %arg3[%c0_2, %c0_3] : memref<24x8xbf16, #tpu.memory_space<vmem>>, vector<4x8xbf16>
    %c0_4 = arith.constant 0 : index
    %c0_5 = arith.constant 0 : index
    %3 = vector.load %arg4[%c0_4, %c0_5] : memref<24x1xf32, #tpu.memory_space<vmem>>, vector<4x1xf32>
    %c0_6 = arith.constant 0 : index
    %c0_7 = arith.constant 0 : index
    %4 = vector.load %arg7[%c0_6, %c0_7] : memref<48x4xbf16, #tpu.memory_space<vmem>>, vector<8x4xbf16>
    %c0_8 = arith.constant 0 : index
    %c0_9 = arith.constant 0 : index
    %5 = vector.load %arg8[%c0_8, %c0_9] : memref<48x1xf32, #tpu.memory_space<vmem>>, vector<8x1xf32>
    %6 = arith.truncf %1 : vector<8x512xf32> to vector<8x512xbf16>
    %cst = arith.constant dense<0.000000e+00> : vector<4x512xf32>
    %7 = tpu.matmul %2, %6, %cst {dimension_numbers = #tpu.dot_dimension_numbers<[1], [0], [0], [1], [0, 0, 1, 1], [], []>} : vector<4x8xbf16>, vector<8x512xbf16>, vector<4x512xf32> -> vector<4x512xf32>
    %8 = vector.broadcast %3 : vector<4x1xf32> to vector<4x512xf32>
    %9 = arith.addf %7, %8 : vector<4x512xf32>
    %cst_10 = arith.constant 0.000000e+00 : f32
    %10 = vector.broadcast %cst_10 : f32 to vector<4x512xf32>
    %11 = arith.maximumf %9, %10 : vector<4x512xf32>
    %c17_i32 = arith.constant 17 : i32
    %12 = tpu.dynamic_rotate %11 by %c17_i32 dim 1 : vector<4x512xf32>, i32 -> vector<4x512xf32>
    %c0_11 = arith.constant 0 : index
    %c0_12 = arith.constant 0 : index
    %13 = vector.load %arg2[%c0_11, %c0_12] : memref<9x512xf32, #tpu.memory_space<vmem>>, vector<1x512xf32>
    %14 = vector.broadcast %13 : vector<1x512xf32> to vector<4x512xf32>
    %15 = arith.mulf %12, %14 : vector<4x512xf32>
    %c0_13 = arith.constant 0 : index
    %c0_14 = arith.constant 0 : index
    %16 = vector.load %arg12[%c0_13, %c0_14] : memref<36x512xf32, #tpu.memory_space<vmem>>, vector<4x512xf32>
    tpu.vector_store %arg12[%c0_13, %c0_14], %15 {strides = array<i32>} : memref<36x512xf32, #tpu.memory_space<vmem>>, vector<4x512xf32>,
    %c16_i32 = arith.constant 16 : i32
    %17 = tpu.dynamic_rotate %11 by %c16_i32 dim 1 : vector<4x512xf32>, i32 -> vector<4x512xf32>
    %c1 = arith.constant 1 : index
    %c0_15 = arith.constant 0 : index
    %18 = vector.load %arg2[%c1, %c0_15] : memref<9x512xf32, #tpu.memory_space<vmem>>, vector<1x512xf32>
    %19 = vector.broadcast %18 : vector<1x512xf32> to vector<4x512xf32>
    %20 = arith.mulf %17, %19 : vector<4x512xf32>
    %c4 = arith.constant 4 : index
    %c0_16 = arith.constant 0 : index
    %21 = vector.load %arg12[%c4, %c0_16] : memref<36x512xf32, #tpu.memory_space<vmem>>, vector<4x512xf32>
    tpu.vector_store %arg12[%c4, %c0_16], %20 {strides = array<i32>} : memref<36x512xf32, #tpu.memory_space<vmem>>, vector<4x512xf32>,
    %c15_i32 = arith.constant 15 : i32
    %22 = tpu.dynamic_rotate %11 by %c15_i32 dim 1 : vector<4x512xf32>, i32 -> vector<4x512xf32>
    %c2 = arith.constant 2 : index
    %c0_17 = arith.constant 0 : index
    %23 = vector.load %arg2[%c2, %c0_17] : memref<9x512xf32, #tpu.memory_space<vmem>>, vector<1x512xf32>
    %24 = vector.broadcast %23 : vector<1x512xf32> to vector<4x512xf32>
    %25 = arith.mulf %22, %24 : vector<4x512xf32>
    %c8 = arith.constant 8 : index
    %c0_18 = arith.constant 0 : index
    %26 = vector.load %arg12[%c8, %c0_18] : memref<36x512xf32, #tpu.memory_space<vmem>>, vector<4x512xf32>
    tpu.vector_store %arg12[%c8, %c0_18], %25 {strides = array<i32>} : memref<36x512xf32, #tpu.memory_space<vmem>>, vector<4x512xf32>,
    %c1_i32 = arith.constant 1 : i32
    %27 = tpu.dynamic_rotate %11 by %c1_i32 dim 1 : vector<4x512xf32>, i32 -> vector<4x512xf32>
    %c3 = arith.constant 3 : index
    %c0_19 = arith.constant 0 : index
    %28 = vector.load %arg2[%c3, %c0_19] : memref<9x512xf32, #tpu.memory_space<vmem>>, vector<1x512xf32>
    %29 = vector.broadcast %28 : vector<1x512xf32> to vector<4x512xf32>
    %30 = arith.mulf %27, %29 : vector<4x512xf32>
    %c12 = arith.constant 12 : index
    %c0_20 = arith.constant 0 : index
    %31 = vector.load %arg12[%c12, %c0_20] : memref<36x512xf32, #tpu.memory_space<vmem>>, vector<4x512xf32>
    tpu.vector_store %arg12[%c12, %c0_20], %30 {strides = array<i32>} : memref<36x512xf32, #tpu.memory_space<vmem>>, vector<4x512xf32>,
    %c16 = arith.constant 16 : index
    %c0_21 = arith.constant 0 : index
    %32 = vector.load %arg12[%c16, %c0_21] : memref<36x512xf32, #tpu.memory_space<vmem>>, vector<4x512xf32>
    tpu.vector_store %arg12[%c16, %c0_21], %11 {strides = array<i32>} : memref<36x512xf32, #tpu.memory_space<vmem>>, vector<4x512xf32>,
    %c511_i32 = arith.constant 511 : i32
    %33 = tpu.dynamic_rotate %11 by %c511_i32 dim 1 : vector<4x512xf32>, i32 -> vector<4x512xf32>
    %c5 = arith.constant 5 : index
    %c0_22 = arith.constant 0 : index
    %34 = vector.load %arg2[%c5, %c0_22] : memref<9x512xf32, #tpu.memory_space<vmem>>, vector<1x512xf32>
    %35 = vector.broadcast %34 : vector<1x512xf32> to vector<4x512xf32>
    %36 = arith.mulf %33, %35 : vector<4x512xf32>
    %c20 = arith.constant 20 : index
    %c0_23 = arith.constant 0 : index
    %37 = vector.load %arg12[%c20, %c0_23] : memref<36x512xf32, #tpu.memory_space<vmem>>, vector<4x512xf32>
    tpu.vector_store %arg12[%c20, %c0_23], %36 {strides = array<i32>} : memref<36x512xf32, #tpu.memory_space<vmem>>, vector<4x512xf32>,
    %c497_i32 = arith.constant 497 : i32
    %38 = tpu.dynamic_rotate %11 by %c497_i32 dim 1 : vector<4x512xf32>, i32 -> vector<4x512xf32>
    %c6 = arith.constant 6 : index
    %c0_24 = arith.constant 0 : index
    %39 = vector.load %arg2[%c6, %c0_24] : memref<9x512xf32, #tpu.memory_space<vmem>>, vector<1x512xf32>
    %40 = vector.broadcast %39 : vector<1x512xf32> to vector<4x512xf32>
    %41 = arith.mulf %38, %40 : vector<4x512xf32>
    %c24 = arith.constant 24 : index
    %c0_25 = arith.constant 0 : index
    %42 = vector.load %arg12[%c24, %c0_25] : memref<36x512xf32, #tpu.memory_space<vmem>>, vector<4x512xf32>
    tpu.vector_store %arg12[%c24, %c0_25], %41 {strides = array<i32>} : memref<36x512xf32, #tpu.memory_space<vmem>>, vector<4x512xf32>,
    %c496_i32 = arith.constant 496 : i32
    %43 = tpu.dynamic_rotate %11 by %c496_i32 dim 1 : vector<4x512xf32>, i32 -> vector<4x512xf32>
    %c7 = arith.constant 7 : index
    %c0_26 = arith.constant 0 : index
    %44 = vector.load %arg2[%c7, %c0_26] : memref<9x512xf32, #tpu.memory_space<vmem>>, vector<1x512xf32>
    %45 = vector.broadcast %44 : vector<1x512xf32> to vector<4x512xf32>
    %46 = arith.mulf %43, %45 : vector<4x512xf32>
    %c28 = arith.constant 28 : index
    %c0_27 = arith.constant 0 : index
    %47 = vector.load %arg12[%c28, %c0_27] : memref<36x512xf32, #tpu.memory_space<vmem>>, vector<4x512xf32>
    tpu.vector_store %arg12[%c28, %c0_27], %46 {strides = array<i32>} : memref<36x512xf32, #tpu.memory_space<vmem>>, vector<4x512xf32>,
    %c495_i32 = arith.constant 495 : i32
    %48 = tpu.dynamic_rotate %11 by %c495_i32 dim 1 : vector<4x512xf32>, i32 -> vector<4x512xf32>
    %c8_28 = arith.constant 8 : index
    %c0_29 = arith.constant 0 : index
    %49 = vector.load %arg2[%c8_28, %c0_29] : memref<9x512xf32, #tpu.memory_space<vmem>>, vector<1x512xf32>
    %50 = vector.broadcast %49 : vector<1x512xf32> to vector<4x512xf32>
    %51 = arith.mulf %48, %50 : vector<4x512xf32>
    %c32 = arith.constant 32 : index
    %c0_30 = arith.constant 0 : index
    %52 = vector.load %arg12[%c32, %c0_30] : memref<36x512xf32, #tpu.memory_space<vmem>>, vector<4x512xf32>
    tpu.vector_store %arg12[%c32, %c0_30], %51 {strides = array<i32>} : memref<36x512xf32, #tpu.memory_space<vmem>>, vector<4x512xf32>,
    %c0_31 = arith.constant 0 : index
    %c0_32 = arith.constant 0 : index
    %53 = vector.load %arg12[%c0_31, %c0_32] : memref<36x512xf32, #tpu.memory_space<vmem>>, vector<36x512xf32>
    %54 = arith.truncf %53 : vector<36x512xf32> to vector<36x512xbf16>
    %c0_33 = arith.constant 0 : index
    %c0_34 = arith.constant 0 : index
    %55 = vector.load %arg5[%c0_33, %c0_34] : memref<24x36xbf16, #tpu.memory_space<vmem>>, vector<4x36xbf16>
    %c0_35 = arith.constant 0 : index
    %c0_36 = arith.constant 0 : index
    %56 = vector.load %arg6[%c0_35, %c0_36] : memref<24x1xf32, #tpu.memory_space<vmem>>, vector<4x1xf32>
    %cst_37 = arith.constant dense<0.000000e+00> : vector<4x512xf32>
    %57 = tpu.matmul %55, %54, %cst_37 {dimension_numbers = #tpu.dot_dimension_numbers<[1], [0], [0], [1], [0, 0, 1, 1], [], []>} : vector<4x36xbf16>, vector<36x512xbf16>, vector<4x512xf32> -> vector<4x512xf32>
    %58 = vector.broadcast %56 : vector<4x1xf32> to vector<4x512xf32>
    %59 = arith.addf %57, %58 : vector<4x512xf32>
    %cst_38 = arith.constant 0.000000e+00 : f32
    %60 = vector.broadcast %cst_38 : f32 to vector<4x512xf32>
    %61 = arith.maximumf %59, %60 : vector<4x512xf32>
    %62 = arith.truncf %61 : vector<4x512xf32> to vector<4x512xbf16>
    %cst_39 = arith.constant dense<0.000000e+00> : vector<8x512xf32>
    %63 = tpu.matmul %4, %62, %cst_39 {dimension_numbers = #tpu.dot_dimension_numbers<[1], [0], [0], [1], [0, 0, 1, 1], [], []>} : vector<8x4xbf16>, vector<4x512xbf16>, vector<8x512xf32> -> vector<8x512xf32>
    %64 = vector.broadcast %5 : vector<8x1xf32> to vector<8x512xf32>
    %65 = arith.addf %63, %64 : vector<8x512xf32>
    %66 = arith.addf %65, %1 : vector<8x512xf32>
    %cst_40 = arith.constant 0.000000e+00 : f32
    %67 = vector.broadcast %cst_40 : f32 to vector<8x512xf32>
    %68 = arith.maximumf %66, %67 : vector<8x512xf32>
    %c4_41 = arith.constant 4 : index
    %c0_42 = arith.constant 0 : index
    %69 = vector.load %arg3[%c4_41, %c0_42] : memref<24x8xbf16, #tpu.memory_space<vmem>>, vector<4x8xbf16>
    %c4_43 = arith.constant 4 : index
    %c0_44 = arith.constant 0 : index
    %70 = vector.load %arg4[%c4_43, %c0_44] : memref<24x1xf32, #tpu.memory_space<vmem>>, vector<4x1xf32>
    %c8_45 = arith.constant 8 : index
    %c0_46 = arith.constant 0 : index
    %71 = vector.load %arg7[%c8_45, %c0_46] : memref<48x4xbf16, #tpu.memory_space<vmem>>, vector<8x4xbf16>
    %c8_47 = arith.constant 8 : index
    %c0_48 = arith.constant 0 : index
    %72 = vector.load %arg8[%c8_47, %c0_48] : memref<48x1xf32, #tpu.memory_space<vmem>>, vector<8x1xf32>
    %73 = arith.truncf %68 : vector<8x512xf32> to vector<8x512xbf16>
    %cst_49 = arith.constant dense<0.000000e+00> : vector<4x512xf32>
    %74 = tpu.matmul %69, %73, %cst_49 {dimension_numbers = #tpu.dot_dimension_numbers<[1], [0], [0], [1], [0, 0, 1, 1], [], []>} : vector<4x8xbf16>, vector<8x512xbf16>, vector<4x512xf32> -> vector<4x512xf32>
    %75 = vector.broadcast %70 : vector<4x1xf32> to vector<4x512xf32>
    %76 = arith.addf %74, %75 : vector<4x512xf32>
    %cst_50 = arith.constant 0.000000e+00 : f32
    %77 = vector.broadcast %cst_50 : f32 to vector<4x512xf32>
    %78 = arith.maximumf %76, %77 : vector<4x512xf32>
    %c17_i32_51 = arith.constant 17 : i32
    %79 = tpu.dynamic_rotate %78 by %c17_i32_51 dim 1 : vector<4x512xf32>, i32 -> vector<4x512xf32>
    %c0_52 = arith.constant 0 : index
    %c0_53 = arith.constant 0 : index
    %80 = vector.load %arg2[%c0_52, %c0_53] : memref<9x512xf32, #tpu.memory_space<vmem>>, vector<1x512xf32>
    %81 = vector.broadcast %80 : vector<1x512xf32> to vector<4x512xf32>
    %82 = arith.mulf %79, %81 : vector<4x512xf32>
    %c0_54 = arith.constant 0 : index
    %c0_55 = arith.constant 0 : index
    %83 = vector.load %arg12[%c0_54, %c0_55] : memref<36x512xf32, #tpu.memory_space<vmem>>, vector<4x512xf32>
    tpu.vector_store %arg12[%c0_54, %c0_55], %82 {strides = array<i32>} : memref<36x512xf32, #tpu.memory_space<vmem>>, vector<4x512xf32>,
    %c16_i32_56 = arith.constant 16 : i32
    %84 = tpu.dynamic_rotate %78 by %c16_i32_56 dim 1 : vector<4x512xf32>, i32 -> vector<4x512xf32>
    %c1_57 = arith.constant 1 : index
    %c0_58 = arith.constant 0 : index
    %85 = vector.load %arg2[%c1_57, %c0_58] : memref<9x512xf32, #tpu.memory_space<vmem>>, vector<1x512xf32>
    %86 = vector.broadcast %85 : vector<1x512xf32> to vector<4x512xf32>
    %87 = arith.mulf %84, %86 : vector<4x512xf32>
    %c4_59 = arith.constant 4 : index
    %c0_60 = arith.constant 0 : index
    %88 = vector.load %arg12[%c4_59, %c0_60] : memref<36x512xf32, #tpu.memory_space<vmem>>, vector<4x512xf32>
    tpu.vector_store %arg12[%c4_59, %c0_60], %87 {strides = array<i32>} : memref<36x512xf32, #tpu.memory_space<vmem>>, vector<4x512xf32>,
    %c15_i32_61 = arith.constant 15 : i32
    %89 = tpu.dynamic_rotate %78 by %c15_i32_61 dim 1 : vector<4x512xf32>, i32 -> vector<4x512xf32>
    %c2_62 = arith.constant 2 : index
    %c0_63 = arith.constant 0 : index
    %90 = vector.load %arg2[%c2_62, %c0_63] : memref<9x512xf32, #tpu.memory_space<vmem>>, vector<1x512xf32>
    %91 = vector.broadcast %90 : vector<1x512xf32> to vector<4x512xf32>
    %92 = arith.mulf %89, %91 : vector<4x512xf32>
    %c8_64 = arith.constant 8 : index
    %c0_65 = arith.constant 0 : index
    %93 = vector.load %arg12[%c8_64, %c0_65] : memref<36x512xf32, #tpu.memory_space<vmem>>, vector<4x512xf32>
    tpu.vector_store %arg12[%c8_64, %c0_65], %92 {strides = array<i32>} : memref<36x512xf32, #tpu.memory_space<vmem>>, vector<4x512xf32>,
    %c1_i32_66 = arith.constant 1 : i32
    %94 = tpu.dynamic_rotate %78 by %c1_i32_66 dim 1 : vector<4x512xf32>, i32 -> vector<4x512xf32>
    %c3_67 = arith.constant 3 : index
    %c0_68 = arith.constant 0 : index
    %95 = vector.load %arg2[%c3_67, %c0_68] : memref<9x512xf32, #tpu.memory_space<vmem>>, vector<1x512xf32>
    %96 = vector.broadcast %95 : vector<1x512xf32> to vector<4x512xf32>
    %97 = arith.mulf %94, %96 : vector<4x512xf32>
    %c12_69 = arith.constant 12 : index
    %c0_70 = arith.constant 0 : index
    %98 = vector.load %arg12[%c12_69, %c0_70] : memref<36x512xf32, #tpu.memory_space<vmem>>, vector<4x512xf32>
    tpu.vector_store %arg12[%c12_69, %c0_70], %97 {strides = array<i32>} : memref<36x512xf32, #tpu.memory_space<vmem>>, vector<4x512xf32>,
    %c16_71 = arith.constant 16 : index
    %c0_72 = arith.constant 0 : index
    %99 = vector.load %arg12[%c16_71, %c0_72] : memref<36x512xf32, #tpu.memory_space<vmem>>, vector<4x512xf32>
    tpu.vector_store %arg12[%c16_71, %c0_72], %78 {strides = array<i32>} : memref<36x512xf32, #tpu.memory_space<vmem>>, vector<4x512xf32>,
    %c511_i32_73 = arith.constant 511 : i32
    %100 = tpu.dynamic_rotate %78 by %c511_i32_73 dim 1 : vector<4x512xf32>, i32 -> vector<4x512xf32>
    %c5_74 = arith.constant 5 : index
    %c0_75 = arith.constant 0 : index
    %101 = vector.load %arg2[%c5_74, %c0_75] : memref<9x512xf32, #tpu.memory_space<vmem>>, vector<1x512xf32>
    %102 = vector.broadcast %101 : vector<1x512xf32> to vector<4x512xf32>
    %103 = arith.mulf %100, %102 : vector<4x512xf32>
    %c20_76 = arith.constant 20 : index
    %c0_77 = arith.constant 0 : index
    %104 = vector.load %arg12[%c20_76, %c0_77] : memref<36x512xf32, #tpu.memory_space<vmem>>, vector<4x512xf32>
    tpu.vector_store %arg12[%c20_76, %c0_77], %103 {strides = array<i32>} : memref<36x512xf32, #tpu.memory_space<vmem>>, vector<4x512xf32>,
    %c497_i32_78 = arith.constant 497 : i32
    %105 = tpu.dynamic_rotate %78 by %c497_i32_78 dim 1 : vector<4x512xf32>, i32 -> vector<4x512xf32>
    %c6_79 = arith.constant 6 : index
    %c0_80 = arith.constant 0 : index
    %106 = vector.load %arg2[%c6_79, %c0_80] : memref<9x512xf32, #tpu.memory_space<vmem>>, vector<1x512xf32>
    %107 = vector.broadcast %106 : vector<1x512xf32> to vector<4x512xf32>
    %108 = arith.mulf %105, %107 : vector<4x512xf32>
    %c24_81 = arith.constant 24 : index
    %c0_82 = arith.constant 0 : index
    %109 = vector.load %arg12[%c24_81, %c0_82] : memref<36x512xf32, #tpu.memory_space<vmem>>, vector<4x512xf32>
    tpu.vector_store %arg12[%c24_81, %c0_82], %108 {strides = array<i32>} : memref<36x512xf32, #tpu.memory_space<vmem>>, vector<4x512xf32>,
    %c496_i32_83 = arith.constant 496 : i32
    %110 = tpu.dynamic_rotate %78 by %c496_i32_83 dim 1 : vector<4x512xf32>, i32 -> vector<4x512xf32>
    %c7_84 = arith.constant 7 : index
    %c0_85 = arith.constant 0 : index
    %111 = vector.load %arg2[%c7_84, %c0_85] : memref<9x512xf32, #tpu.memory_space<vmem>>, vector<1x512xf32>
    %112 = vector.broadcast %111 : vector<1x512xf32> to vector<4x512xf32>
    %113 = arith.mulf %110, %112 : vector<4x512xf32>
    %c28_86 = arith.constant 28 : index
    %c0_87 = arith.constant 0 : index
    %114 = vector.load %arg12[%c28_86, %c0_87] : memref<36x512xf32, #tpu.memory_space<vmem>>, vector<4x512xf32>
    tpu.vector_store %arg12[%c28_86, %c0_87], %113 {strides = array<i32>} : memref<36x512xf32, #tpu.memory_space<vmem>>, vector<4x512xf32>,
    %c495_i32_88 = arith.constant 495 : i32
    %115 = tpu.dynamic_rotate %78 by %c495_i32_88 dim 1 : vector<4x512xf32>, i32 -> vector<4x512xf32>
    %c8_89 = arith.constant 8 : index
    %c0_90 = arith.constant 0 : index
    %116 = vector.load %arg2[%c8_89, %c0_90] : memref<9x512xf32, #tpu.memory_space<vmem>>, vector<1x512xf32>
    %117 = vector.broadcast %116 : vector<1x512xf32> to vector<4x512xf32>
    %118 = arith.mulf %115, %117 : vector<4x512xf32>
    %c32_91 = arith.constant 32 : index
    %c0_92 = arith.constant 0 : index
    %119 = vector.load %arg12[%c32_91, %c0_92] : memref<36x512xf32, #tpu.memory_space<vmem>>, vector<4x512xf32>
    tpu.vector_store %arg12[%c32_91, %c0_92], %118 {strides = array<i32>} : memref<36x512xf32, #tpu.memory_space<vmem>>, vector<4x512xf32>,
    %c0_93 = arith.constant 0 : index
    %c0_94 = arith.constant 0 : index
    %120 = vector.load %arg12[%c0_93, %c0_94] : memref<36x512xf32, #tpu.memory_space<vmem>>, vector<36x512xf32>
    %121 = arith.truncf %120 : vector<36x512xf32> to vector<36x512xbf16>
    %c4_95 = arith.constant 4 : index
    %c0_96 = arith.constant 0 : index
    %122 = vector.load %arg5[%c4_95, %c0_96] : memref<24x36xbf16, #tpu.memory_space<vmem>>, vector<4x36xbf16>
    %c4_97 = arith.constant 4 : index
    %c0_98 = arith.constant 0 : index
    %123 = vector.load %arg6[%c4_97, %c0_98] : memref<24x1xf32, #tpu.memory_space<vmem>>, vector<4x1xf32>
    %cst_99 = arith.constant dense<0.000000e+00> : vector<4x512xf32>
    %124 = tpu.matmul %122, %121, %cst_99 {dimension_numbers = #tpu.dot_dimension_numbers<[1], [0], [0], [1], [0, 0, 1, 1], [], []>} : vector<4x36xbf16>, vector<36x512xbf16>, vector<4x512xf32> -> vector<4x512xf32>
    %125 = vector.broadcast %123 : vector<4x1xf32> to vector<4x512xf32>
    %126 = arith.addf %124, %125 : vector<4x512xf32>
    %cst_100 = arith.constant 0.000000e+00 : f32
    %127 = vector.broadcast %cst_100 : f32 to vector<4x512xf32>
    %128 = arith.maximumf %126, %127 : vector<4x512xf32>
    %129 = arith.truncf %128 : vector<4x512xf32> to vector<4x512xbf16>
    %cst_101 = arith.constant dense<0.000000e+00> : vector<8x512xf32>
    %130 = tpu.matmul %71, %129, %cst_101 {dimension_numbers = #tpu.dot_dimension_numbers<[1], [0], [0], [1], [0, 0, 1, 1], [], []>} : vector<8x4xbf16>, vector<4x512xbf16>, vector<8x512xf32> -> vector<8x512xf32>
    %131 = vector.broadcast %72 : vector<8x1xf32> to vector<8x512xf32>
    %132 = arith.addf %130, %131 : vector<8x512xf32>
    %133 = arith.addf %132, %68 : vector<8x512xf32>
    %cst_102 = arith.constant 0.000000e+00 : f32
    %134 = vector.broadcast %cst_102 : f32 to vector<8x512xf32>
    %135 = arith.maximumf %133, %134 : vector<8x512xf32>
    %c8_103 = arith.constant 8 : index
    %c0_104 = arith.constant 0 : index
    %136 = vector.load %arg3[%c8_103, %c0_104] : memref<24x8xbf16, #tpu.memory_space<vmem>>, vector<4x8xbf16>
    %c8_105 = arith.constant 8 : index
    %c0_106 = arith.constant 0 : index
    %137 = vector.load %arg4[%c8_105, %c0_106] : memref<24x1xf32, #tpu.memory_space<vmem>>, vector<4x1xf32>
    %c16_107 = arith.constant 16 : index
    %c0_108 = arith.constant 0 : index
    %138 = vector.load %arg7[%c16_107, %c0_108] : memref<48x4xbf16, #tpu.memory_space<vmem>>, vector<8x4xbf16>
    %c16_109 = arith.constant 16 : index
    %c0_110 = arith.constant 0 : index
    %139 = vector.load %arg8[%c16_109, %c0_110] : memref<48x1xf32, #tpu.memory_space<vmem>>, vector<8x1xf32>
    %140 = arith.truncf %135 : vector<8x512xf32> to vector<8x512xbf16>
    %cst_111 = arith.constant dense<0.000000e+00> : vector<4x512xf32>
    %141 = tpu.matmul %136, %140, %cst_111 {dimension_numbers = #tpu.dot_dimension_numbers<[1], [0], [0], [1], [0, 0, 1, 1], [], []>} : vector<4x8xbf16>, vector<8x512xbf16>, vector<4x512xf32> -> vector<4x512xf32>
    %142 = vector.broadcast %137 : vector<4x1xf32> to vector<4x512xf32>
    %143 = arith.addf %141, %142 : vector<4x512xf32>
    %cst_112 = arith.constant 0.000000e+00 : f32
    %144 = vector.broadcast %cst_112 : f32 to vector<4x512xf32>
    %145 = arith.maximumf %143, %144 : vector<4x512xf32>
    %c17_i32_113 = arith.constant 17 : i32
    %146 = tpu.dynamic_rotate %145 by %c17_i32_113 dim 1 : vector<4x512xf32>, i32 -> vector<4x512xf32>
    %c0_114 = arith.constant 0 : index
    %c0_115 = arith.constant 0 : index
    %147 = vector.load %arg2[%c0_114, %c0_115] : memref<9x512xf32, #tpu.memory_space<vmem>>, vector<1x512xf32>
    %148 = vector.broadcast %147 : vector<1x512xf32> to vector<4x512xf32>
    %149 = arith.mulf %146, %148 : vector<4x512xf32>
    %c0_116 = arith.constant 0 : index
    %c0_117 = arith.constant 0 : index
    %150 = vector.load %arg12[%c0_116, %c0_117] : memref<36x512xf32, #tpu.memory_space<vmem>>, vector<4x512xf32>
    tpu.vector_store %arg12[%c0_116, %c0_117], %149 {strides = array<i32>} : memref<36x512xf32, #tpu.memory_space<vmem>>, vector<4x512xf32>,
    %c16_i32_118 = arith.constant 16 : i32
    %151 = tpu.dynamic_rotate %145 by %c16_i32_118 dim 1 : vector<4x512xf32>, i32 -> vector<4x512xf32>
    %c1_119 = arith.constant 1 : index
    %c0_120 = arith.constant 0 : index
    %152 = vector.load %arg2[%c1_119, %c0_120] : memref<9x512xf32, #tpu.memory_space<vmem>>, vector<1x512xf32>
    %153 = vector.broadcast %152 : vector<1x512xf32> to vector<4x512xf32>
    %154 = arith.mulf %151, %153 : vector<4x512xf32>
    %c4_121 = arith.constant 4 : index
    %c0_122 = arith.constant 0 : index
    %155 = vector.load %arg12[%c4_121, %c0_122] : memref<36x512xf32, #tpu.memory_space<vmem>>, vector<4x512xf32>
    tpu.vector_store %arg12[%c4_121, %c0_122], %154 {strides = array<i32>} : memref<36x512xf32, #tpu.memory_space<vmem>>, vector<4x512xf32>,
    %c15_i32_123 = arith.constant 15 : i32
    %156 = tpu.dynamic_rotate %145 by %c15_i32_123 dim 1 : vector<4x512xf32>, i32 -> vector<4x512xf32>
    %c2_124 = arith.constant 2 : index
    %c0_125 = arith.constant 0 : index
    %157 = vector.load %arg2[%c2_124, %c0_125] : memref<9x512xf32, #tpu.memory_space<vmem>>, vector<1x512xf32>
    %158 = vector.broadcast %157 : vector<1x512xf32> to vector<4x512xf32>
    %159 = arith.mulf %156, %158 : vector<4x512xf32>
    %c8_126 = arith.constant 8 : index
    %c0_127 = arith.constant 0 : index
    %160 = vector.load %arg12[%c8_126, %c0_127] : memref<36x512xf32, #tpu.memory_space<vmem>>, vector<4x512xf32>
    tpu.vector_store %arg12[%c8_126, %c0_127], %159 {strides = array<i32>} : memref<36x512xf32, #tpu.memory_space<vmem>>, vector<4x512xf32>,
    %c1_i32_128 = arith.constant 1 : i32
    %161 = tpu.dynamic_rotate %145 by %c1_i32_128 dim 1 : vector<4x512xf32>, i32 -> vector<4x512xf32>
    %c3_129 = arith.constant 3 : index
    %c0_130 = arith.constant 0 : index
    %162 = vector.load %arg2[%c3_129, %c0_130] : memref<9x512xf32, #tpu.memory_space<vmem>>, vector<1x512xf32>
    %163 = vector.broadcast %162 : vector<1x512xf32> to vector<4x512xf32>
    %164 = arith.mulf %161, %163 : vector<4x512xf32>
    %c12_131 = arith.constant 12 : index
    %c0_132 = arith.constant 0 : index
    %165 = vector.load %arg12[%c12_131, %c0_132] : memref<36x512xf32, #tpu.memory_space<vmem>>, vector<4x512xf32>
    tpu.vector_store %arg12[%c12_131, %c0_132], %164 {strides = array<i32>} : memref<36x512xf32, #tpu.memory_space<vmem>>, vector<4x512xf32>,
    %c16_133 = arith.constant 16 : index
    %c0_134 = arith.constant 0 : index
    %166 = vector.load %arg12[%c16_133, %c0_134] : memref<36x512xf32, #tpu.memory_space<vmem>>, vector<4x512xf32>
    tpu.vector_store %arg12[%c16_133, %c0_134], %145 {strides = array<i32>} : memref<36x512xf32, #tpu.memory_space<vmem>>, vector<4x512xf32>,
    %c511_i32_135 = arith.constant 511 : i32
    %167 = tpu.dynamic_rotate %145 by %c511_i32_135 dim 1 : vector<4x512xf32>, i32 -> vector<4x512xf32>
    %c5_136 = arith.constant 5 : index
    %c0_137 = arith.constant 0 : index
    %168 = vector.load %arg2[%c5_136, %c0_137] : memref<9x512xf32, #tpu.memory_space<vmem>>, vector<1x512xf32>
    %169 = vector.broadcast %168 : vector<1x512xf32> to vector<4x512xf32>
    %170 = arith.mulf %167, %169 : vector<4x512xf32>
    %c20_138 = arith.constant 20 : index
    %c0_139 = arith.constant 0 : index
    %171 = vector.load %arg12[%c20_138, %c0_139] : memref<36x512xf32, #tpu.memory_space<vmem>>, vector<4x512xf32>
    tpu.vector_store %arg12[%c20_138, %c0_139], %170 {strides = array<i32>} : memref<36x512xf32, #tpu.memory_space<vmem>>, vector<4x512xf32>,
    %c497_i32_140 = arith.constant 497 : i32
    %172 = tpu.dynamic_rotate %145 by %c497_i32_140 dim 1 : vector<4x512xf32>, i32 -> vector<4x512xf32>
    %c6_141 = arith.constant 6 : index
    %c0_142 = arith.constant 0 : index
    %173 = vector.load %arg2[%c6_141, %c0_142] : memref<9x512xf32, #tpu.memory_space<vmem>>, vector<1x512xf32>
    %174 = vector.broadcast %173 : vector<1x512xf32> to vector<4x512xf32>
    %175 = arith.mulf %172, %174 : vector<4x512xf32>
    %c24_143 = arith.constant 24 : index
    %c0_144 = arith.constant 0 : index
    %176 = vector.load %arg12[%c24_143, %c0_144] : memref<36x512xf32, #tpu.memory_space<vmem>>, vector<4x512xf32>
    tpu.vector_store %arg12[%c24_143, %c0_144], %175 {strides = array<i32>} : memref<36x512xf32, #tpu.memory_space<vmem>>, vector<4x512xf32>,
    %c496_i32_145 = arith.constant 496 : i32
    %177 = tpu.dynamic_rotate %145 by %c496_i32_145 dim 1 : vector<4x512xf32>, i32 -> vector<4x512xf32>
    %c7_146 = arith.constant 7 : index
    %c0_147 = arith.constant 0 : index
    %178 = vector.load %arg2[%c7_146, %c0_147] : memref<9x512xf32, #tpu.memory_space<vmem>>, vector<1x512xf32>
    %179 = vector.broadcast %178 : vector<1x512xf32> to vector<4x512xf32>
    %180 = arith.mulf %177, %179 : vector<4x512xf32>
    %c28_148 = arith.constant 28 : index
    %c0_149 = arith.constant 0 : index
    %181 = vector.load %arg12[%c28_148, %c0_149] : memref<36x512xf32, #tpu.memory_space<vmem>>, vector<4x512xf32>
    tpu.vector_store %arg12[%c28_148, %c0_149], %180 {strides = array<i32>} : memref<36x512xf32, #tpu.memory_space<vmem>>, vector<4x512xf32>,
    %c495_i32_150 = arith.constant 495 : i32
    %182 = tpu.dynamic_rotate %145 by %c495_i32_150 dim 1 : vector<4x512xf32>, i32 -> vector<4x512xf32>
    %c8_151 = arith.constant 8 : index
    %c0_152 = arith.constant 0 : index
    %183 = vector.load %arg2[%c8_151, %c0_152] : memref<9x512xf32, #tpu.memory_space<vmem>>, vector<1x512xf32>
    %184 = vector.broadcast %183 : vector<1x512xf32> to vector<4x512xf32>
    %185 = arith.mulf %182, %184 : vector<4x512xf32>
    %c32_153 = arith.constant 32 : index
    %c0_154 = arith.constant 0 : index
    %186 = vector.load %arg12[%c32_153, %c0_154] : memref<36x512xf32, #tpu.memory_space<vmem>>, vector<4x512xf32>
    tpu.vector_store %arg12[%c32_153, %c0_154], %185 {strides = array<i32>} : memref<36x512xf32, #tpu.memory_space<vmem>>, vector<4x512xf32>,
    %c0_155 = arith.constant 0 : index
    %c0_156 = arith.constant 0 : index
    %187 = vector.load %arg12[%c0_155, %c0_156] : memref<36x512xf32, #tpu.memory_space<vmem>>, vector<36x512xf32>
    %188 = arith.truncf %187 : vector<36x512xf32> to vector<36x512xbf16>
    %c8_157 = arith.constant 8 : index
    %c0_158 = arith.constant 0 : index
    %189 = vector.load %arg5[%c8_157, %c0_158] : memref<24x36xbf16, #tpu.memory_space<vmem>>, vector<4x36xbf16>
    %c8_159 = arith.constant 8 : index
    %c0_160 = arith.constant 0 : index
    %190 = vector.load %arg6[%c8_159, %c0_160] : memref<24x1xf32, #tpu.memory_space<vmem>>, vector<4x1xf32>
    %cst_161 = arith.constant dense<0.000000e+00> : vector<4x512xf32>
    %191 = tpu.matmul %189, %188, %cst_161 {dimension_numbers = #tpu.dot_dimension_numbers<[1], [0], [0], [1], [0, 0, 1, 1], [], []>} : vector<4x36xbf16>, vector<36x512xbf16>, vector<4x512xf32> -> vector<4x512xf32>
    %192 = vector.broadcast %190 : vector<4x1xf32> to vector<4x512xf32>
    %193 = arith.addf %191, %192 : vector<4x512xf32>
    %cst_162 = arith.constant 0.000000e+00 : f32
    %194 = vector.broadcast %cst_162 : f32 to vector<4x512xf32>
    %195 = arith.maximumf %193, %194 : vector<4x512xf32>
    %196 = arith.truncf %195 : vector<4x512xf32> to vector<4x512xbf16>
    %cst_163 = arith.constant dense<0.000000e+00> : vector<8x512xf32>
    %197 = tpu.matmul %138, %196, %cst_163 {dimension_numbers = #tpu.dot_dimension_numbers<[1], [0], [0], [1], [0, 0, 1, 1], [], []>} : vector<8x4xbf16>, vector<4x512xbf16>, vector<8x512xf32> -> vector<8x512xf32>
    %198 = vector.broadcast %139 : vector<8x1xf32> to vector<8x512xf32>
    %199 = arith.addf %197, %198 : vector<8x512xf32>
    %200 = arith.addf %199, %135 : vector<8x512xf32>
    %cst_164 = arith.constant 0.000000e+00 : f32
    %201 = vector.broadcast %cst_164 : f32 to vector<8x512xf32>
    %202 = arith.maximumf %200, %201 : vector<8x512xf32>
    %c12_165 = arith.constant 12 : index
    %c0_166 = arith.constant 0 : index
    %203 = vector.load %arg3[%c12_165, %c0_166] : memref<24x8xbf16, #tpu.memory_space<vmem>>, vector<4x8xbf16>
    %c12_167 = arith.constant 12 : index
    %c0_168 = arith.constant 0 : index
    %204 = vector.load %arg4[%c12_167, %c0_168] : memref<24x1xf32, #tpu.memory_space<vmem>>, vector<4x1xf32>
    %c24_169 = arith.constant 24 : index
    %c0_170 = arith.constant 0 : index
    %205 = vector.load %arg7[%c24_169, %c0_170] : memref<48x4xbf16, #tpu.memory_space<vmem>>, vector<8x4xbf16>
    %c24_171 = arith.constant 24 : index
    %c0_172 = arith.constant 0 : index
    %206 = vector.load %arg8[%c24_171, %c0_172] : memref<48x1xf32, #tpu.memory_space<vmem>>, vector<8x1xf32>
    %207 = arith.truncf %1 : vector<8x512xf32> to vector<8x512xbf16>
    %cst_173 = arith.constant dense<0.000000e+00> : vector<4x512xf32>
    %208 = tpu.matmul %203, %207, %cst_173 {dimension_numbers = #tpu.dot_dimension_numbers<[1], [0], [0], [1], [0, 0, 1, 1], [], []>} : vector<4x8xbf16>, vector<8x512xbf16>, vector<4x512xf32> -> vector<4x512xf32>
    %209 = vector.broadcast %204 : vector<4x1xf32> to vector<4x512xf32>
    %210 = arith.addf %208, %209 : vector<4x512xf32>
    %cst_174 = arith.constant 0.000000e+00 : f32
    %211 = vector.broadcast %cst_174 : f32 to vector<4x512xf32>
    %212 = arith.maximumf %210, %211 : vector<4x512xf32>
    %c17_i32_175 = arith.constant 17 : i32
    %213 = tpu.dynamic_rotate %212 by %c17_i32_175 dim 1 : vector<4x512xf32>, i32 -> vector<4x512xf32>
    %c0_176 = arith.constant 0 : index
    %c0_177 = arith.constant 0 : index
    %214 = vector.load %arg2[%c0_176, %c0_177] : memref<9x512xf32, #tpu.memory_space<vmem>>, vector<1x512xf32>
    %215 = vector.broadcast %214 : vector<1x512xf32> to vector<4x512xf32>
    %216 = arith.mulf %213, %215 : vector<4x512xf32>
    %c0_178 = arith.constant 0 : index
    %c0_179 = arith.constant 0 : index
    %217 = vector.load %arg12[%c0_178, %c0_179] : memref<36x512xf32, #tpu.memory_space<vmem>>, vector<4x512xf32>
    tpu.vector_store %arg12[%c0_178, %c0_179], %216 {strides = array<i32>} : memref<36x512xf32, #tpu.memory_space<vmem>>, vector<4x512xf32>,
    %c16_i32_180 = arith.constant 16 : i32
    %218 = tpu.dynamic_rotate %212 by %c16_i32_180 dim 1 : vector<4x512xf32>, i32 -> vector<4x512xf32>
    %c1_181 = arith.constant 1 : index
    %c0_182 = arith.constant 0 : index
    %219 = vector.load %arg2[%c1_181, %c0_182] : memref<9x512xf32, #tpu.memory_space<vmem>>, vector<1x512xf32>
    %220 = vector.broadcast %219 : vector<1x512xf32> to vector<4x512xf32>
    %221 = arith.mulf %218, %220 : vector<4x512xf32>
    %c4_183 = arith.constant 4 : index
    %c0_184 = arith.constant 0 : index
    %222 = vector.load %arg12[%c4_183, %c0_184] : memref<36x512xf32, #tpu.memory_space<vmem>>, vector<4x512xf32>
    tpu.vector_store %arg12[%c4_183, %c0_184], %221 {strides = array<i32>} : memref<36x512xf32, #tpu.memory_space<vmem>>, vector<4x512xf32>,
    %c15_i32_185 = arith.constant 15 : i32
    %223 = tpu.dynamic_rotate %212 by %c15_i32_185 dim 1 : vector<4x512xf32>, i32 -> vector<4x512xf32>
    %c2_186 = arith.constant 2 : index
    %c0_187 = arith.constant 0 : index
    %224 = vector.load %arg2[%c2_186, %c0_187] : memref<9x512xf32, #tpu.memory_space<vmem>>, vector<1x512xf32>
    %225 = vector.broadcast %224 : vector<1x512xf32> to vector<4x512xf32>
    %226 = arith.mulf %223, %225 : vector<4x512xf32>
    %c8_188 = arith.constant 8 : index
    %c0_189 = arith.constant 0 : index
    %227 = vector.load %arg12[%c8_188, %c0_189] : memref<36x512xf32, #tpu.memory_space<vmem>>, vector<4x512xf32>
    tpu.vector_store %arg12[%c8_188, %c0_189], %226 {strides = array<i32>} : memref<36x512xf32, #tpu.memory_space<vmem>>, vector<4x512xf32>,
    %c1_i32_190 = arith.constant 1 : i32
    %228 = tpu.dynamic_rotate %212 by %c1_i32_190 dim 1 : vector<4x512xf32>, i32 -> vector<4x512xf32>
    %c3_191 = arith.constant 3 : index
    %c0_192 = arith.constant 0 : index
    %229 = vector.load %arg2[%c3_191, %c0_192] : memref<9x512xf32, #tpu.memory_space<vmem>>, vector<1x512xf32>
    %230 = vector.broadcast %229 : vector<1x512xf32> to vector<4x512xf32>
    %231 = arith.mulf %228, %230 : vector<4x512xf32>
    %c12_193 = arith.constant 12 : index
    %c0_194 = arith.constant 0 : index
    %232 = vector.load %arg12[%c12_193, %c0_194] : memref<36x512xf32, #tpu.memory_space<vmem>>, vector<4x512xf32>
    tpu.vector_store %arg12[%c12_193, %c0_194], %231 {strides = array<i32>} : memref<36x512xf32, #tpu.memory_space<vmem>>, vector<4x512xf32>,
    %c16_195 = arith.constant 16 : index
    %c0_196 = arith.constant 0 : index
    %233 = vector.load %arg12[%c16_195, %c0_196] : memref<36x512xf32, #tpu.memory_space<vmem>>, vector<4x512xf32>
    tpu.vector_store %arg12[%c16_195, %c0_196], %212 {strides = array<i32>} : memref<36x512xf32, #tpu.memory_space<vmem>>, vector<4x512xf32>,
    %c511_i32_197 = arith.constant 511 : i32
    %234 = tpu.dynamic_rotate %212 by %c511_i32_197 dim 1 : vector<4x512xf32>, i32 -> vector<4x512xf32>
    %c5_198 = arith.constant 5 : index
    %c0_199 = arith.constant 0 : index
    %235 = vector.load %arg2[%c5_198, %c0_199] : memref<9x512xf32, #tpu.memory_space<vmem>>, vector<1x512xf32>
    %236 = vector.broadcast %235 : vector<1x512xf32> to vector<4x512xf32>
    %237 = arith.mulf %234, %236 : vector<4x512xf32>
    %c20_200 = arith.constant 20 : index
    %c0_201 = arith.constant 0 : index
    %238 = vector.load %arg12[%c20_200, %c0_201] : memref<36x512xf32, #tpu.memory_space<vmem>>, vector<4x512xf32>
    tpu.vector_store %arg12[%c20_200, %c0_201], %237 {strides = array<i32>} : memref<36x512xf32, #tpu.memory_space<vmem>>, vector<4x512xf32>,
    %c497_i32_202 = arith.constant 497 : i32
    %239 = tpu.dynamic_rotate %212 by %c497_i32_202 dim 1 : vector<4x512xf32>, i32 -> vector<4x512xf32>
    %c6_203 = arith.constant 6 : index
    %c0_204 = arith.constant 0 : index
    %240 = vector.load %arg2[%c6_203, %c0_204] : memref<9x512xf32, #tpu.memory_space<vmem>>, vector<1x512xf32>
    %241 = vector.broadcast %240 : vector<1x512xf32> to vector<4x512xf32>
    %242 = arith.mulf %239, %241 : vector<4x512xf32>
    %c24_205 = arith.constant 24 : index
    %c0_206 = arith.constant 0 : index
    %243 = vector.load %arg12[%c24_205, %c0_206] : memref<36x512xf32, #tpu.memory_space<vmem>>, vector<4x512xf32>
    tpu.vector_store %arg12[%c24_205, %c0_206], %242 {strides = array<i32>} : memref<36x512xf32, #tpu.memory_space<vmem>>, vector<4x512xf32>,
    %c496_i32_207 = arith.constant 496 : i32
    %244 = tpu.dynamic_rotate %212 by %c496_i32_207 dim 1 : vector<4x512xf32>, i32 -> vector<4x512xf32>
    %c7_208 = arith.constant 7 : index
    %c0_209 = arith.constant 0 : index
    %245 = vector.load %arg2[%c7_208, %c0_209] : memref<9x512xf32, #tpu.memory_space<vmem>>, vector<1x512xf32>
    %246 = vector.broadcast %245 : vector<1x512xf32> to vector<4x512xf32>
    %247 = arith.mulf %244, %246 : vector<4x512xf32>
    %c28_210 = arith.constant 28 : index
    %c0_211 = arith.constant 0 : index
    %248 = vector.load %arg12[%c28_210, %c0_211] : memref<36x512xf32, #tpu.memory_space<vmem>>, vector<4x512xf32>
    tpu.vector_store %arg12[%c28_210, %c0_211], %247 {strides = array<i32>} : memref<36x512xf32, #tpu.memory_space<vmem>>, vector<4x512xf32>,
    %c495_i32_212 = arith.constant 495 : i32
    %249 = tpu.dynamic_rotate %212 by %c495_i32_212 dim 1 : vector<4x512xf32>, i32 -> vector<4x512xf32>
    %c8_213 = arith.constant 8 : index
    %c0_214 = arith.constant 0 : index
    %250 = vector.load %arg2[%c8_213, %c0_214] : memref<9x512xf32, #tpu.memory_space<vmem>>, vector<1x512xf32>
    %251 = vector.broadcast %250 : vector<1x512xf32> to vector<4x512xf32>
    %252 = arith.mulf %249, %251 : vector<4x512xf32>
    %c32_215 = arith.constant 32 : index
    %c0_216 = arith.constant 0 : index
    %253 = vector.load %arg12[%c32_215, %c0_216] : memref<36x512xf32, #tpu.memory_space<vmem>>, vector<4x512xf32>
    tpu.vector_store %arg12[%c32_215, %c0_216], %252 {strides = array<i32>} : memref<36x512xf32, #tpu.memory_space<vmem>>, vector<4x512xf32>,
    %c0_217 = arith.constant 0 : index
    %c0_218 = arith.constant 0 : index
    %254 = vector.load %arg12[%c0_217, %c0_218] : memref<36x512xf32, #tpu.memory_space<vmem>>, vector<36x512xf32>
    %255 = arith.truncf %254 : vector<36x512xf32> to vector<36x512xbf16>
    %c12_219 = arith.constant 12 : index
    %c0_220 = arith.constant 0 : index
    %256 = vector.load %arg5[%c12_219, %c0_220] : memref<24x36xbf16, #tpu.memory_space<vmem>>, vector<4x36xbf16>
    %c12_221 = arith.constant 12 : index
    %c0_222 = arith.constant 0 : index
    %257 = vector.load %arg6[%c12_221, %c0_222] : memref<24x1xf32, #tpu.memory_space<vmem>>, vector<4x1xf32>
    %cst_223 = arith.constant dense<0.000000e+00> : vector<4x512xf32>
    %258 = tpu.matmul %256, %255, %cst_223 {dimension_numbers = #tpu.dot_dimension_numbers<[1], [0], [0], [1], [0, 0, 1, 1], [], []>} : vector<4x36xbf16>, vector<36x512xbf16>, vector<4x512xf32> -> vector<4x512xf32>
    %259 = vector.broadcast %257 : vector<4x1xf32> to vector<4x512xf32>
    %260 = arith.addf %258, %259 : vector<4x512xf32>
    %cst_224 = arith.constant 0.000000e+00 : f32
    %261 = vector.broadcast %cst_224 : f32 to vector<4x512xf32>
    %262 = arith.maximumf %260, %261 : vector<4x512xf32>
    %263 = arith.truncf %262 : vector<4x512xf32> to vector<4x512xbf16>
    %cst_225 = arith.constant dense<0.000000e+00> : vector<8x512xf32>
    %264 = tpu.matmul %205, %263, %cst_225 {dimension_numbers = #tpu.dot_dimension_numbers<[1], [0], [0], [1], [0, 0, 1, 1], [], []>} : vector<8x4xbf16>, vector<4x512xbf16>, vector<8x512xf32> -> vector<8x512xf32>
    %265 = vector.broadcast %206 : vector<8x1xf32> to vector<8x512xf32>
    %266 = arith.addf %264, %265 : vector<8x512xf32>
    %267 = arith.addf %266, %1 : vector<8x512xf32>
    %cst_226 = arith.constant 0.000000e+00 : f32
    %268 = vector.broadcast %cst_226 : f32 to vector<8x512xf32>
    %269 = arith.maximumf %267, %268 : vector<8x512xf32>
    %c16_227 = arith.constant 16 : index
    %c0_228 = arith.constant 0 : index
    %270 = vector.load %arg3[%c16_227, %c0_228] : memref<24x8xbf16, #tpu.memory_space<vmem>>, vector<4x8xbf16>
    %c16_229 = arith.constant 16 : index
    %c0_230 = arith.constant 0 : index
    %271 = vector.load %arg4[%c16_229, %c0_230] : memref<24x1xf32, #tpu.memory_space<vmem>>, vector<4x1xf32>
    %c32_231 = arith.constant 32 : index
    %c0_232 = arith.constant 0 : index
    %272 = vector.load %arg7[%c32_231, %c0_232] : memref<48x4xbf16, #tpu.memory_space<vmem>>, vector<8x4xbf16>
    %c32_233 = arith.constant 32 : index
    %c0_234 = arith.constant 0 : index
    %273 = vector.load %arg8[%c32_233, %c0_234] : memref<48x1xf32, #tpu.memory_space<vmem>>, vector<8x1xf32>
    %274 = arith.truncf %269 : vector<8x512xf32> to vector<8x512xbf16>
    %cst_235 = arith.constant dense<0.000000e+00> : vector<4x512xf32>
    %275 = tpu.matmul %270, %274, %cst_235 {dimension_numbers = #tpu.dot_dimension_numbers<[1], [0], [0], [1], [0, 0, 1, 1], [], []>} : vector<4x8xbf16>, vector<8x512xbf16>, vector<4x512xf32> -> vector<4x512xf32>
    %276 = vector.broadcast %271 : vector<4x1xf32> to vector<4x512xf32>
    %277 = arith.addf %275, %276 : vector<4x512xf32>
    %cst_236 = arith.constant 0.000000e+00 : f32
    %278 = vector.broadcast %cst_236 : f32 to vector<4x512xf32>
    %279 = arith.maximumf %277, %278 : vector<4x512xf32>
    %c17_i32_237 = arith.constant 17 : i32
    %280 = tpu.dynamic_rotate %279 by %c17_i32_237 dim 1 : vector<4x512xf32>, i32 -> vector<4x512xf32>
    %c0_238 = arith.constant 0 : index
    %c0_239 = arith.constant 0 : index
    %281 = vector.load %arg2[%c0_238, %c0_239] : memref<9x512xf32, #tpu.memory_space<vmem>>, vector<1x512xf32>
    %282 = vector.broadcast %281 : vector<1x512xf32> to vector<4x512xf32>
    %283 = arith.mulf %280, %282 : vector<4x512xf32>
    %c0_240 = arith.constant 0 : index
    %c0_241 = arith.constant 0 : index
    %284 = vector.load %arg12[%c0_240, %c0_241] : memref<36x512xf32, #tpu.memory_space<vmem>>, vector<4x512xf32>
    tpu.vector_store %arg12[%c0_240, %c0_241], %283 {strides = array<i32>} : memref<36x512xf32, #tpu.memory_space<vmem>>, vector<4x512xf32>,
    %c16_i32_242 = arith.constant 16 : i32
    %285 = tpu.dynamic_rotate %279 by %c16_i32_242 dim 1 : vector<4x512xf32>, i32 -> vector<4x512xf32>
    %c1_243 = arith.constant 1 : index
    %c0_244 = arith.constant 0 : index
    %286 = vector.load %arg2[%c1_243, %c0_244] : memref<9x512xf32, #tpu.memory_space<vmem>>, vector<1x512xf32>
    %287 = vector.broadcast %286 : vector<1x512xf32> to vector<4x512xf32>
    %288 = arith.mulf %285, %287 : vector<4x512xf32>
    %c4_245 = arith.constant 4 : index
    %c0_246 = arith.constant 0 : index
    %289 = vector.load %arg12[%c4_245, %c0_246] : memref<36x512xf32, #tpu.memory_space<vmem>>, vector<4x512xf32>
    tpu.vector_store %arg12[%c4_245, %c0_246], %288 {strides = array<i32>} : memref<36x512xf32, #tpu.memory_space<vmem>>, vector<4x512xf32>,
    %c15_i32_247 = arith.constant 15 : i32
    %290 = tpu.dynamic_rotate %279 by %c15_i32_247 dim 1 : vector<4x512xf32>, i32 -> vector<4x512xf32>
    %c2_248 = arith.constant 2 : index
    %c0_249 = arith.constant 0 : index
    %291 = vector.load %arg2[%c2_248, %c0_249] : memref<9x512xf32, #tpu.memory_space<vmem>>, vector<1x512xf32>
    %292 = vector.broadcast %291 : vector<1x512xf32> to vector<4x512xf32>
    %293 = arith.mulf %290, %292 : vector<4x512xf32>
    %c8_250 = arith.constant 8 : index
    %c0_251 = arith.constant 0 : index
    %294 = vector.load %arg12[%c8_250, %c0_251] : memref<36x512xf32, #tpu.memory_space<vmem>>, vector<4x512xf32>
    tpu.vector_store %arg12[%c8_250, %c0_251], %293 {strides = array<i32>} : memref<36x512xf32, #tpu.memory_space<vmem>>, vector<4x512xf32>,
    %c1_i32_252 = arith.constant 1 : i32
    %295 = tpu.dynamic_rotate %279 by %c1_i32_252 dim 1 : vector<4x512xf32>, i32 -> vector<4x512xf32>
    %c3_253 = arith.constant 3 : index
    %c0_254 = arith.constant 0 : index
    %296 = vector.load %arg2[%c3_253, %c0_254] : memref<9x512xf32, #tpu.memory_space<vmem>>, vector<1x512xf32>
    %297 = vector.broadcast %296 : vector<1x512xf32> to vector<4x512xf32>
    %298 = arith.mulf %295, %297 : vector<4x512xf32>
    %c12_255 = arith.constant 12 : index
    %c0_256 = arith.constant 0 : index
    %299 = vector.load %arg12[%c12_255, %c0_256] : memref<36x512xf32, #tpu.memory_space<vmem>>, vector<4x512xf32>
    tpu.vector_store %arg12[%c12_255, %c0_256], %298 {strides = array<i32>} : memref<36x512xf32, #tpu.memory_space<vmem>>, vector<4x512xf32>,
    %c16_257 = arith.constant 16 : index
    %c0_258 = arith.constant 0 : index
    %300 = vector.load %arg12[%c16_257, %c0_258] : memref<36x512xf32, #tpu.memory_space<vmem>>, vector<4x512xf32>
    tpu.vector_store %arg12[%c16_257, %c0_258], %279 {strides = array<i32>} : memref<36x512xf32, #tpu.memory_space<vmem>>, vector<4x512xf32>,
    %c511_i32_259 = arith.constant 511 : i32
    %301 = tpu.dynamic_rotate %279 by %c511_i32_259 dim 1 : vector<4x512xf32>, i32 -> vector<4x512xf32>
    %c5_260 = arith.constant 5 : index
    %c0_261 = arith.constant 0 : index
    %302 = vector.load %arg2[%c5_260, %c0_261] : memref<9x512xf32, #tpu.memory_space<vmem>>, vector<1x512xf32>
    %303 = vector.broadcast %302 : vector<1x512xf32> to vector<4x512xf32>
    %304 = arith.mulf %301, %303 : vector<4x512xf32>
    %c20_262 = arith.constant 20 : index
    %c0_263 = arith.constant 0 : index
    %305 = vector.load %arg12[%c20_262, %c0_263] : memref<36x512xf32, #tpu.memory_space<vmem>>, vector<4x512xf32>
    tpu.vector_store %arg12[%c20_262, %c0_263], %304 {strides = array<i32>} : memref<36x512xf32, #tpu.memory_space<vmem>>, vector<4x512xf32>,
    %c497_i32_264 = arith.constant 497 : i32
    %306 = tpu.dynamic_rotate %279 by %c497_i32_264 dim 1 : vector<4x512xf32>, i32 -> vector<4x512xf32>
    %c6_265 = arith.constant 6 : index
    %c0_266 = arith.constant 0 : index
    %307 = vector.load %arg2[%c6_265, %c0_266] : memref<9x512xf32, #tpu.memory_space<vmem>>, vector<1x512xf32>
    %308 = vector.broadcast %307 : vector<1x512xf32> to vector<4x512xf32>
    %309 = arith.mulf %306, %308 : vector<4x512xf32>
    %c24_267 = arith.constant 24 : index
    %c0_268 = arith.constant 0 : index
    %310 = vector.load %arg12[%c24_267, %c0_268] : memref<36x512xf32, #tpu.memory_space<vmem>>, vector<4x512xf32>
    tpu.vector_store %arg12[%c24_267, %c0_268], %309 {strides = array<i32>} : memref<36x512xf32, #tpu.memory_space<vmem>>, vector<4x512xf32>,
    %c496_i32_269 = arith.constant 496 : i32
    %311 = tpu.dynamic_rotate %279 by %c496_i32_269 dim 1 : vector<4x512xf32>, i32 -> vector<4x512xf32>
    %c7_270 = arith.constant 7 : index
    %c0_271 = arith.constant 0 : index
    %312 = vector.load %arg2[%c7_270, %c0_271] : memref<9x512xf32, #tpu.memory_space<vmem>>, vector<1x512xf32>
    %313 = vector.broadcast %312 : vector<1x512xf32> to vector<4x512xf32>
    %314 = arith.mulf %311, %313 : vector<4x512xf32>
    %c28_272 = arith.constant 28 : index
    %c0_273 = arith.constant 0 : index
    %315 = vector.load %arg12[%c28_272, %c0_273] : memref<36x512xf32, #tpu.memory_space<vmem>>, vector<4x512xf32>
    tpu.vector_store %arg12[%c28_272, %c0_273], %314 {strides = array<i32>} : memref<36x512xf32, #tpu.memory_space<vmem>>, vector<4x512xf32>,
    %c495_i32_274 = arith.constant 495 : i32
    %316 = tpu.dynamic_rotate %279 by %c495_i32_274 dim 1 : vector<4x512xf32>, i32 -> vector<4x512xf32>
    %c8_275 = arith.constant 8 : index
    %c0_276 = arith.constant 0 : index
    %317 = vector.load %arg2[%c8_275, %c0_276] : memref<9x512xf32, #tpu.memory_space<vmem>>, vector<1x512xf32>
    %318 = vector.broadcast %317 : vector<1x512xf32> to vector<4x512xf32>
    %319 = arith.mulf %316, %318 : vector<4x512xf32>
    %c32_277 = arith.constant 32 : index
    %c0_278 = arith.constant 0 : index
    %320 = vector.load %arg12[%c32_277, %c0_278] : memref<36x512xf32, #tpu.memory_space<vmem>>, vector<4x512xf32>
    tpu.vector_store %arg12[%c32_277, %c0_278], %319 {strides = array<i32>} : memref<36x512xf32, #tpu.memory_space<vmem>>, vector<4x512xf32>,
    %c0_279 = arith.constant 0 : index
    %c0_280 = arith.constant 0 : index
    %321 = vector.load %arg12[%c0_279, %c0_280] : memref<36x512xf32, #tpu.memory_space<vmem>>, vector<36x512xf32>
    %322 = arith.truncf %321 : vector<36x512xf32> to vector<36x512xbf16>
    %c16_281 = arith.constant 16 : index
    %c0_282 = arith.constant 0 : index
    %323 = vector.load %arg5[%c16_281, %c0_282] : memref<24x36xbf16, #tpu.memory_space<vmem>>, vector<4x36xbf16>
    %c16_283 = arith.constant 16 : index
    %c0_284 = arith.constant 0 : index
    %324 = vector.load %arg6[%c16_283, %c0_284] : memref<24x1xf32, #tpu.memory_space<vmem>>, vector<4x1xf32>
    %cst_285 = arith.constant dense<0.000000e+00> : vector<4x512xf32>
    %325 = tpu.matmul %323, %322, %cst_285 {dimension_numbers = #tpu.dot_dimension_numbers<[1], [0], [0], [1], [0, 0, 1, 1], [], []>} : vector<4x36xbf16>, vector<36x512xbf16>, vector<4x512xf32> -> vector<4x512xf32>
    %326 = vector.broadcast %324 : vector<4x1xf32> to vector<4x512xf32>
    %327 = arith.addf %325, %326 : vector<4x512xf32>
    %cst_286 = arith.constant 0.000000e+00 : f32
    %328 = vector.broadcast %cst_286 : f32 to vector<4x512xf32>
    %329 = arith.maximumf %327, %328 : vector<4x512xf32>
    %330 = arith.truncf %329 : vector<4x512xf32> to vector<4x512xbf16>
    %cst_287 = arith.constant dense<0.000000e+00> : vector<8x512xf32>
    %331 = tpu.matmul %272, %330, %cst_287 {dimension_numbers = #tpu.dot_dimension_numbers<[1], [0], [0], [1], [0, 0, 1, 1], [], []>} : vector<8x4xbf16>, vector<4x512xbf16>, vector<8x512xf32> -> vector<8x512xf32>
    %332 = vector.broadcast %273 : vector<8x1xf32> to vector<8x512xf32>
    %333 = arith.addf %331, %332 : vector<8x512xf32>
    %334 = arith.addf %333, %269 : vector<8x512xf32>
    %cst_288 = arith.constant 0.000000e+00 : f32
    %335 = vector.broadcast %cst_288 : f32 to vector<8x512xf32>
    %336 = arith.maximumf %334, %335 : vector<8x512xf32>
    %c20_289 = arith.constant 20 : index
    %c0_290 = arith.constant 0 : index
    %337 = vector.load %arg3[%c20_289, %c0_290] : memref<24x8xbf16, #tpu.memory_space<vmem>>, vector<4x8xbf16>
    %c20_291 = arith.constant 20 : index
    %c0_292 = arith.constant 0 : index
    %338 = vector.load %arg4[%c20_291, %c0_292] : memref<24x1xf32, #tpu.memory_space<vmem>>, vector<4x1xf32>
    %c40 = arith.constant 40 : index
    %c0_293 = arith.constant 0 : index
    %339 = vector.load %arg7[%c40, %c0_293] : memref<48x4xbf16, #tpu.memory_space<vmem>>, vector<8x4xbf16>
    %c40_294 = arith.constant 40 : index
    %c0_295 = arith.constant 0 : index
    %340 = vector.load %arg8[%c40_294, %c0_295] : memref<48x1xf32, #tpu.memory_space<vmem>>, vector<8x1xf32>
    %341 = arith.truncf %336 : vector<8x512xf32> to vector<8x512xbf16>
    %cst_296 = arith.constant dense<0.000000e+00> : vector<4x512xf32>
    %342 = tpu.matmul %337, %341, %cst_296 {dimension_numbers = #tpu.dot_dimension_numbers<[1], [0], [0], [1], [0, 0, 1, 1], [], []>} : vector<4x8xbf16>, vector<8x512xbf16>, vector<4x512xf32> -> vector<4x512xf32>
    %343 = vector.broadcast %338 : vector<4x1xf32> to vector<4x512xf32>
    %344 = arith.addf %342, %343 : vector<4x512xf32>
    %cst_297 = arith.constant 0.000000e+00 : f32
    %345 = vector.broadcast %cst_297 : f32 to vector<4x512xf32>
    %346 = arith.maximumf %344, %345 : vector<4x512xf32>
    %c17_i32_298 = arith.constant 17 : i32
    %347 = tpu.dynamic_rotate %346 by %c17_i32_298 dim 1 : vector<4x512xf32>, i32 -> vector<4x512xf32>
    %c0_299 = arith.constant 0 : index
    %c0_300 = arith.constant 0 : index
    %348 = vector.load %arg2[%c0_299, %c0_300] : memref<9x512xf32, #tpu.memory_space<vmem>>, vector<1x512xf32>
    %349 = vector.broadcast %348 : vector<1x512xf32> to vector<4x512xf32>
    %350 = arith.mulf %347, %349 : vector<4x512xf32>
    %c0_301 = arith.constant 0 : index
    %c0_302 = arith.constant 0 : index
    %351 = vector.load %arg12[%c0_301, %c0_302] : memref<36x512xf32, #tpu.memory_space<vmem>>, vector<4x512xf32>
    tpu.vector_store %arg12[%c0_301, %c0_302], %350 {strides = array<i32>} : memref<36x512xf32, #tpu.memory_space<vmem>>, vector<4x512xf32>,
    %c16_i32_303 = arith.constant 16 : i32
    %352 = tpu.dynamic_rotate %346 by %c16_i32_303 dim 1 : vector<4x512xf32>, i32 -> vector<4x512xf32>
    %c1_304 = arith.constant 1 : index
    %c0_305 = arith.constant 0 : index
    %353 = vector.load %arg2[%c1_304, %c0_305] : memref<9x512xf32, #tpu.memory_space<vmem>>, vector<1x512xf32>
    %354 = vector.broadcast %353 : vector<1x512xf32> to vector<4x512xf32>
    %355 = arith.mulf %352, %354 : vector<4x512xf32>
    %c4_306 = arith.constant 4 : index
    %c0_307 = arith.constant 0 : index
    %356 = vector.load %arg12[%c4_306, %c0_307] : memref<36x512xf32, #tpu.memory_space<vmem>>, vector<4x512xf32>
    tpu.vector_store %arg12[%c4_306, %c0_307], %355 {strides = array<i32>} : memref<36x512xf32, #tpu.memory_space<vmem>>, vector<4x512xf32>,
    %c15_i32_308 = arith.constant 15 : i32
    %357 = tpu.dynamic_rotate %346 by %c15_i32_308 dim 1 : vector<4x512xf32>, i32 -> vector<4x512xf32>
    %c2_309 = arith.constant 2 : index
    %c0_310 = arith.constant 0 : index
    %358 = vector.load %arg2[%c2_309, %c0_310] : memref<9x512xf32, #tpu.memory_space<vmem>>, vector<1x512xf32>
    %359 = vector.broadcast %358 : vector<1x512xf32> to vector<4x512xf32>
    %360 = arith.mulf %357, %359 : vector<4x512xf32>
    %c8_311 = arith.constant 8 : index
    %c0_312 = arith.constant 0 : index
    %361 = vector.load %arg12[%c8_311, %c0_312] : memref<36x512xf32, #tpu.memory_space<vmem>>, vector<4x512xf32>
    tpu.vector_store %arg12[%c8_311, %c0_312], %360 {strides = array<i32>} : memref<36x512xf32, #tpu.memory_space<vmem>>, vector<4x512xf32>,
    %c1_i32_313 = arith.constant 1 : i32
    %362 = tpu.dynamic_rotate %346 by %c1_i32_313 dim 1 : vector<4x512xf32>, i32 -> vector<4x512xf32>
    %c3_314 = arith.constant 3 : index
    %c0_315 = arith.constant 0 : index
    %363 = vector.load %arg2[%c3_314, %c0_315] : memref<9x512xf32, #tpu.memory_space<vmem>>, vector<1x512xf32>
    %364 = vector.broadcast %363 : vector<1x512xf32> to vector<4x512xf32>
    %365 = arith.mulf %362, %364 : vector<4x512xf32>
    %c12_316 = arith.constant 12 : index
    %c0_317 = arith.constant 0 : index
    %366 = vector.load %arg12[%c12_316, %c0_317] : memref<36x512xf32, #tpu.memory_space<vmem>>, vector<4x512xf32>
    tpu.vector_store %arg12[%c12_316, %c0_317], %365 {strides = array<i32>} : memref<36x512xf32, #tpu.memory_space<vmem>>, vector<4x512xf32>,
    %c16_318 = arith.constant 16 : index
    %c0_319 = arith.constant 0 : index
    %367 = vector.load %arg12[%c16_318, %c0_319] : memref<36x512xf32, #tpu.memory_space<vmem>>, vector<4x512xf32>
    tpu.vector_store %arg12[%c16_318, %c0_319], %346 {strides = array<i32>} : memref<36x512xf32, #tpu.memory_space<vmem>>, vector<4x512xf32>,
    %c511_i32_320 = arith.constant 511 : i32
    %368 = tpu.dynamic_rotate %346 by %c511_i32_320 dim 1 : vector<4x512xf32>, i32 -> vector<4x512xf32>
    %c5_321 = arith.constant 5 : index
    %c0_322 = arith.constant 0 : index
    %369 = vector.load %arg2[%c5_321, %c0_322] : memref<9x512xf32, #tpu.memory_space<vmem>>, vector<1x512xf32>
    %370 = vector.broadcast %369 : vector<1x512xf32> to vector<4x512xf32>
    %371 = arith.mulf %368, %370 : vector<4x512xf32>
    %c20_323 = arith.constant 20 : index
    %c0_324 = arith.constant 0 : index
    %372 = vector.load %arg12[%c20_323, %c0_324] : memref<36x512xf32, #tpu.memory_space<vmem>>, vector<4x512xf32>
    tpu.vector_store %arg12[%c20_323, %c0_324], %371 {strides = array<i32>} : memref<36x512xf32, #tpu.memory_space<vmem>>, vector<4x512xf32>,
    %c497_i32_325 = arith.constant 497 : i32
    %373 = tpu.dynamic_rotate %346 by %c497_i32_325 dim 1 : vector<4x512xf32>, i32 -> vector<4x512xf32>
    %c6_326 = arith.constant 6 : index
    %c0_327 = arith.constant 0 : index
    %374 = vector.load %arg2[%c6_326, %c0_327] : memref<9x512xf32, #tpu.memory_space<vmem>>, vector<1x512xf32>
    %375 = vector.broadcast %374 : vector<1x512xf32> to vector<4x512xf32>
    %376 = arith.mulf %373, %375 : vector<4x512xf32>
    %c24_328 = arith.constant 24 : index
    %c0_329 = arith.constant 0 : index
    %377 = vector.load %arg12[%c24_328, %c0_329] : memref<36x512xf32, #tpu.memory_space<vmem>>, vector<4x512xf32>
    tpu.vector_store %arg12[%c24_328, %c0_329], %376 {strides = array<i32>} : memref<36x512xf32, #tpu.memory_space<vmem>>, vector<4x512xf32>,
    %c496_i32_330 = arith.constant 496 : i32
    %378 = tpu.dynamic_rotate %346 by %c496_i32_330 dim 1 : vector<4x512xf32>, i32 -> vector<4x512xf32>
    %c7_331 = arith.constant 7 : index
    %c0_332 = arith.constant 0 : index
    %379 = vector.load %arg2[%c7_331, %c0_332] : memref<9x512xf32, #tpu.memory_space<vmem>>, vector<1x512xf32>
    %380 = vector.broadcast %379 : vector<1x512xf32> to vector<4x512xf32>
    %381 = arith.mulf %378, %380 : vector<4x512xf32>
    %c28_333 = arith.constant 28 : index
    %c0_334 = arith.constant 0 : index
    %382 = vector.load %arg12[%c28_333, %c0_334] : memref<36x512xf32, #tpu.memory_space<vmem>>, vector<4x512xf32>
    tpu.vector_store %arg12[%c28_333, %c0_334], %381 {strides = array<i32>} : memref<36x512xf32, #tpu.memory_space<vmem>>, vector<4x512xf32>,
    %c495_i32_335 = arith.constant 495 : i32
    %383 = tpu.dynamic_rotate %346 by %c495_i32_335 dim 1 : vector<4x512xf32>, i32 -> vector<4x512xf32>
    %c8_336 = arith.constant 8 : index
    %c0_337 = arith.constant 0 : index
    %384 = vector.load %arg2[%c8_336, %c0_337] : memref<9x512xf32, #tpu.memory_space<vmem>>, vector<1x512xf32>
    %385 = vector.broadcast %384 : vector<1x512xf32> to vector<4x512xf32>
    %386 = arith.mulf %383, %385 : vector<4x512xf32>
    %c32_338 = arith.constant 32 : index
    %c0_339 = arith.constant 0 : index
    %387 = vector.load %arg12[%c32_338, %c0_339] : memref<36x512xf32, #tpu.memory_space<vmem>>, vector<4x512xf32>
    tpu.vector_store %arg12[%c32_338, %c0_339], %386 {strides = array<i32>} : memref<36x512xf32, #tpu.memory_space<vmem>>, vector<4x512xf32>,
    %c0_340 = arith.constant 0 : index
    %c0_341 = arith.constant 0 : index
    %388 = vector.load %arg12[%c0_340, %c0_341] : memref<36x512xf32, #tpu.memory_space<vmem>>, vector<36x512xf32>
    %389 = arith.truncf %388 : vector<36x512xf32> to vector<36x512xbf16>
    %c20_342 = arith.constant 20 : index
    %c0_343 = arith.constant 0 : index
    %390 = vector.load %arg5[%c20_342, %c0_343] : memref<24x36xbf16, #tpu.memory_space<vmem>>, vector<4x36xbf16>
    %c20_344 = arith.constant 20 : index
    %c0_345 = arith.constant 0 : index
    %391 = vector.load %arg6[%c20_344, %c0_345] : memref<24x1xf32, #tpu.memory_space<vmem>>, vector<4x1xf32>
    %cst_346 = arith.constant dense<0.000000e+00> : vector<4x512xf32>
    %392 = tpu.matmul %390, %389, %cst_346 {dimension_numbers = #tpu.dot_dimension_numbers<[1], [0], [0], [1], [0, 0, 1, 1], [], []>} : vector<4x36xbf16>, vector<36x512xbf16>, vector<4x512xf32> -> vector<4x512xf32>
    %393 = vector.broadcast %391 : vector<4x1xf32> to vector<4x512xf32>
    %394 = arith.addf %392, %393 : vector<4x512xf32>
    %cst_347 = arith.constant 0.000000e+00 : f32
    %395 = vector.broadcast %cst_347 : f32 to vector<4x512xf32>
    %396 = arith.maximumf %394, %395 : vector<4x512xf32>
    %397 = arith.truncf %396 : vector<4x512xf32> to vector<4x512xbf16>
    %cst_348 = arith.constant dense<0.000000e+00> : vector<8x512xf32>
    %398 = tpu.matmul %339, %397, %cst_348 {dimension_numbers = #tpu.dot_dimension_numbers<[1], [0], [0], [1], [0, 0, 1, 1], [], []>} : vector<8x4xbf16>, vector<4x512xbf16>, vector<8x512xf32> -> vector<8x512xf32>
    %399 = vector.broadcast %340 : vector<8x1xf32> to vector<8x512xf32>
    %400 = arith.addf %398, %399 : vector<8x512xf32>
    %401 = arith.addf %400, %336 : vector<8x512xf32>
    %cst_349 = arith.constant 0.000000e+00 : f32
    %402 = vector.broadcast %cst_349 : f32 to vector<8x512xf32>
    %403 = arith.maximumf %401, %402 : vector<8x512xf32>
    %c0_350 = arith.constant 0 : index
    %c0_351 = arith.constant 0 : index
    %404 = vector.load %arg9[%c0_350, %c0_351] : memref<8x8xbf16, #tpu.memory_space<vmem>>, vector<8x8xbf16>
    %405 = arith.truncf %403 : vector<8x512xf32> to vector<8x512xbf16>
    %cst_352 = arith.constant dense<0.000000e+00> : vector<8x512xf32>
    %406 = tpu.matmul %404, %405, %cst_352 {dimension_numbers = #tpu.dot_dimension_numbers<[1], [0], [0], [1], [0, 0, 1, 1], [], []>} : vector<8x8xbf16>, vector<8x512xbf16>, vector<8x512xf32> -> vector<8x512xf32>
    %c0_353 = arith.constant 0 : index
    %c0_354 = arith.constant 0 : index
    %407 = vector.load %arg10[%c0_353, %c0_354] : memref<8x1xf32, #tpu.memory_space<vmem>>, vector<8x1xf32>
    %408 = vector.broadcast %407 : vector<8x1xf32> to vector<8x512xf32>
    %409 = arith.addf %406, %408 : vector<8x512xf32>
    %cst_355 = arith.constant 0.000000e+00 : f32
    %410 = vector.broadcast %cst_355 : f32 to vector<8x512xf32>
    %411 = arith.subf %410, %409 : vector<8x512xf32>
    %412 = math.exp %411 : vector<8x512xf32>
    %cst_356 = arith.constant 1.000000e+00 : f32
    %413 = vector.broadcast %cst_356 : f32 to vector<8x512xf32>
    %414 = arith.addf %413, %412 : vector<8x512xf32>
    %415 = tpu.reciprocal %414 {approx = true} : vector<8x512xf32> -> vector<8x512xf32>
    %416 = arith.mulf %202, %415 : vector<8x512xf32>
    %417 = arith.addf %416, %1 : vector<8x512xf32>
    %c0_357 = arith.constant 0 : index
    %c0_358 = arith.constant 0 : index
    %c0_359 = arith.constant 0 : index
    %418 = vector.load %arg11[%c0_357, %c0_358, %c0_359] : memref<1x8x512xf32, #tpu.memory_space<vmem>>, vector<1x8x512xf32>
    %419 = vector.shape_cast %418 : vector<1x8x512xf32> to vector<8x512xf32>
    %420 = vector.shape_cast %417 : vector<8x512xf32> to vector<1x8x512xf32>
    tpu.vector_store %arg11[%c0_357, %c0_358, %c0_359], %420 {strides = array<i32>} : memref<1x8x512xf32, #tpu.memory_space<vmem>>, vector<1x8x512xf32>,
    return
  }
  func.func @transform_0(%arg0: i32) -> (i32, i32, i32) {
    %c0_i32 = arith.constant 0 : i32
    %c0_i32_0 = arith.constant 0 : i32
    %c0_i32_1 = arith.constant 0 : i32
    return %arg0, %c0_i32, %c0_i32_0 : i32, i32, i32
  }
  func.func @transform_1(%arg0: i32) -> (i32, i32) {
    %c0_i32 = arith.constant 0 : i32
    %c0_i32_0 = arith.constant 0 : i32
    %c0_i32_1 = arith.constant 0 : i32
    return %c0_i32, %c0_i32_0 : i32, i32
  }
  func.func @transform_2(%arg0: i32) -> (i32, i32) {
    %c0_i32 = arith.constant 0 : i32
    %c0_i32_0 = arith.constant 0 : i32
    %c0_i32_1 = arith.constant 0 : i32
    return %c0_i32, %c0_i32_0 : i32, i32
  }
  func.func @transform_3(%arg0: i32) -> (i32, i32) {
    %c0_i32 = arith.constant 0 : i32
    %c0_i32_0 = arith.constant 0 : i32
    %c0_i32_1 = arith.constant 0 : i32
    return %c0_i32, %c0_i32_0 : i32, i32
  }
  func.func @transform_4(%arg0: i32) -> (i32, i32) {
    %c0_i32 = arith.constant 0 : i32
    %c0_i32_0 = arith.constant 0 : i32
    %c0_i32_1 = arith.constant 0 : i32
    return %c0_i32, %c0_i32_0 : i32, i32
  }
  func.func @transform_5(%arg0: i32) -> (i32, i32) {
    %c0_i32 = arith.constant 0 : i32
    %c0_i32_0 = arith.constant 0 : i32
    %c0_i32_1 = arith.constant 0 : i32
    return %c0_i32, %c0_i32_0 : i32, i32
  }
  func.func @transform_6(%arg0: i32) -> (i32, i32) {
    %c0_i32 = arith.constant 0 : i32
    %c0_i32_0 = arith.constant 0 : i32
    %c0_i32_1 = arith.constant 0 : i32
    return %c0_i32, %c0_i32_0 : i32, i32
  }
  func.func @transform_7(%arg0: i32) -> (i32, i32) {
    %c0_i32 = arith.constant 0 : i32
    %c0_i32_0 = arith.constant 0 : i32
    %c0_i32_1 = arith.constant 0 : i32
    return %c0_i32, %c0_i32_0 : i32, i32
  }
  func.func @transform_8(%arg0: i32) -> (i32, i32) {
    %c0_i32 = arith.constant 0 : i32
    %c0_i32_0 = arith.constant 0 : i32
    %c0_i32_1 = arith.constant 0 : i32
    return %c0_i32, %c0_i32_0 : i32, i32
  }
  func.func @transform_9(%arg0: i32) -> (i32, i32) {
    %c0_i32 = arith.constant 0 : i32
    %c0_i32_0 = arith.constant 0 : i32
    %c0_i32_1 = arith.constant 0 : i32
    return %c0_i32, %c0_i32_0 : i32, i32
  }
  func.func @transform_10(%arg0: i32) -> (i32, i32, i32) {
    %c0_i32 = arith.constant 0 : i32
    %c0_i32_0 = arith.constant 0 : i32
    %c0_i32_1 = arith.constant 0 : i32
    return %arg0, %c0_i32, %c0_i32_0 : i32, i32, i32
  }
}

</mosaic_0001>

<bundles_post_ra>
// kernel: tpu_custom_call.1
= control target key start
LH: loop header
LB: loop body
LE: loop exit
PB: predicated region body
PF: predicated region fallthrough
CT: control target
= control target key end

     0   :  { %vm58_vm0 = vcmask 1043456   ;;  %v3798_v7 = vmov 0   ;;  %s5612_s0 = inlined_call_operand.vmem [shape: f32[1,8,512], index: 0, kind: input, shape index: {}]   ;;  %s5613_s1 = inlined_call_operand.vmem [shape: f32[9,512], index: 1, kind: input, shape index: {}]   ;;  %s5614_s2 = inlined_call_operand.vmem [shape: bf16[24,8], index: 2, kind: input, shape index: {}]   ;;  %s5615_s3 = inlined_call_operand.vmem [shape: f32[24,1], index: 3, kind: input, shape index: {}]   ;;  %s5616_s4 = inlined_call_operand.vmem [shape: bf16[24,36], index: 4, kind: input, shape index: {}]   ;;  %s5617_s5 = inlined_call_operand.vmem [shape: f32[24,1], index: 5, kind: input, shape index: {}]   ;;  %s5618_s6 = inlined_call_operand.vmem [shape: bf16[48,4], index: 6, kind: input, shape index: {}]   ;;  %s5619_s7 = inlined_call_operand.vmem [shape: f32[48,1], index: 7, kind: input, shape index: {}]   ;;  %s5620_s8 = inlined_call_operand.vmem [shape: bf16[8,8], index: 8, kind: input, shape index: {}]   ;;  %s5621_s9 = inlined_call_operand.vmem [shape: f32[8,1], index: 9, kind: input, shape index: {}]   ;;  %s5622_s10 = inlined_call_operand.hbm [shape: f32[1,8,512], index: 10, kind: output, shape index: {}]  }
   0x1   :  { %v3866_v0 = vld [vmem:[%s5612_s0] sm:$0xff]  ;;  %v3871_v1 = vld [vmem:[%s5612_s0 + $0x8] sm:$0xff]  ;;  %v3876_v2 = vld [vmem:[%s5612_s0 + $0x10] sm:$0xff]  ;;  %3745 = vset.pattern.permute.xlu0 %v3798_v7  ;;  %3746 = vset.pattern.permute.xlu1 %v3798_v7 }
   0x2   :  { %v45_v3 = vpack.c.bf16 %v3866_v0, %v3866_v0  ;;  %v46_v4 = vpack.c.bf16 %v3871_v1, %v3871_v1  ;;  %v47_v5 = vpack.c.bf16 %v3876_v2, %v3876_v2  ;;  %v3887_v6 = vld [vmem:[%s5612_s0 + $0x18] sm:$0xff]  ;;  %v42_v8 = vld [vmem:[%s5615_s3] sm:$0xf]  ;;  %3747 = vset.pattern.permute.xlu2 %v3798_v7 }
   0x3   :  { %v48_v9 = vpack.c.bf16 %v3887_v6, %v3887_v6  ;;  %51 = vperm.xlu0 %3745, %v42_v8  }
   0x4   :  { %15 = vsyncpa [#allocation4], 0  ;;  %v3895_v10 = vsel %vm58_vm0, %v45_v3, 0  ;;  %v3898_v11 = vsel %vm58_vm0, %v46_v4, 0  ;;  %v3901_v12 = vsel %vm58_vm0, %v47_v5, 0  ;;  %vm54_vm1 = vcmask 64512  }
   0x5   :  { %78 = vmatpush.bf16.msra.mxu0 %v3895_v10  ;;  %91 = vmatpush.bf16.msra.mxu1 %v3898_v11  ;;  %v3906_v13 = vsel %vm58_vm0, %v48_v9, 0  ;;  %v41_v14 = vld [vmem:[%s5614_s2] sm:$0x3]  ;;  %s3799_s25 = smov 112   ;;  %s3800_s26 = smov 127   ;;  %v135_v36 = vlaneseq  ;;  %vm479_vm10 = vcmask 1041408  }
   0x6   :  { %104 = vmatpush.bf16.msra.mxu2 %v3901_v12  ;;  %117 = vmatpush.bf16.msra.mxu3 %v3906_v13  ;;  %s3801_s27 = smov 111   ;;  %s3802_s28 = smov 113   ;;  %v469_v32 = vld [vmem:[%s5617_s5] sm:$0xf]  ;;  %vm475_vm11 = vcmask 293888   ;;  %vm557_vm12 = vcmask 31744  }
   0x7   :  { %s3803_s29 = smov 16   ;;  %s3804_s30 = smov 1   ;;  %v3964_v40 = vand.u32 127, %v135_v36  ;;  %v3969_v41 = vld [vmem:[%s5613_s1 + $0x5] ss:$8 sm:$0xf] }
   0x8   :  { %3617 = vmatmul.msk.bf16.vlgmr.msra.gmra.mxu0 %vm54_vm1, %v41_v14  ;;  %3618 = vmatmul.msk.bf16.vlgmr.msra.gmra.mxu1 %vm54_vm1, %v41_v14  ;;  %s3805_s11 = smov 17   ;;  %s3806_s12 = smov 15   ;;  %v302_v42 = vperm.slane %v3969_v41, 2  ;;  %v303_v43 = vperm.slane %v3969_v41, 3 }
   0x9   :  { %3619 = vmatmul.msk.bf16.vlgmr.msra.gmra.mxu2 %vm54_vm1, %v41_v14  ;;  %3620 = vmatmul.msk.bf16.vlgmr.msra.gmra.mxu3 %vm54_vm1, %v41_v14  ;;  %vm292_vm2 = vcmp.lt.s32.totalorder %v3964_v40, 127  ;;  %v3985_v51 = vld [vmem:[%s5613_s1 + $0x1] ss:$8 sm:$0xf]  ;;  %vm168_vm3 = vcmp.lt.s32.totalorder %v3964_v40, 16  ;;  %vm368_vm4 = vcmp.lt.s32.totalorder %v3964_v40, 112 }
   0xa   :  { %v3990_v52 = vld [vmem:[%s5613_s1 + $0x7] ss:$8 sm:$0xf]  ;;  %v178_v55 = vperm.slane %v3985_v51, 2  ;;  %vm244_vm5 = vcmp.lt.s32.totalorder %v3964_v40, 1  ;;  %vm336_vm6 = vcmp.lt.s32.totalorder %v3964_v40, 113 }
   0xb   :  { %v378_v56 = vperm.slane %v3990_v52, 2  ;;  %v379_v57 = vperm.slane %v3990_v52, 3  ;;  %v4011_v7 = vld [vmem:[%s5613_s1 + $0x3] ss:$8 sm:$0xf]  ;;  %vm137_vm7 = vcmp.lt.s32.totalorder %v3964_v40, 17 }
   0xc   :  { %v4016_v9 = vld [vmem:[%s5613_s1 + $0x6] ss:$8 sm:$0xf]  ;;  %vm412_vm8 = vcmp.lt.s32.totalorder %v3964_v40, 111  ;;  %vm212_vm9 = vcmp.lt.s32.totalorder %v3964_v40, 15 }
  0x75   :  { %v52_v15 = vpop.permute.xlu0 %51 }
  0x85   :  { %v80_v16 = vpop.f32.mrf.mxu0  ;;  %v93_v17 = vpop.f32.mrf.mxu1 }
  0x86   :  { %v81_v18 = vadd.f32 %v80_v16, %v52_v15  ;;  %v94_v19 = vadd.f32 %v93_v17, %v52_v15  ;;  %v254_v16 = vperm.slane %v4011_v7, 2  ;;  %v346_v17 = vperm.slane %v4016_v9, 2 }
  0x88   :  { %v123_v20 = vmax.f32 %v81_v18, 0.0  ;;  %v124_v21 = vmax.f32 %v94_v19, 0.0  ;;  %v347_v18 = vperm.slane %v4016_v9, 3 }
  0x8a   :  { %280 = vst [vmem:[#allocation2 + $0x8] sm:$0xf] %v123_v20  ;;  %360 = vrot.lane.b32.xlu1 %v123_v20, %s3799_s25  ;;  %284 = vrot.lane.b32.xlu2 %v123_v20, %s3800_s26 }
  0x8b   :  { %281 = vst [vmem:[#allocation2 + $0x88] sm:$0xf] %v124_v21  ;;  %404 = vrot.lane.b32.xlu0 %v123_v20, %s3801_s27 }
  0x8c   :  { %v106_v22 = vpop.f32.mrf.mxu2  ;;  %v119_v23 = vpop.f32.mrf.mxu3 }
  0x8d   :  { %v107_v24 = vadd.f32 %v106_v22, %v52_v15  ;;  %v120_v25 = vadd.f32 %v119_v23, %v52_v15  ;;  %v82_v26 = vpop.f32.mrf.mxu0  ;;  %v95_v27 = vpop.f32.mrf.mxu1 }
  0x8f   :  { %v125_v28 = vmax.f32 %v107_v24, 0.0  ;;  %v126_v29 = vmax.f32 %v120_v25, 0.0 }
  0x91   :  { %282 = vst [vmem:[#allocation2 + $0x28] sm:$0xf] %v125_v28 }
  0x92   :  { %283 = vst [vmem:[#allocation2 + $0x40] sm:$0xf] %v126_v29  ;;  %328 = vrot.lane.b32.xlu1 %v123_v20, %s3802_s28  ;;  %288 = vrot.lane.b32.xlu2 %v125_v28, %s3800_s26 }
  0x93   :  { %290 = vrot.lane.b32.xlu0 %v126_v29, %s3800_s26 }
  0x94   :  { %v121_v30 = vpop.f32.mrf.mxu3  ;;  %v108_v31 = vpop.f32.mrf.mxu2 }
  0x95   :  { %v179_v31 = vperm.slane %v3985_v51, 3 }
  0x9a   :  { %162 = vrot.lane.b32.xlu1 %v124_v21, %s3803_s29  ;;  %364 = vrot.lane.b32.xlu2 %v125_v28, %s3799_s25 }
  0x9b   :  { %366 = vrot.lane.b32.xlu0 %v126_v29, %s3799_s25 }
  0xa2   :  { %238 = vrot.lane.b32.xlu1 %v124_v21, %s3804_s30  ;;  %332 = vrot.lane.b32.xlu2 %v125_v28, %s3802_s28 }
  0xa3   :  { %334 = vrot.lane.b32.xlu0 %v126_v29, %s3802_s28 }
  0xaa   :  { %129 = vrot.lane.b32.xlu1 %v124_v21, %s3805_s11  ;;  %164 = vrot.lane.b32.xlu2 %v125_v28, %s3803_s29 }
  0xab   :  { %166 = vrot.lane.b32.xlu0 %v126_v29, %s3803_s29 }
  0xb2   :  { %408 = vrot.lane.b32.xlu1 %v125_v28, %s3801_s27  ;;  %240 = vrot.lane.b32.xlu2 %v125_v28, %s3804_s30 }
  0xb3   :  { %242 = vrot.lane.b32.xlu0 %v126_v29, %s3804_s30 }
  0xba   :  { %410 = vrot.lane.b32.xlu1 %v126_v29, %s3801_s27  ;;  %131 = vrot.lane.b32.xlu2 %v125_v28, %s3805_s11 }
  0xbb   :  { %133 = vrot.lane.b32.xlu0 %v126_v29, %s3805_s11 }
  0xc2   :  { %206 = vrot.lane.b32.xlu1 %v124_v21, %s3806_s12  ;;  %208 = vrot.lane.b32.xlu2 %v125_v28, %s3806_s12  ;;  %v4039_v28 = vld [vmem:[%s5613_s1] ss:$8 sm:$0xf] }
  0xc3   :  { %210 = vrot.lane.b32.xlu0 %v126_v29, %s3806_s12  ;;  %v146_v30 = vperm.slane %v4039_v28, 2 }
  0xca   :  { %406 = vrot.lane.b32.xlu1 %v124_v21, %s3801_s27  ;;  %286 = vrot.lane.b32.xlu2 %v124_v21, %s3800_s26 }
  0xcb   :  { %362 = vrot.lane.b32.xlu0 %v124_v21, %s3799_s25 }
  0xd2   :  { %330 = vrot.lane.b32.xlu1 %v124_v21, %s3802_s28  ;;  %160 = vrot.lane.b32.xlu2 %v123_v20, %s3803_s29 }
  0xd3   :  { %236 = vrot.lane.b32.xlu0 %v123_v20, %s3804_s30 }
  0xda   :  { %127 = vrot.lane.b32.xlu1 %v123_v20, %s3805_s11  ;;  %204 = vrot.lane.b32.xlu2 %v123_v20, %s3806_s12 }
  0xdb   :  { %472 = vperm.xlu0 %3745, %v469_v32  }
  0xe4   :  { %v3952_v33 = vpop.permute.xlu2 %284 }
  0xec   :  { %v3954_v34 = vpop.permute.xlu2 %288 }
  0xf4   :  { %v3956_v35 = vpop.permute.xlu2 %364 }
  0xfc   :  { %v3958_v37 = vpop.permute.xlu1 %360  ;;  %v3960_v38 = vpop.permute.xlu2 %332 }
  0xfd   :  { %v3962_v39 = vpop.permute.xlu0 %404 }
 0x104   :  { %v3974_v44 = vpop.permute.xlu1 %328  ;;  %v165_v45 = vpop.permute.xlu2 %164 }
 0x105   :  { %v291_v46 = vpop.permute.xlu0 %290 }
 0x106   :  { %v293_v47 = vsel %vm292_vm2, %v3954_v34, %v291_v46  ;;  %v296_v48 = vsel %vm292_vm2, %v291_v46, %v3952_v33 }
 0x107   :  { %v310_v49 = vmul.f32 %v302_v42, %v293_v47  ;;  %v311_v50 = vmul.f32 %v303_v43, %v296_v48 }
 0x109   :  { %v318_v53 = vrot.slane %v310_v49, 4  ;;  %v319_v54 = vrot.slane %v311_v50, 4  ;;  %v300_v50 = vperm.slane %v3969_v41, 0 }
 0x10b   :  { %326 = vst [vmem:[#allocation2 + $0x28] sm:$0xf0] %v318_v53  ;;  %v301_v53 = vperm.slane %v3969_v41, 1 }
 0x10c   :  { %327 = vst [vmem:[#allocation2 + $0x40] sm:$0xf0] %v319_v54  ;;  %v3997_v58 = vpop.permute.xlu1 %162  ;;  %v241_v59 = vpop.permute.xlu2 %240  ;;  %v255_v54 = vperm.slane %v4011_v7, 3 }
 0x10d   :  { %v170_v60 = vsel %vm168_vm3, %v3997_v58, %v165_v45  ;;  %v367_v61 = vpop.permute.xlu0 %366 }
 0x10e   :  { %v186_v62 = vmul.f32 %v178_v55, %v170_v60  ;;  %v369_v63 = vsel %vm368_vm4, %v3956_v35, %v367_v61  ;;  %v372_v3 = vsel %vm368_vm4, %v367_v61, %v3958_v37 }
 0x10f   :  { %v386_v4 = vmul.f32 %v378_v56, %v369_v63  ;;  %v387_v5 = vmul.f32 %v379_v57, %v372_v3  ;;  %v4073_v3 = vld [vmem:[%s5613_s1 + $0x20] ss:$8 sm:$0xf] }
 0x110   :  { %v194_v8 = vrot.slane %v186_v62, 4 }
 0x111   :  { %v394_v14 = vrot.slane %v386_v4, 4  ;;  %v395_v15 = vrot.slane %v387_v5, 4 }
 0x112   :  { %202 = vst [vmem:[#allocation2 + $0x50] sm:$0xf0] %v194_v8  ;;  %v423_v8 = vperm.slane %v4073_v3, 3 }
 0x113   :  { %402 = vst [vmem:[#allocation2 + $0x98] sm:$0xf0] %v394_v14  ;;  %v176_v14 = vperm.slane %v3985_v51, 0 }
 0x114   :  { %403 = vst [vmem:[#allocation2 + $0x60] sm:$0xf0] %v395_v15  ;;  %v4023_v19 = vpop.permute.xlu1 %238  ;;  %v4025_v20 = vpop.permute.xlu2 %131 }
 0x115   :  { %v246_v21 = vsel %vm244_vm5, %v4023_v19, %v241_v59  ;;  %v335_v22 = vpop.permute.xlu0 %334 }
 0x116   :  { %v262_v23 = vmul.f32 %v254_v16, %v246_v21  ;;  %v337_v24 = vsel %vm336_vm6, %v3960_v38, %v335_v22  ;;  %v340_v25 = vsel %vm336_vm6, %v335_v22, %v3974_v44 }
 0x117   :  { %v354_v26 = vmul.f32 %v346_v17, %v337_v24  ;;  %v355_v27 = vmul.f32 %v347_v18, %v340_v25  ;;  %v147_v17 = vperm.slane %v4039_v28, 3 }
 0x118   :  { %v270_v29 = vrot.slane %v262_v23, 4 }
 0x119   :  { %358 = vst [vmem:[#allocation2 + $0x98] sm:$0xf] %v354_v26 }
 0x11a   :  { %278 = vst [vmem:[#allocation2 + $0x78] sm:$0xf0] %v270_v29 }
 0x11b   :  { %359 = vst [vmem:[#allocation2 + $0x60] sm:$0xf] %v355_v27 }
 0x11c   :  { %v4044_v32 = vpop.permute.xlu1 %129  ;;  %v4046_v36 = vpop.permute.xlu2 %208 }
 0x11d   :  { %v139_v42 = vsel %vm137_vm7, %v4044_v32, %v4025_v20  ;;  %v167_v43 = vpop.permute.xlu0 %166 }
 0x11e   :  { %v154_v46 = vmul.f32 %v146_v30, %v139_v42  ;;  %v169_v47 = vsel %vm168_vm3, %v165_v45, %v167_v43  ;;  %v3622_v30 = vld [vmem:[%s5613_s1 + $0x2] ss:$8 sm:$0xf] }
 0x11f   :  { %v187_v48 = vmul.f32 %v179_v31, %v169_v47  ;;  %v220_v47 = vperm.slane %v3622_v30, 0 }
 0x120   :  { %158 = vst [vmem:[#allocation2 + $0x50] sm:$0xf] %v154_v46  ;;  %v221_v46 = vperm.slane %v3622_v30, 1 }
 0x121   :  { %v195_v49 = vrot.slane %v187_v48, 4  ;;  %v223_v48 = vperm.slane %v3622_v30, 3 }
 0x123   :  { %203 = vst [vmem:[#allocation2 + $0x18] sm:$0xf0] %v195_v49 }
 0x124   :  { %v4057_v55 = vpop.permute.xlu1 %408  ;;  %v287_v56 = vpop.permute.xlu2 %286 }
 0x125   :  { %v294_v57 = vsel %vm292_vm2, %v287_v56, %v3954_v34  ;;  %v295_v45 = vsel %vm292_vm2, %v3952_v33, %v287_v56  ;;  %v4065_v60 = vpop.permute.xlu0 %242  ;;  %v422_v33 = vperm.slane %v4073_v3, 2 }
 0x126   :  { %v308_v61 = vmul.f32 %v300_v50, %v295_v45  ;;  %v309_v62 = vmul.f32 %v301_v53, %v294_v57  ;;  %v245_v41 = vsel %vm244_vm5, %v241_v59, %v4065_v60  ;;  %v177_v59 = vperm.slane %v3985_v51, 1 }
 0x127   :  { %v263_v63 = vmul.f32 %v255_v54, %v245_v41 }
 0x128   :  { %v316_v4 = vrot.slane %v308_v61, 4  ;;  %v317_v34 = vrot.slane %v309_v62, 4 }
 0x129   :  { %v271_v5 = vrot.slane %v263_v63, 4 }
 0x12a   :  { %324 = vst [vmem:[#allocation2 + $0x8] sm:$0xf0] %v316_v4 }
 0x12b   :  { %325 = vst [vmem:[#allocation2 + $0x88] sm:$0xf0] %v317_v34 }
 0x12c   :  { %279 = vst [vmem:[#allocation2 + $0x80] sm:$0xf0] %v271_v5  ;;  %v411_v15 = vpop.permute.xlu1 %410  ;;  %v161_v16 = vpop.permute.xlu2 %160 }
 0x12d   :  { %v413_v18 = vsel %vm412_vm8, %v4057_v55, %v411_v15  ;;  %v416_v21 = vsel %vm412_vm8, %v411_v15, %v3962_v39  ;;  %v171_v22 = vsel %vm168_vm3, %v161_v16, %v3997_v58  ;;  %v172_v51 = vsel %vm168_vm3, %v167_v43, %v161_v16  ;;  %v4092_v23 = vpop.permute.xlu0 %133 }
 0x12e   :  { %v430_v24 = vmul.f32 %v422_v33, %v413_v18  ;;  %v431_v25 = vmul.f32 %v423_v8, %v416_v21  ;;  %v184_v26 = vmul.f32 %v176_v14, %v172_v51  ;;  %v185_v27 = vmul.f32 %v177_v59, %v171_v22  ;;  %v451_v59 = vld [vmem:[#allocation2 + $0x60] sm:$0xff]  ;;  %v446_v21 = vld [vmem:[#allocation2 + $0x28] sm:$0xff] }
 0x12f   :  { %v138_v29 = vsel %vm137_vm7, %v4025_v20, %v4092_v23  ;;  %v222_v43 = vperm.slane %v3622_v30, 2  ;;  %v420_v33 = vperm.slane %v4073_v3, 0  ;;  %v421_v14 = vperm.slane %v4073_v3, 1  ;;  %v447_v22 = vld [vmem:[#allocation2 + $0x40] sm:$0xff] }
 0x130   :  { %434 = vst [vmem:[#allocation2 + $0x70] sm:$0xf] %v430_v24  ;;  %v192_v58 = vrot.slane %v184_v26, 4  ;;  %v193_v31 = vrot.slane %v185_v27, 4  ;;  %v155_v42 = vmul.f32 %v147_v17, %v138_v29  ;;  %v376_v16 = vperm.slane %v3990_v52, 0 }
 0x131   :  { %435 = vst [vmem:[#allocation2 + $0x90] sm:$0xf] %v431_v25  ;;  %v377_v17 = vperm.slane %v3990_v52, 1  ;;  %v463_v26 = vpack.c.bf16 %v451_v59, %v447_v22 }
 0x132   :  { %200 = vst [vmem:[#allocation2] sm:$0xf0] %v192_v58  ;;  %v445_v22 = vld [vmem:[#allocation2 + $0x88] sm:$0xff] }
 0x133   :  { %201 = vst [vmem:[#allocation2 + $0x38] sm:$0xf0] %v193_v31 }
 0x134   :  { %159 = vst [vmem:[#allocation2 + $0x18] sm:$0xf] %v155_v42  ;;  %v207_v49 = vpop.permute.xlu1 %206  ;;  %v205_v20 = vpop.permute.xlu2 %204 }
 0x135   :  { %v214_v50 = vsel %vm212_vm9, %v207_v49, %v4046_v36  ;;  %v215_v53 = vsel %vm212_vm9, %v205_v20, %v207_v49  ;;  %v211_v54 = vpop.permute.xlu0 %210  ;;  %v344_v49 = vperm.slane %v4016_v9, 0 }
 0x136   :  { %v230_v56 = vmul.f32 %v222_v43, %v214_v50  ;;  %v229_v57 = vmul.f32 %v221_v46, %v215_v53  ;;  %v213_v45 = vsel %vm212_vm9, %v4046_v36, %v211_v54  ;;  %v216_v61 = vsel %vm212_vm9, %v211_v54, %v205_v20  ;;  %v450_v36 = vld [vmem:[#allocation2 + $0x98] sm:$0xff]  ;;  %v468_v53 = vld [vmem:[%s5616_s4] sm:$0x3] }
 0x137   :  { %v228_v62 = vmul.f32 %v220_v47, %v216_v61  ;;  %v231_v41 = vmul.f32 %v223_v48, %v213_v45  ;;  %v454_v63 = vld [vmem:[#allocation2 + $0x70] sm:$0xf]  ;;  %v462_v25 = vpack.c.bf16 %v450_v36, %v446_v21  ;;  %v252_v20 = vperm.slane %v4011_v7, 0 }
 0x138   :  { %234 = vst [vmem:[#allocation2 + $0x78] sm:$0xf] %v230_v56  ;;  %v466_v4 = vpack.c.bf16 %v454_v63, %v454_v63  ;;  %v455_v34 = vld [vmem:[#allocation2 + $0x90] sm:$0xf]  ;;  %v253_v50 = vperm.slane %v4011_v7, 1 }
 0x139   :  { %233 = vst [vmem:[#allocation2 + $0x68] sm:$0xf] %v229_v57  ;;  %v467_v5 = vpack.c.bf16 %v455_v34, %v455_v34 }
 0x13a   :  { %232 = vst [vmem:[#allocation2 + $0x30] sm:$0xf] %v228_v62  ;;  %v487_v8 = vsel %vm479_vm10, %v466_v4, 0 }
 0x13b   :  { %235 = vst [vmem:[#allocation2 + $0x80] sm:$0xf] %v231_v41  ;;  %523 = vmatpush.bf16.msrb.mxu2 %v487_v8  ;;  %v490_v15 = vsel %vm479_vm10, %v467_v5, 0  ;;  %v439_v47 = vld [vmem:[#allocation2 + $0x18] sm:$0xff]  ;;  %v144_v8 = vperm.slane %v4039_v28, 0 }
 0x13c   :  { %536 = vmatpush.bf16.msrb.mxu3 %v490_v15  ;;  %v407_v18 = vpop.permute.xlu1 %406 }
 0x13d   :  { %v414_v51 = vsel %vm412_vm8, %v407_v18, %v4057_v55  ;;  %v415_v3 = vsel %vm412_vm8, %v3962_v39, %v407_v18  ;;  %v363_v24 = vpop.permute.xlu0 %362  ;;  %v438_v55 = vld [vmem:[#allocation2 + $0x50] sm:$0xff]  ;;  %v444_v18 = vld [vmem:[#allocation2 + $0x8] sm:$0xff] }
 0x13e   :  { %v428_v27 = vmul.f32 %v420_v33, %v415_v3  ;;  %v429_v29 = vmul.f32 %v421_v14, %v414_v51  ;;  %v370_v52 = vsel %vm368_vm4, %v363_v24, %v3956_v35  ;;  %v371_v30 = vsel %vm368_vm4, %v3958_v37, %v363_v24 }
 0x13f   :  { %v384_v58 = vmul.f32 %v376_v16, %v371_v30  ;;  %v385_v31 = vmul.f32 %v377_v17, %v370_v52  ;;  %524 = vmatpush.bf16.msrb.mxu2 %v462_v25  ;;  %v442_v42 = vld [vmem:[#allocation2 + $0x78] sm:$0xff]  ;;  %v345_v35 = vperm.slane %v4016_v9, 1 }
 0x140   :  { %432 = vst [vmem:[#allocation2 + $0x20] sm:$0xf] %v428_v27  ;;  %537 = vmatpush.bf16.msrb.mxu3 %v463_v26  ;;  %v458_v39 = vpack.c.bf16 %v442_v42, %v438_v55 }
 0x141   :  { %433 = vst [vmem:[#allocation2 + $0x48] sm:$0xf] %v429_v29  ;;  %v392_v43 = vrot.slane %v384_v58, 4  ;;  %v393_v46 = vrot.slane %v385_v31, 4 }
 0x142   :  { %v443_v48 = vld [vmem:[#allocation2 + $0x80] sm:$0xff] }
 0x143   :  { %400 = vst [vmem:[#allocation2 + $0x58] sm:$0xf0] %v392_v43  ;;  %525 = vmatpush.bf16.msrb.mxu2 %v458_v39  ;;  %v459_v37 = vpack.c.bf16 %v443_v48, %v439_v47 }
 0x144   :  { %401 = vst [vmem:[#allocation2 + $0x10] sm:$0xf0] %v393_v46  ;;  %v331_v54 = vpop.permute.xlu1 %330 }
 0x145   :  { %538 = vmatpush.bf16.msrb.mxu3 %v459_v37  ;;  %v338_v56 = vsel %vm336_vm6, %v331_v54, %v3960_v38  ;;  %v339_v9 = vsel %vm336_vm6, %v3974_v44, %v331_v54  ;;  %v237_v57 = vpop.permute.xlu0 %236 }
 0x146   :  { %v352_v45 = vmul.f32 %v344_v49, %v339_v9  ;;  %v353_v61 = vmul.f32 %v345_v35, %v338_v56  ;;  %v247_v7 = vsel %vm244_vm5, %v237_v57, %v4023_v19  ;;  %v248_v62 = vsel %vm244_vm5, %v4065_v60, %v237_v57  ;;  %3630 = vmatmul.msk.bf16.vlgmr.msrb.gmra.mxu2 %vm475_vm11, %v468_v53  ;;  %v43_v49 = vld [vmem:[%s5618_s6] sm:$0xf] }
 0x147   :  { %v260_v41 = vmul.f32 %v252_v20, %v248_v62  ;;  %v261_v63 = vmul.f32 %v253_v50, %v247_v7  ;;  %v452_v38 = vld [vmem:[#allocation2 + $0x20] sm:$0xf]  ;;  %v145_v60 = vperm.slane %v4039_v28, 1 }
 0x148   :  { %356 = vst [vmem:[#allocation2 + $0x58] sm:$0xf] %v352_v45  ;;  %3631 = vmatmul.msk.bf16.vlgmr.msrb.gmra.mxu3 %vm475_vm11, %v468_v53  ;;  %v464_v44 = vpack.c.bf16 %v452_v38, %v452_v38  ;;  %v453_v4 = vld [vmem:[#allocation2 + $0x48] sm:$0xf] }
 0x149   :  { %357 = vst [vmem:[#allocation2 + $0x10] sm:$0xf] %v353_v61  ;;  %v268_v34 = vrot.slane %v260_v41, 4  ;;  %v269_v5 = vrot.slane %v261_v63, 4  ;;  %v465_v33 = vpack.c.bf16 %v453_v4, %v453_v4  ;;  %v634_v63 = vld [vmem:[%s5615_s3 + $0x4] sm:$0xf] }
 0x14a   :  { %v481_v19 = vsel %vm479_vm10, %v464_v44, 0  ;;  %643 = vperm.xlu2 %3747, %v634_v63   ;;  %v633_v44 = vld [vmem:[%s5614_s2] sm:$0xc] }
 0x14b   :  { %276 = vst [vmem:[#allocation2 + $0x30] sm:$0xf0] %v268_v34  ;;  %497 = vmatpush.bf16.msrb.mxu0 %v481_v19  ;;  %v484_v14 = vsel %vm479_vm10, %v465_v33, 0 }
 0x14c   :  { %277 = vst [vmem:[#allocation2 + $0x68] sm:$0xf0] %v269_v5  ;;  %510 = vmatpush.bf16.msrb.mxu1 %v484_v14  ;;  %v128_v36 = vpop.permute.xlu1 %127  ;;  %v647_v5 = vunpack.c.l.b16 %v633_v44 }
 0x14d   :  { %v140_v59 = vsel %vm137_vm7, %v128_v36, %v4044_v32  ;;  %v141_v15 = vsel %vm137_vm7, %v4092_v23, %v128_v36  ;;  %v44_v23 = vld [vmem:[%s5619_s7] sm:$0xff]  ;;  %v473_v52 = vpop.permute.xlu0 %472 }
 0x14e   :  { %v152_v16 = vmul.f32 %v144_v8, %v141_v15  ;;  %v153_v17 = vmul.f32 %v145_v60, %v140_v59  ;;  %554 = vperm.xlu1 %3746, %v44_v23   ;;  %v648_v36 = vpack.c.b16 %v647_v5, %v647_v5  ;;  %v4267_v5 = vld [vmem:[%s5613_s1 + $0x5] ss:$8 sm:$0xf] }
 0x14f   :  { %v448_v21 = vld [vmem:[#allocation2 + $0x58] sm:$0xff] }
 0x150   :  { %156 = vst [vmem:[#allocation2] sm:$0xf] %v152_v16  ;;  %v460_v28 = vpack.c.bf16 %v448_v21, %v444_v18  ;;  %v449_v51 = vld [vmem:[#allocation2 + $0x10] sm:$0xff]  ;;  %v649_v21 = vrot.slane %v648_v36, 2 }
 0x151   :  { %157 = vst [vmem:[#allocation2 + $0x38] sm:$0xf] %v153_v17  ;;  %v461_v3 = vpack.c.bf16 %v449_v51, %v445_v22 }
 0x152   :  { %498 = vmatpush.bf16.msrb.mxu0 %v460_v28  ;;  %v440_v25 = vld [vmem:[#allocation2 + $0x30] sm:$0xff] }
 0x153   :  { %511 = vmatpush.bf16.msrb.mxu1 %v461_v3  ;;  %v441_v27 = vld [vmem:[#allocation2 + $0x68] sm:$0xff] }
 0x157   :  { %v436_v24 = vld [vmem:[#allocation2] sm:$0xff] }
 0x158   :  { %v456_v26 = vpack.c.bf16 %v440_v25, %v436_v24  ;;  %v437_v32 = vld [vmem:[#allocation2 + $0x38] sm:$0xff] }
 0x159   :  { %v457_v29 = vpack.c.bf16 %v441_v27, %v437_v32 }
 0x15a   :  { %499 = vmatpush.bf16.msrb.mxu0 %v456_v26 }
 0x15b   :  { %512 = vmatpush.bf16.msrb.mxu1 %v457_v29 }
 0x15d   :  { %3628 = vmatmul.msk.bf16.vlgmr.msrb.gmra.mxu0 %vm475_vm11, %v468_v53 }
 0x15e   :  { %3629 = vmatmul.msk.bf16.vlgmr.msrb.gmra.mxu1 %vm475_vm11, %v468_v53 }
 0x1c0   :  { %v555_v38 = vpop.permute.xlu1 %554 }
 0x1c9   :  { %v527_v30 = vpop.f32.mrf.mxu2 }
 0x1ca   :  { %v528_v58 = vadd.f32 %v527_v30, %v473_v52 }
 0x1cb   :  { %v540_v31 = vpop.f32.mrf.mxu3 }
 0x1cc   :  { %v546_v55 = vmax.f32 %v528_v58, 0.0  ;;  %v541_v42 = vadd.f32 %v540_v31, %v473_v52 }
 0x1ce   :  { %v550_v39 = vpack.c.bf16 %v546_v55, %v546_v55  ;;  %v547_v43 = vmax.f32 %v541_v42, 0.0 }
 0x1d0   :  { %v551_v46 = vpack.c.bf16 %v547_v43, %v547_v43  ;;  %v568_v47 = vsel %vm479_vm10, %v550_v39, 0 }
 0x1d1   :  { %v529_v48 = vpop.f32.mrf.mxu2  ;;  %606 = vmatpush.bf16.msra.mxu2 %v568_v47 }
 0x1d2   :  { %v571_v35 = vsel %vm479_vm10, %v551_v46, 0 }
 0x1d3   :  { %619 = vmatpush.bf16.msra.mxu3 %v571_v35  ;;  %v542_v20 = vpop.f32.mrf.mxu3 }
 0x1d4   :  { %3634 = vmatmul.msk.bf16.vlgmr.msra.gmra.mxu2 %vm557_vm12, %v43_v49 }
 0x1d6   :  { %3635 = vmatmul.msk.bf16.vlgmr.msra.gmra.mxu3 %vm557_vm12, %v43_v49 }
 0x1da   :  { %v501_v37 = vpop.f32.mrf.mxu0 }
 0x1db   :  { %v502_v50 = vadd.f32 %v501_v37, %v473_v52  ;;  %v514_v53 = vpop.f32.mrf.mxu1 }
 0x1dc   :  { %v515_v54 = vadd.f32 %v514_v53, %v473_v52 }
 0x1dd   :  { %v544_v56 = vmax.f32 %v502_v50, 0.0 }
 0x1de   :  { %v545_v9 = vmax.f32 %v515_v54, 0.0 }
 0x1df   :  { %v548_v57 = vpack.c.bf16 %v544_v56, %v544_v56  ;;  %v1046_v56 = vld [vmem:[%s5617_s5 + $0x4] sm:$0xf] }
 0x1e0   :  { %v549_v45 = vpack.c.bf16 %v545_v9, %v545_v9  ;;  %v1212_v9 = vld [vmem:[%s5615_s3 + $0x8] sm:$0xf] }
 0x1e1   :  { %v562_v61 = vsel %vm479_vm10, %v548_v57, 0  ;;  %v636_v57 = vld [vmem:[%s5619_s7 + $0x8] sm:$0xff] }
 0x1e2   :  { %v503_v7 = vpop.f32.mrf.mxu0  ;;  %580 = vmatpush.bf16.msra.mxu0 %v562_v61  ;;  %v565_v62 = vsel %vm479_vm10, %v549_v45, 0 }
 0x1e3   :  { %593 = vmatpush.bf16.msra.mxu1 %v565_v62  ;;  %v516_v41 = vpop.f32.mrf.mxu1  ;;  %v4255_v62 = vld [vmem:[%s5613_s1 + $0x20] ss:$8 sm:$0xf] }
 0x1e4   :  { %v999_v41 = vperm.slane %v4255_v62, 2 }
 0x1e5   :  { %3632 = vmatmul.msk.bf16.vlgmr.msra.gmra.mxu0 %vm557_vm12, %v43_v49 }
 0x1e6   :  { %3633 = vmatmul.msk.bf16.vlgmr.msra.gmra.mxu1 %vm557_vm12, %v43_v49 }
 0x257   :  { %v608_v4 = vpop.f32.mrf.mxu2 }
 0x258   :  { %v609_v34 = vadd.f32 %v608_v4, %v555_v38 }
 0x259   :  { %v621_v33 = vpop.f32.mrf.mxu3 }
 0x25a   :  { %v627_v19 = vadd.f32 %v609_v34, %v3876_v2  ;;  %v622_v8 = vadd.f32 %v621_v33, %v555_v38  ;;  %v1000_v34 = vperm.slane %v4255_v62, 3 }
 0x25c   :  { %v4184_v60 = vmax.f32 %v627_v19, 0.0  ;;  %v628_v14 = vadd.f32 %v622_v8, %v3887_v6  ;;  %v885_v8 = vperm.slane %v4267_v5, 2 }
 0x25e   :  { %v639_v59 = vpack.c.bf16 %v4184_v60, %v4184_v60  ;;  %v4189_v15 = vmax.f32 %v628_v14, 0.0 }
 0x25f   :  { %v610_v16 = vpop.f32.mrf.mxu2 }
 0x260   :  { %v640_v17 = vpack.c.bf16 %v4189_v15, %v4189_v15  ;;  %v660_v18 = vsel %vm58_vm0, %v639_v59, 0 }
 0x261   :  { %698 = vmatpush.bf16.msrb.mxu2 %v660_v18  ;;  %v623_v2 = vpop.f32.mrf.mxu3  ;;  %v886_v18 = vperm.slane %v4267_v5, 3 }
 0x262   :  { %v663_v28 = vsel %vm58_vm0, %v640_v17, 0  ;;  %v582_v22 = vpop.f32.mrf.mxu0  ;;  %v4286_v2 = vld [vmem:[%s5613_s1 + $0x7] ss:$8 sm:$0xf] }
 0x263   :  { %711 = vmatpush.bf16.msrb.mxu3 %v663_v28  ;;  %v583_v6 = vadd.f32 %v582_v22, %v555_v38  ;;  %v595_v51 = vpop.f32.mrf.mxu1 }
 0x264   :  { %v596_v3 = vadd.f32 %v595_v51, %v555_v38  ;;  %3638 = vmatmul.msk.bf16.vlgmr.msrb.gmra.mxu2 %vm54_vm1, %v649_v21 }
 0x265   :  { %v625_v24 = vadd.f32 %v583_v6, %v3866_v0 }
 0x266   :  { %v626_v25 = vadd.f32 %v596_v3, %v3871_v1  ;;  %3639 = vmatmul.msk.bf16.vlgmr.msrb.gmra.mxu3 %vm54_vm1, %v649_v21  ;;  %v644_v1 = vpop.permute.xlu2 %643 }
 0x267   :  { %v4199_v26 = vmax.f32 %v625_v24, 0.0  ;;  %v957_v24 = vperm.slane %v4286_v2, 2 }
 0x268   :  { %v4201_v32 = vmax.f32 %v626_v25, 0.0 }
 0x269   :  { %v637_v27 = vpack.c.bf16 %v4199_v26, %v4199_v26 }
 0x26a   :  { %v638_v29 = vpack.c.bf16 %v4201_v32, %v4201_v32  ;;  %v584_v23 = vpop.f32.mrf.mxu0 }
 0x26b   :  { %v654_v52 = vsel %vm58_vm0, %v637_v27, 0  ;;  %v597_v30 = vpop.f32.mrf.mxu1 }
 0x26c   :  { %672 = vmatpush.bf16.msrb.mxu0 %v654_v52  ;;  %v657_v0 = vsel %vm58_vm0, %v638_v29, 0 }
 0x26d   :  { %685 = vmatpush.bf16.msrb.mxu1 %v657_v0 }
 0x26f   :  { %3636 = vmatmul.msk.bf16.vlgmr.msrb.gmra.mxu0 %vm54_vm1, %v649_v21 }
 0x270   :  { %3637 = vmatmul.msk.bf16.vlgmr.msrb.gmra.mxu1 %vm54_vm1, %v649_v21 }
 0x2e7   :  { %v700_v58 = vpop.f32.mrf.mxu2 }
 0x2e8   :  { %v701_v31 = vadd.f32 %v700_v58, %v644_v1  ;;  %v958_v58 = vperm.slane %v4286_v2, 3 }
 0x2e9   :  { %v713_v55 = vpop.f32.mrf.mxu3 }
 0x2ea   :  { %v719_v42 = vmax.f32 %v701_v31, 0.0  ;;  %v714_v39 = vadd.f32 %v713_v55, %v644_v1  ;;  %v4304_v55 = vld [vmem:[%s5613_s1 + $0x6] ss:$8 sm:$0xf] }
 0x2ec   :  { %867 = vst [vmem:[#allocation2 + $0x28] sm:$0xf] %v719_v42  ;;  %v720_v43 = vmax.f32 %v714_v39, 0.0  ;;  %987 = vrot.lane.b32.xlu1 %v719_v42, %s3801_s27  ;;  %v674_v46 = vpop.f32.mrf.mxu0 }
 0x2ed   :  { %v675_v47 = vadd.f32 %v674_v46, %v644_v1  ;;  %v687_v48 = vpop.f32.mrf.mxu1  ;;  %v927_v46 = vperm.slane %v4304_v55, 2 }
 0x2ee   :  { %868 = vst [vmem:[#allocation2 + $0x40] sm:$0xf] %v720_v43  ;;  %989 = vrot.lane.b32.xlu2 %v720_v43, %s3801_s27  ;;  %v688_v49 = vadd.f32 %v687_v48, %v644_v1 }
 0x2ef   :  { %v717_v35 = vmax.f32 %v675_v47, 0.0  ;;  %v702_v20 = vpop.f32.mrf.mxu2 }
 0x2f0   :  { %v718_v37 = vmax.f32 %v688_v49, 0.0 }
 0x2f1   :  { %865 = vst [vmem:[#allocation2 + $0x8] sm:$0xf] %v717_v35  ;;  %983 = vrot.lane.b32.xlu0 %v717_v35, %s3801_s27  ;;  %v715_v50 = vpop.f32.mrf.mxu3 }
 0x2f2   :  { %866 = vst [vmem:[#allocation2 + $0x88] sm:$0xf] %v718_v37  ;;  %v928_v50 = vperm.slane %v4304_v55, 3 }
 0x2f4   :  { %873 = vrot.lane.b32.xlu1 %v719_v42, %s3800_s26  ;;  %v676_v53 = vpop.f32.mrf.mxu0 }
 0x2f5   :  { %v689_v54 = vpop.f32.mrf.mxu1  ;;  %v4320_v53 = vld [vmem:[%s5613_s1 + $0x1] ss:$8 sm:$0xf] }
 0x2f6   :  { %875 = vrot.lane.b32.xlu2 %v720_v43, %s3800_s26 }
 0x2f9   :  { %869 = vrot.lane.b32.xlu0 %v717_v35, %s3800_s26 }
 0x2fc   :  { %945 = vrot.lane.b32.xlu1 %v719_v42, %s3799_s25 }
 0x2fe   :  { %947 = vrot.lane.b32.xlu2 %v720_v43, %s3799_s25 }
 0x301   :  { %941 = vrot.lane.b32.xlu0 %v717_v35, %s3799_s25 }
 0x304   :  { %915 = vrot.lane.b32.xlu1 %v719_v42, %s3802_s28 }
 0x306   :  { %917 = vrot.lane.b32.xlu2 %v720_v43, %s3802_s28 }
 0x309   :  { %911 = vrot.lane.b32.xlu0 %v717_v35, %s3802_s28 }
 0x30c   :  { %755 = vrot.lane.b32.xlu1 %v719_v42, %s3803_s29 }
 0x30e   :  { %757 = vrot.lane.b32.xlu2 %v720_v43, %s3803_s29 }
 0x311   :  { %753 = vrot.lane.b32.xlu0 %v718_v37, %s3803_s29 }
 0x314   :  { %827 = vrot.lane.b32.xlu1 %v719_v42, %s3804_s30 }
 0x316   :  { %829 = vrot.lane.b32.xlu2 %v720_v43, %s3804_s30 }
 0x319   :  { %825 = vrot.lane.b32.xlu0 %v718_v37, %s3804_s30 }
 0x31c   :  { %725 = vrot.lane.b32.xlu1 %v719_v42, %s3805_s11 }
 0x31e   :  { %727 = vrot.lane.b32.xlu2 %v720_v43, %s3805_s11 }
 0x321   :  { %723 = vrot.lane.b32.xlu0 %v718_v37, %s3805_s11 }
 0x324   :  { %797 = vrot.lane.b32.xlu1 %v719_v42, %s3806_s12 }
 0x326   :  { %799 = vrot.lane.b32.xlu2 %v720_v43, %s3806_s12 }
 0x329   :  { %795 = vrot.lane.b32.xlu0 %v718_v37, %s3806_s12 }
 0x32c   :  { %871 = vrot.lane.b32.xlu1 %v718_v37, %s3800_s26 }
 0x32e   :  { %943 = vrot.lane.b32.xlu2 %v718_v37, %s3799_s25 }
 0x331   :  { %985 = vrot.lane.b32.xlu0 %v718_v37, %s3801_s27 }
 0x334   :  { %751 = vrot.lane.b32.xlu1 %v717_v35, %s3803_s29 }
 0x336   :  { %823 = vrot.lane.b32.xlu2 %v717_v35, %s3804_s30 }
 0x339   :  { %913 = vrot.lane.b32.xlu0 %v718_v37, %s3802_s28 }
 0x33c   :  { %793 = vrot.lane.b32.xlu1 %v717_v35, %s3806_s12 }
 0x33e   :  { %1049 = vperm.xlu2 %3747, %v1046_v56  }
 0x341   :  { %721 = vrot.lane.b32.xlu0 %v717_v35, %s3805_s11 }
 0x344   :  { %1221 = vperm.xlu1 %3746, %v1212_v9   ;;  %v768_v9 = vperm.slane %v4320_v53, 3 }
 0x348   :  { %v990_v45 = vpop.permute.xlu2 %989 }
 0x349   :  { %1133 = vperm.xlu0 %3745, %v636_v57  }
 0x350   :  { %v876_v61 = vpop.permute.xlu2 %875 }
 0x358   :  { %v948_v7 = vpop.permute.xlu2 %947 }
 0x35e   :  { %v4258_v63 = vpop.permute.xlu1 %987 }
 0x35f   :  { %v991_v38 = vsel %vm412_vm8, %v4258_v63, %v990_v45 }
 0x360   :  { %v918_v44 = vpop.permute.xlu2 %917  ;;  %v1007_v4 = vmul.f32 %v999_v41, %v991_v38  ;;  %v767_v38 = vperm.slane %v4320_v53, 2 }
 0x362   :  { %1011 = vst [vmem:[#allocation2 + $0x70] sm:$0xf] %v1007_v4 }
 0x363   :  { %v4269_v33 = vpop.permute.xlu0 %983 }
 0x364   :  { %v994_v19 = vsel %vm412_vm8, %v990_v45, %v4269_v33 }
 0x365   :  { %v1008_v14 = vmul.f32 %v1000_v34, %v994_v19 }
 0x366   :  { %v4275_v36 = vpop.permute.xlu1 %873 }
 0x367   :  { %1012 = vst [vmem:[#allocation2 + $0x90] sm:$0xf] %v1008_v14  ;;  %v877_v59 = vsel %vm292_vm2, %v4275_v36, %v876_v61 }
 0x368   :  { %v4280_v16 = vpop.permute.xlu2 %757  ;;  %v893_v17 = vmul.f32 %v885_v8, %v877_v59 }
 0x369   :  { %v1031_v21 = vld [vmem:[#allocation2 + $0x70] sm:$0xf] }
 0x36a   :  { %v901_v28 = vrot.slane %v893_v17, 4  ;;  %v1043_v22 = vpack.c.bf16 %v1031_v21, %v1031_v21 }
 0x36b   :  { %v4288_v6 = vpop.permute.xlu0 %869 }
 0x36c   :  { %909 = vst [vmem:[#allocation2 + $0x28] sm:$0xf0] %v901_v28  ;;  %v880_v51 = vsel %vm292_vm2, %v876_v61, %v4288_v6  ;;  %v1066_v3 = vsel %vm479_vm10, %v1043_v22, 0  ;;  %v955_v28 = vperm.slane %v4286_v2, 0  ;;  %v956_v22 = vperm.slane %v4286_v2, 1 }
 0x36d   :  { %v894_v25 = vmul.f32 %v886_v18, %v880_v51  ;;  %1102 = vmatpush.bf16.msra.mxu2 %v1066_v3  ;;  %v4354_v2 = vld [vmem:[%s5613_s1] ss:$8 sm:$0xf] }
 0x36e   :  { %v946_v27 = vpop.permute.xlu1 %945  ;;  %v1032_v29 = vld [vmem:[#allocation2 + $0x90] sm:$0xf] }
 0x36f   :  { %v902_v23 = vrot.slane %v894_v25, 4  ;;  %v949_v52 = vsel %vm368_vm4, %v946_v27, %v948_v7  ;;  %v1044_v30 = vpack.c.bf16 %v1032_v29, %v1032_v29 }
 0x370   :  { %v4297_v0 = vpop.permute.xlu2 %829  ;;  %v965_v1 = vmul.f32 %v957_v24, %v949_v52 }
 0x371   :  { %910 = vst [vmem:[#allocation2 + $0x40] sm:$0xf0] %v902_v23  ;;  %v1069_v31 = vsel %vm479_vm10, %v1044_v30, 0 }
 0x372   :  { %v973_v42 = vrot.slane %v965_v1, 4  ;;  %1115 = vmatpush.bf16.msra.mxu3 %v1069_v31 }
 0x373   :  { %v942_v39 = vpop.permute.xlu0 %941  ;;  %v1023_v4 = vld [vmem:[#allocation2 + $0x28] sm:$0xff] }
 0x374   :  { %981 = vst [vmem:[#allocation2 + $0x98] sm:$0xf0] %v973_v42  ;;  %v952_v43 = vsel %vm368_vm4, %v948_v7, %v942_v39 }
 0x375   :  { %v966_v47 = vmul.f32 %v958_v58, %v952_v43 }
 0x376   :  { %v4309_v48 = vpop.permute.xlu1 %915 }
 0x377   :  { %v974_v49 = vrot.slane %v966_v47, 4  ;;  %v919_v35 = vsel %vm336_vm6, %v4309_v48, %v918_v44 }
 0x378   :  { %v4314_v20 = vpop.permute.xlu2 %727  ;;  %v935_v37 = vmul.f32 %v927_v46, %v919_v35  ;;  %v1024_v51 = vld [vmem:[#allocation2 + $0x40] sm:$0xff]  ;;  %v738_v35 = vperm.slane %v4354_v2, 3 }
 0x379   :  { %982 = vst [vmem:[#allocation2 + $0x60] sm:$0xf0] %v974_v49 }
 0x37a   :  { %939 = vst [vmem:[#allocation2 + $0x98] sm:$0xf] %v935_v37 }
 0x37b   :  { %v4322_v54 = vpop.permute.xlu0 %911 }
 0x37c   :  { %v922_v56 = vsel %vm336_vm6, %v918_v44, %v4322_v54  ;;  %v3642_v44 = vld [vmem:[%s5613_s1 + $0x3] ss:$8 sm:$0xf] }
 0x37d   :  { %v936_v57 = vmul.f32 %v928_v50, %v922_v56  ;;  %v840_v17 = vperm.slane %v3642_v44, 3  ;;  %v839_v58 = vperm.slane %v3642_v44, 2  ;;  %v837_v50 = vperm.slane %v3642_v44, 0 }
 0x37e   :  { %v756_v45 = vpop.permute.xlu1 %755  ;;  %v838_v56 = vperm.slane %v3642_v44, 1 }
 0x37f   :  { %940 = vst [vmem:[#allocation2 + $0x60] sm:$0xf] %v936_v57  ;;  %v759_v61 = vsel %vm168_vm3, %v756_v45, %v4280_v16 }
 0x380   :  { %v4331_v7 = vpop.permute.xlu2 %799  ;;  %v776_v41 = vmul.f32 %v768_v9, %v759_v61 }
 0x381   :  { %v1027_v34 = vld [vmem:[#allocation2 + $0x98] sm:$0xff] }
 0x382   :  { %v784_v19 = vrot.slane %v776_v41, 4  ;;  %v1039_v8 = vpack.c.bf16 %v1027_v34, %v1023_v4  ;;  %v737_v4 = vperm.slane %v4354_v2, 2  ;;  %v4371_v34 = vld [vmem:[%s5613_s1 + $0x2] ss:$8 sm:$0xf] }
 0x383   :  { %v4337_v14 = vpop.permute.xlu0 %753 }
 0x384   :  { %792 = vst [vmem:[#allocation2 + $0x18] sm:$0xf0] %v784_v19  ;;  %v760_v59 = vsel %vm168_vm3, %v4337_v14, %v756_v45  ;;  %1103 = vmatpush.bf16.msra.mxu2 %v1039_v8 }
 0x385   :  { %v775_v18 = vmul.f32 %v767_v38, %v760_v59 }
 0x386   :  { %v828_v21 = vpop.permute.xlu1 %827  ;;  %v1028_v3 = vld [vmem:[#allocation2 + $0x60] sm:$0xff] }
 0x387   :  { %v783_v24 = vrot.slane %v775_v18, 4  ;;  %v831_v25 = vsel %vm244_vm5, %v828_v21, %v4297_v0  ;;  %v1040_v29 = vpack.c.bf16 %v1028_v3, %v1024_v51  ;;  %v1045_v3 = vld [vmem:[%s5616_s4] sm:$0xc] }
 0x388   :  { %v848_v23 = vmul.f32 %v840_v17, %v831_v25  ;;  %v944_v52 = vpop.permute.xlu2 %943 }
 0x389   :  { %791 = vst [vmem:[#allocation2 + $0x50] sm:$0xf0] %v783_v24  ;;  %v950_v30 = vsel %vm368_vm4, %v944_v52, %v946_v27  ;;  %v951_v1 = vsel %vm368_vm4, %v942_v39, %v944_v52  ;;  %1116 = vmatpush.bf16.msra.mxu3 %v1040_v29  ;;  %v809_v24 = vperm.slane %v4371_v34, 2  ;;  %v1053_v29 = vunpack.c.l.b16 %v1045_v3 }
 0x38a   :  { %v856_v31 = vrot.slane %v848_v23, 4  ;;  %v963_v42 = vmul.f32 %v955_v28, %v951_v1  ;;  %v964_v43 = vmul.f32 %v956_v22, %v950_v30  ;;  %v883_v52 = vperm.slane %v4267_v5, 0 }
 0x38b   :  { %v826_v46 = vpop.permute.xlu0 %825  ;;  %v884_v30 = vperm.slane %v4267_v5, 1 }
 0x38c   :  { %864 = vst [vmem:[#allocation2 + $0x80] sm:$0xf0] %v856_v31  ;;  %v971_v47 = vrot.slane %v963_v42, 4  ;;  %v972_v49 = vrot.slane %v964_v43, 4  ;;  %v832_v27 = vsel %vm244_vm5, %v826_v46, %v828_v21  ;;  %v1054_v43 = vpack.c.b16 %v1053_v29, %v1053_v29 }
 0x38d   :  { %v847_v39 = vmul.f32 %v839_v58, %v832_v27  ;;  %v998_v27 = vperm.slane %v4255_v62, 1 }
 0x38e   :  { %979 = vst [vmem:[#allocation2 + $0x58] sm:$0xf0] %v971_v47  ;;  %v726_v37 = vpop.permute.xlu1 %725 }
 0x38f   :  { %980 = vst [vmem:[#allocation2 + $0x10] sm:$0xf0] %v972_v49  ;;  %v855_v9 = vrot.slane %v847_v39, 4  ;;  %v729_v57 = vsel %vm137_vm7, %v726_v37, %v4314_v20  ;;  %v997_v49 = vperm.slane %v4255_v62, 0  ;;  %v765_v62 = vperm.slane %v4320_v53, 0 }
 0x390   :  { %v746_v45 = vmul.f32 %v738_v35, %v729_v57  ;;  %v824_v61 = vpop.permute.xlu2 %823  ;;  %v766_v57 = vperm.slane %v4320_v53, 1 }
 0x391   :  { %863 = vst [vmem:[#allocation2 + $0x78] sm:$0xf0] %v855_v9  ;;  %v833_v41 = vsel %vm244_vm5, %v824_v61, %v826_v46  ;;  %v834_v38 = vsel %vm244_vm5, %v4297_v0, %v824_v61  ;;  %v810_v0 = vperm.slane %v4371_v34, 3  ;;  %v4398_v9 = vrot.slane %v1054_v43, 2 }
 0x392   :  { %750 = vst [vmem:[#allocation2 + $0x18] sm:$0xf] %v746_v45  ;;  %v845_v44 = vmul.f32 %v837_v50, %v834_v38  ;;  %v846_v19 = vmul.f32 %v838_v56, %v833_v41 }
 0x393   :  { %v4373_v8 = vpop.permute.xlu0 %723 }
 0x394   :  { %v853_v59 = vrot.slane %v845_v44, 4  ;;  %v854_v17 = vrot.slane %v846_v19, 4  ;;  %v730_v18 = vsel %vm137_vm7, %v4373_v8, %v726_v37 }
 0x395   :  { %v745_v21 = vmul.f32 %v737_v4, %v730_v18 }
 0x396   :  { %861 = vst [vmem:[#allocation2 + $0x30] sm:$0xf0] %v853_v59  ;;  %v798_v28 = vpop.permute.xlu1 %797  ;;  %v925_v59 = vperm.slane %v4304_v55, 0 }
 0x397   :  { %862 = vst [vmem:[#allocation2 + $0x68] sm:$0xf0] %v854_v17  ;;  %v801_v22 = vsel %vm212_vm9, %v798_v28, %v4331_v7  ;;  %v926_v17 = vperm.slane %v4304_v55, 1 }
 0x398   :  { %749 = vst [vmem:[#allocation2 + $0x50] sm:$0xf] %v745_v21  ;;  %v818_v51 = vmul.f32 %v810_v0, %v801_v22  ;;  %v808_v22 = vperm.slane %v4371_v34, 1 }
 0x399   :  { %v1016_v35 = vld [vmem:[#allocation2 + $0x18] sm:$0xff] }
 0x39a   :  { %822 = vst [vmem:[#allocation2 + $0x80] sm:$0xf] %v818_v51 }
 0x39b   :  { %v796_v25 = vpop.permute.xlu0 %795 }
 0x39c   :  { %v802_v23 = vsel %vm212_vm9, %v796_v25, %v798_v28  ;;  %v807_v28 = vperm.slane %v4371_v34, 0 }
 0x39d   :  { %v817_v1 = vmul.f32 %v809_v24, %v802_v23 }
 0x39e   :  { %v872_v58 = vpop.permute.xlu1 %871 }
 0x39f   :  { %821 = vst [vmem:[#allocation2 + $0x78] sm:$0xf] %v817_v1  ;;  %v878_v31 = vsel %vm292_vm2, %v872_v58, %v4275_v36  ;;  %v879_v42 = vsel %vm292_vm2, %v4288_v6, %v872_v58  ;;  %v1015_v38 = vld [vmem:[#allocation2 + $0x50] sm:$0xff]  ;;  %v735_v58 = vperm.slane %v4354_v2, 0 }
 0x3a0   :  { %v891_v46 = vmul.f32 %v883_v52, %v879_v42  ;;  %v892_v47 = vmul.f32 %v884_v30, %v878_v31  ;;  %v736_v31 = vperm.slane %v4354_v2, 1 }
 0x3a1   :  { %v1020_v5 = vld [vmem:[#allocation2 + $0x80] sm:$0xff] }
 0x3a2   :  { %v899_v39 = vrot.slane %v891_v46, 4  ;;  %v900_v37 = vrot.slane %v892_v47, 4  ;;  %v1036_v50 = vpack.c.bf16 %v1020_v5, %v1016_v35 }
 0x3a3   :  { %v986_v56 = vpop.permute.xlu0 %985 }
 0x3a4   :  { %907 = vst [vmem:[#allocation2 + $0x8] sm:$0xf0] %v899_v39  ;;  %v992_v36 = vsel %vm412_vm8, %v986_v56, %v4258_v63  ;;  %v993_v6 = vsel %vm412_vm8, %v4269_v33, %v986_v56  ;;  %1117 = vmatpush.bf16.msra.mxu3 %v1036_v50 }
 0x3a5   :  { %908 = vst [vmem:[#allocation2 + $0x88] sm:$0xf0] %v900_v37  ;;  %v1005_v45 = vmul.f32 %v997_v49, %v993_v6  ;;  %v1006_v61 = vmul.f32 %v998_v27, %v992_v36 }
 0x3a6   :  { %v752_v41 = vpop.permute.xlu1 %751  ;;  %v1019_v4 = vld [vmem:[#allocation2 + $0x78] sm:$0xff] }
 0x3a7   :  { %1009 = vst [vmem:[#allocation2 + $0x20] sm:$0xf] %v1005_v45  ;;  %v761_v63 = vsel %vm168_vm3, %v752_v41, %v4337_v14  ;;  %v762_v33 = vsel %vm168_vm3, %v4280_v16, %v752_v41  ;;  %3650 = vmatmul.msk.bf16.vlgmr.msra.gmra.mxu3 %vm475_vm11, %v4398_v9  ;;  %v1035_v44 = vpack.c.bf16 %v1019_v4, %v1015_v38 }
 0x3a8   :  { %1010 = vst [vmem:[#allocation2 + $0x48] sm:$0xf] %v1006_v61  ;;  %v773_v53 = vmul.f32 %v765_v62, %v762_v33  ;;  %v774_v19 = vmul.f32 %v766_v57, %v761_v63  ;;  %v635_v33 = vld [vmem:[%s5618_s6 + $0x4] sm:$0xf] }
 0x3a9   :  { %1104 = vmatpush.bf16.msra.mxu2 %v1035_v44 }
 0x3aa   :  { %v781_v18 = vrot.slane %v773_v53, 4  ;;  %v782_v0 = vrot.slane %v774_v19, 4 }
 0x3ab   :  { %v914_v21 = vpop.permute.xlu0 %913  ;;  %v1021_v49 = vld [vmem:[#allocation2 + $0x8] sm:$0xff] }
 0x3ac   :  { %789 = vst [vmem:[#allocation2] sm:$0xf0] %v781_v18  ;;  %v920_v16 = vsel %vm336_vm6, %v914_v21, %v4309_v48  ;;  %v921_v14 = vsel %vm336_vm6, %v4322_v54, %v914_v21  ;;  %3649 = vmatmul.msk.bf16.vlgmr.msra.gmra.mxu2 %vm475_vm11, %v4398_v9  ;;  %v1022_v35 = vld [vmem:[#allocation2 + $0x88] sm:$0xff] }
 0x3ad   :  { %790 = vst [vmem:[#allocation2 + $0x38] sm:$0xf0] %v782_v0  ;;  %v933_v55 = vmul.f32 %v925_v59, %v921_v14  ;;  %v934_v51 = vmul.f32 %v926_v17, %v920_v16 }
 0x3ae   :  { %v794_v3 = vpop.permute.xlu1 %793  ;;  %v1029_v24 = vld [vmem:[#allocation2 + $0x20] sm:$0xf] }
 0x3af   :  { %937 = vst [vmem:[#allocation2 + $0x58] sm:$0xf] %v933_v55  ;;  %v803_v48 = vsel %vm212_vm9, %v794_v3, %v796_v25  ;;  %v804_v54 = vsel %vm212_vm9, %v4331_v7, %v794_v3  ;;  %v1041_v29 = vpack.c.bf16 %v1029_v24, %v1029_v24  ;;  %v1030_v23 = vld [vmem:[#allocation2 + $0x48] sm:$0xf] }
 0x3b0   :  { %938 = vst [vmem:[#allocation2 + $0x10] sm:$0xf] %v934_v51  ;;  %v815_v52 = vmul.f32 %v807_v28, %v804_v54  ;;  %v816_v30 = vmul.f32 %v808_v22, %v803_v48  ;;  %v1042_v1 = vpack.c.bf16 %v1030_v23, %v1030_v23 }
 0x3b1   :  { %v1060_v34 = vsel %vm479_vm10, %v1041_v29, 0 }
 0x3b2   :  { %819 = vst [vmem:[#allocation2 + $0x30] sm:$0xf] %v815_v52  ;;  %1076 = vmatpush.bf16.msra.mxu0 %v1060_v34  ;;  %v1063_v25 = vsel %vm479_vm10, %v1042_v1, 0 }
 0x3b3   :  { %820 = vst [vmem:[#allocation2 + $0x68] sm:$0xf] %v816_v30  ;;  %1089 = vmatpush.bf16.msra.mxu1 %v1063_v25  ;;  %v722_v42 = vpop.permute.xlu0 %721 }
 0x3b4   :  { %v731_v7 = vsel %vm137_vm7, %v722_v42, %v4373_v8  ;;  %v732_v43 = vsel %vm137_vm7, %v4314_v20, %v722_v42  ;;  %v1050_v20 = vpop.permute.xlu2 %1049  ;;  %v1211_v42 = vld [vmem:[%s5614_s2 + $0x4] sm:$0x3] }
 0x3b5   :  { %v743_v46 = vmul.f32 %v735_v58, %v732_v43  ;;  %v744_v47 = vmul.f32 %v736_v31, %v731_v7 }
 0x3b6   :  { %v1025_v27 = vld [vmem:[#allocation2 + $0x58] sm:$0xff] }
 0x3b7   :  { %747 = vst [vmem:[#allocation2] sm:$0xf] %v743_v46  ;;  %v1037_v2 = vpack.c.bf16 %v1025_v27, %v1021_v49  ;;  %v1026_v5 = vld [vmem:[#allocation2 + $0x10] sm:$0xff] }
 0x3b8   :  { %748 = vst [vmem:[#allocation2 + $0x38] sm:$0xf] %v744_v47  ;;  %v1038_v39 = vpack.c.bf16 %v1026_v5, %v1022_v35 }
 0x3b9   :  { %1077 = vmatpush.bf16.msra.mxu0 %v1037_v2  ;;  %v1017_v50 = vld [vmem:[#allocation2 + $0x30] sm:$0xff] }
 0x3ba   :  { %1090 = vmatpush.bf16.msra.mxu1 %v1038_v39  ;;  %v1018_v36 = vld [vmem:[#allocation2 + $0x68] sm:$0xff] }
 0x3bb   :  { %v1134_v24 = vpop.permute.xlu0 %1133 }
 0x3be   :  { %v1013_v37 = vld [vmem:[#allocation2] sm:$0xff] }
 0x3bf   :  { %v1033_v56 = vpack.c.bf16 %v1017_v50, %v1013_v37  ;;  %v1014_v8 = vld [vmem:[#allocation2 + $0x38] sm:$0xff] }
 0x3c0   :  { %v1034_v6 = vpack.c.bf16 %v1018_v36, %v1014_v8 }
 0x3c1   :  { %1078 = vmatpush.bf16.msra.mxu0 %v1033_v56 }
 0x3c2   :  { %1091 = vmatpush.bf16.msra.mxu1 %v1034_v6 }
 0x3c4   :  { %3647 = vmatmul.msk.bf16.vlgmr.msra.gmra.mxu0 %vm475_vm11, %v4398_v9 }
 0x3c5   :  { %3648 = vmatmul.msk.bf16.vlgmr.msra.gmra.mxu1 %vm475_vm11, %v4398_v9 }
 0x42a   :  { %v1119_v62 = vpop.f32.mrf.mxu3 }
 0x42b   :  { %v1120_v57 = vadd.f32 %v1119_v62, %v1050_v20 }
 0x42d   :  { %v1126_v45 = vmax.f32 %v1120_v57, 0.0 }
 0x42f   :  { %v1130_v61 = vpack.c.bf16 %v1126_v45, %v1126_v45  ;;  %v1106_v41 = vpop.f32.mrf.mxu2 }
 0x430   :  { %v1107_v38 = vadd.f32 %v1106_v41, %v1050_v20 }
 0x431   :  { %v1149_v4 = vsel %vm479_vm10, %v1130_v61, 0 }
 0x432   :  { %v1125_v63 = vmax.f32 %v1107_v38, 0.0  ;;  %1197 = vmatpush.bf16.msrb.mxu3 %v1149_v4  ;;  %v1121_v44 = vpop.f32.mrf.mxu3 }
 0x434   :  { %v1129_v53 = vpack.c.bf16 %v1125_v63, %v1125_v63 }
 0x435   :  { %3654 = vmatmul.msk.bf16.vlgmr.msrb.gmra.mxu3 %vm557_vm12, %v635_v33 }
 0x436   :  { %v1146_v9 = vsel %vm479_vm10, %v1129_v53, 0 }
 0x437   :  { %1184 = vmatpush.bf16.msrb.mxu2 %v1146_v9  ;;  %v1108_v19 = vpop.f32.mrf.mxu2 }
 0x43a   :  { %3653 = vmatmul.msk.bf16.vlgmr.msrb.gmra.mxu2 %vm557_vm12, %v635_v33 }
 0x441   :  { %v1080_v59 = vpop.f32.mrf.mxu0 }
 0x442   :  { %v1081_v17 = vadd.f32 %v1080_v59, %v1050_v20  ;;  %v1093_v18 = vpop.f32.mrf.mxu1  ;;  %v1620_v59 = vld [vmem:[%s5617_s5 + $0x8] sm:$0xf] }
 0x443   :  { %v1094_v0 = vadd.f32 %v1093_v18, %v1050_v20 }
 0x444   :  { %v1123_v21 = vmax.f32 %v1081_v17, 0.0  ;;  %v1782_v17 = vld [vmem:[%s5615_s3 + $0xc] sm:$0xf] }
 0x445   :  { %v1124_v16 = vmax.f32 %v1094_v0, 0.0 }
 0x446   :  { %v1127_v14 = vpack.c.bf16 %v1123_v21, %v1123_v21  ;;  %v4532_v21 = vld [vmem:[%s5613_s1 + $0x20] ss:$8 sm:$0xf] }
 0x447   :  { %v1128_v28 = vpack.c.bf16 %v1124_v16, %v1124_v16  ;;  %v1574_v16 = vperm.slane %v4532_v21, 3 }
 0x448   :  { %v1140_v22 = vsel %vm479_vm10, %v1127_v14, 0 }
 0x449   :  { %1158 = vmatpush.bf16.msrb.mxu0 %v1140_v22  ;;  %v1143_v55 = vsel %vm479_vm10, %v1128_v28, 0  ;;  %v1082_v51 = vpop.f32.mrf.mxu0 }
 0x44a   :  { %v1095_v3 = vpop.f32.mrf.mxu1  ;;  %1171 = vmatpush.bf16.msrb.mxu1 %v1143_v55  ;;  %v3662_v51 = vld [vmem:[%s5613_s1 + $0x5] ss:$8 sm:$0xf] }
 0x44b   :  { %v1460_v3 = vperm.slane %v3662_v51, 3 }
 0x44c   :  { %3651 = vmatmul.msk.bf16.vlgmr.msrb.gmra.mxu0 %vm557_vm12, %v635_v33 }
 0x44d   :  { %3652 = vmatmul.msk.bf16.vlgmr.msrb.gmra.mxu1 %vm557_vm12, %v635_v33 }
 0x4b8   :  { %v1199_v48 = vpop.f32.mrf.mxu3 }
 0x4b9   :  { %v1200_v54 = vadd.f32 %v1199_v48, %v1134_v24 }
 0x4bb   :  { %v1206_v29 = vadd.f32 %v1200_v54, %v4189_v15 }
 0x4bd   :  { %v4459_v23 = vmax.f32 %v1206_v29, 0.0  ;;  %v1186_v52 = vpop.f32.mrf.mxu2  ;;  %v1457_v29 = vperm.slane %v3662_v51, 0 }
 0x4be   :  { %v1187_v30 = vadd.f32 %v1186_v52, %v1134_v24 }
 0x4bf   :  { %v1218_v1 = vpack.c.bf16 %v4459_v23, %v4459_v23 }
 0x4c0   :  { %v1205_v34 = vadd.f32 %v1187_v30, %v4184_v60  ;;  %v1201_v58 = vpop.f32.mrf.mxu3 }
 0x4c1   :  { %v1237_v31 = vsel %vm58_vm0, %v1218_v1, 0  ;;  %v4550_v1 = vld [vmem:[%s5613_s1 + $0x7] ss:$8 sm:$0xf] }
 0x4c2   :  { %v4465_v25 = vmax.f32 %v1205_v34, 0.0  ;;  %1285 = vmatpush.bf16.msra.mxu3 %v1237_v31 }
 0x4c4   :  { %v1217_v15 = vpack.c.bf16 %v4465_v25, %v4465_v25 }
 0x4c5   :  { %3658 = vmatmul.msk.bf16.vlgmr.msra.gmra.mxu3 %vm54_vm1, %v1211_v42  ;;  %v1188_v7 = vpop.f32.mrf.mxu2 }
 0x4c6   :  { %v1234_v43 = vsel %vm58_vm0, %v1217_v15, 0 }
 0x4c7   :  { %1272 = vmatpush.bf16.msra.mxu2 %v1234_v43  ;;  %v1532_v43 = vperm.slane %v4550_v1, 3 }
 0x4c9   :  { %v1160_v60 = vpop.f32.mrf.mxu0 }
 0x4ca   :  { %v1161_v46 = vadd.f32 %v1160_v60, %v1134_v24  ;;  %v1173_v47 = vpop.f32.mrf.mxu1  ;;  %3657 = vmatmul.msk.bf16.vlgmr.msra.gmra.mxu2 %vm54_vm1, %v1211_v42 }
 0x4cb   :  { %v1174_v49 = vadd.f32 %v1173_v47, %v1134_v24 }
 0x4cc   :  { %v1203_v27 = vadd.f32 %v1161_v46, %v4199_v26  ;;  %v1222_v26 = vpop.permute.xlu1 %1221 }
 0x4cd   :  { %v1204_v2 = vadd.f32 %v1174_v49, %v4201_v32 }
 0x4ce   :  { %v4477_v35 = vmax.f32 %v1203_v27, 0.0  ;;  %v1573_v27 = vperm.slane %v4532_v21, 2 }
 0x4cf   :  { %v4479_v5 = vmax.f32 %v1204_v2, 0.0 }
 0x4d0   :  { %v1215_v39 = vpack.c.bf16 %v4477_v35, %v4477_v35 }
 0x4d1   :  { %v1216_v37 = vpack.c.bf16 %v4479_v5, %v4479_v5  ;;  %v1162_v50 = vpop.f32.mrf.mxu0 }
 0x4d2   :  { %v1175_v56 = vpop.f32.mrf.mxu1  ;;  %v1228_v8 = vsel %vm58_vm0, %v1215_v39, 0  ;;  %v4565_v39 = vld [vmem:[%s5613_s1 + $0x6] ss:$8 sm:$0xf] }
 0x4d3   :  { %1246 = vmatpush.bf16.msra.mxu0 %v1228_v8  ;;  %v1231_v36 = vsel %vm58_vm0, %v1216_v37, 0 }
 0x4d4   :  { %1259 = vmatpush.bf16.msra.mxu1 %v1231_v36  ;;  %v1502_v36 = vperm.slane %v4565_v39, 3 }
 0x4d6   :  { %3655 = vmatmul.msk.bf16.vlgmr.msra.gmra.mxu0 %vm54_vm1, %v1211_v42 }
 0x4d7   :  { %3656 = vmatmul.msk.bf16.vlgmr.msra.gmra.mxu1 %vm54_vm1, %v1211_v42 }
 0x548   :  { %v1287_v32 = vpop.f32.mrf.mxu3 }
 0x549   :  { %v1288_v6 = vadd.f32 %v1287_v32, %v1222_v26 }
 0x54b   :  { %v1294_v20 = vmax.f32 %v1288_v6, 0.0 }
 0x54d   :  { %1442 = vst [vmem:[#allocation2 + $0x40] sm:$0xf] %v1294_v20  ;;  %1563 = vrot.lane.b32.xlu1 %v1294_v20, %s3801_s27  ;;  %v1274_v62 = vpop.f32.mrf.mxu2 }
 0x54e   :  { %v1275_v57 = vadd.f32 %v1274_v62, %v1222_v26  ;;  %v1459_v62 = vperm.slane %v3662_v51, 2 }
 0x550   :  { %v1293_v45 = vmax.f32 %v1275_v57, 0.0  ;;  %v1289_v61 = vpop.f32.mrf.mxu3 }
 0x552   :  { %1441 = vst [vmem:[#allocation2 + $0x28] sm:$0xf] %v1293_v45 }
 0x553   :  { %v1248_v41 = vpop.f32.mrf.mxu0 }
 0x554   :  { %v1249_v38 = vadd.f32 %v1248_v41, %v1222_v26  ;;  %v1261_v4 = vpop.f32.mrf.mxu1 }
 0x555   :  { %v1262_v63 = vadd.f32 %v1261_v4, %v1222_v26  ;;  %1449 = vrot.lane.b32.xlu1 %v1294_v20, %s3800_s26  ;;  %v1276_v33 = vpop.f32.mrf.mxu2 }
 0x556   :  { %v1291_v44 = vmax.f32 %v1249_v38, 0.0 }
 0x557   :  { %v1292_v53 = vmax.f32 %v1262_v63, 0.0 }
 0x558   :  { %1439 = vst [vmem:[#allocation2 + $0x8] sm:$0xf] %v1291_v44  ;;  %1557 = vrot.lane.b32.xlu2 %v1291_v44, %s3801_s27 }
 0x559   :  { %1440 = vst [vmem:[#allocation2 + $0x88] sm:$0xf] %v1292_v53  ;;  %1445 = vrot.lane.b32.xlu0 %v1292_v53, %s3800_s26 }
 0x55b   :  { %v1250_v9 = vpop.f32.mrf.mxu0 }
 0x55c   :  { %v1263_v19 = vpop.f32.mrf.mxu1 }
 0x55d   :  { %1521 = vrot.lane.b32.xlu1 %v1294_v20, %s3799_s25 }
 0x560   :  { %1443 = vrot.lane.b32.xlu2 %v1291_v44, %s3800_s26 }
 0x561   :  { %1561 = vrot.lane.b32.xlu0 %v1293_v45, %s3801_s27 }
 0x565   :  { %1491 = vrot.lane.b32.xlu1 %v1294_v20, %s3802_s28 }
 0x568   :  { %1515 = vrot.lane.b32.xlu2 %v1291_v44, %s3799_s25 }
 0x569   :  { %1447 = vrot.lane.b32.xlu0 %v1293_v45, %s3800_s26 }
 0x56d   :  { %1331 = vrot.lane.b32.xlu1 %v1294_v20, %s3803_s29 }
 0x570   :  { %1485 = vrot.lane.b32.xlu2 %v1291_v44, %s3802_s28 }
 0x571   :  { %1519 = vrot.lane.b32.xlu0 %v1293_v45, %s3799_s25 }
 0x575   :  { %1403 = vrot.lane.b32.xlu1 %v1294_v20, %s3804_s30 }
 0x578   :  { %1327 = vrot.lane.b32.xlu2 %v1292_v53, %s3803_s29 }
 0x579   :  { %1489 = vrot.lane.b32.xlu0 %v1293_v45, %s3802_s28 }
 0x57d   :  { %1301 = vrot.lane.b32.xlu1 %v1294_v20, %s3805_s11 }
 0x580   :  { %1399 = vrot.lane.b32.xlu2 %v1292_v53, %s3804_s30 }
 0x581   :  { %1329 = vrot.lane.b32.xlu0 %v1293_v45, %s3803_s29 }
 0x585   :  { %1373 = vrot.lane.b32.xlu1 %v1294_v20, %s3806_s12  ;;  %v1458_v20 = vperm.slane %v3662_v51, 1 }
 0x588   :  { %1297 = vrot.lane.b32.xlu2 %v1292_v53, %s3805_s11 }
 0x589   :  { %1401 = vrot.lane.b32.xlu0 %v1293_v45, %s3804_s30 }
 0x58d   :  { %1517 = vrot.lane.b32.xlu1 %v1292_v53, %s3799_s25 }
 0x590   :  { %1369 = vrot.lane.b32.xlu2 %v1292_v53, %s3806_s12 }
 0x591   :  { %1299 = vrot.lane.b32.xlu0 %v1293_v45, %s3805_s11 }
 0x595   :  { %1397 = vrot.lane.b32.xlu1 %v1291_v44, %s3804_s30 }
 0x598   :  { %1559 = vrot.lane.b32.xlu2 %v1292_v53, %s3801_s27 }
 0x599   :  { %1371 = vrot.lane.b32.xlu0 %v1293_v45, %s3806_s12 }
 0x59d   :  { %1623 = vperm.xlu1 %3746, %v1620_v59   ;;  %v1531_v59 = vperm.slane %v4550_v1, 2 }
 0x5a0   :  { %1487 = vrot.lane.b32.xlu2 %v1292_v53, %s3802_s28 }
 0x5a1   :  { %1325 = vrot.lane.b32.xlu0 %v1291_v44, %s3803_s29 }
 0x5a8   :  { %1295 = vrot.lane.b32.xlu2 %v1291_v44, %s3805_s11 }
 0x5a9   :  { %1367 = vrot.lane.b32.xlu0 %v1291_v44, %s3806_s12 }
 0x5b0   :  { %1787 = vperm.xlu2 %3747, %v1782_v17  }
 0x5b2   :  { %v4527_v18 = vpop.permute.xlu2 %1557 }
 0x5ba   :  { %v1444_v0 = vpop.permute.xlu2 %1443 }
 0x5bf   :  { %v1564_v14 = vpop.permute.xlu1 %1563 }
 0x5c0   :  { %v1568_v28 = vsel %vm412_vm8, %v1564_v14, %v4527_v18 }
 0x5c1   :  { %v1582_v22 = vmul.f32 %v1574_v16, %v1568_v28 }
 0x5c2   :  { %v4538_v55 = vpop.permute.xlu2 %1515 }
 0x5c3   :  { %1586 = vst [vmem:[#allocation2 + $0x90] sm:$0xf] %v1582_v22 }
 0x5c7   :  { %v1450_v24 = vpop.permute.xlu1 %1449 }
 0x5c8   :  { %v1454_v48 = vsel %vm292_vm2, %v1450_v24, %v1444_v0 }
 0x5c9   :  { %v1468_v54 = vmul.f32 %v1460_v3, %v1454_v48  ;;  %v1501_v48 = vperm.slane %v4565_v39, 2 }
 0x5ca   :  { %v4545_v52 = vpop.permute.xlu2 %1485  ;;  %v1606_v30 = vld [vmem:[#allocation2 + $0x90] sm:$0xf] }
 0x5cb   :  { %v1476_v34 = vrot.slane %v1468_v54, 4  ;;  %v1446_v58 = vpop.permute.xlu0 %1445  ;;  %v1618_v31 = vpack.c.bf16 %v1606_v30, %v1606_v30 }
 0x5cc   :  { %v1453_v42 = vsel %vm292_vm2, %v1444_v0, %v1446_v58 }
 0x5cd   :  { %1484 = vst [vmem:[#allocation2 + $0x40] sm:$0xf0] %v1476_v34  ;;  %v1465_v15 = vmul.f32 %v1457_v29, %v1453_v42  ;;  %v1639_v7 = vsel %vm479_vm10, %v1618_v31, 0  ;;  %v1571_v42 = vperm.slane %v4532_v21, 0 }
 0x5ce   :  { %1685 = vmatpush.bf16.msrb.mxu3 %v1639_v7 }
 0x5cf   :  { %v1473_v60 = vrot.slane %v1465_v15, 4  ;;  %v1522_v46 = vpop.permute.xlu1 %1521  ;;  %v1572_v15 = vperm.slane %v4532_v21, 1 }
 0x5d0   :  { %v1526_v47 = vsel %vm368_vm4, %v1522_v46, %v4538_v55 }
 0x5d1   :  { %1481 = vst [vmem:[#allocation2 + $0x8] sm:$0xf0] %v1473_v60  ;;  %v1540_v49 = vmul.f32 %v1532_v43, %v1526_v47 }
 0x5d2   :  { %v4560_v2 = vpop.permute.xlu2 %1327 }
 0x5d3   :  { %v1548_v37 = vrot.slane %v1540_v49, 4  ;;  %v1562_v50 = vpop.permute.xlu0 %1561 }
 0x5d4   :  { %v1565_v56 = vsel %vm412_vm8, %v1562_v50, %v1564_v14  ;;  %v1598_v0 = vld [vmem:[#allocation2 + $0x40] sm:$0xff] }
 0x5d5   :  { %1556 = vst [vmem:[#allocation2 + $0x60] sm:$0xf0] %v1548_v37  ;;  %v1581_v8 = vmul.f32 %v1573_v27, %v1565_v56 }
 0x5d7   :  { %1585 = vst [vmem:[#allocation2 + $0x70] sm:$0xf] %v1581_v8  ;;  %v1492_v26 = vpop.permute.xlu1 %1491 }
 0x5d8   :  { %v1496_v32 = vsel %vm336_vm6, %v1492_v26, %v4545_v52 }
 0x5d9   :  { %v1510_v6 = vmul.f32 %v1502_v36, %v1496_v32 }
 0x5da   :  { %v4573_v57 = vpop.permute.xlu2 %1399 }
 0x5db   :  { %1514 = vst [vmem:[#allocation2 + $0x60] sm:$0xf] %v1510_v6  ;;  %v1448_v45 = vpop.permute.xlu0 %1447 }
 0x5dc   :  { %v1451_v61 = vsel %vm292_vm2, %v1448_v45, %v1450_v24  ;;  %v1452_v41 = vsel %vm292_vm2, %v1446_v58, %v1448_v45  ;;  %v4600_v58 = vld [vmem:[%s5613_s1 + $0x1] ss:$8 sm:$0xf]  ;;  %v1499_v45 = vperm.slane %v4565_v39, 0 }
 0x5dd   :  { %v1466_v38 = vmul.f32 %v1458_v20, %v1452_v41  ;;  %v1467_v4 = vmul.f32 %v1459_v62, %v1451_v61  ;;  %v1341_v7 = vperm.slane %v4600_v58, 2  ;;  %v1342_v43 = vperm.slane %v4600_v58, 3 }
 0x5de   :  { %v1605_v63 = vld [vmem:[#allocation2 + $0x70] sm:$0xf]  ;;  %v1500_v61 = vperm.slane %v4565_v39, 1 }
 0x5df   :  { %v1474_v33 = vrot.slane %v1466_v38, 4  ;;  %v1475_v44 = vrot.slane %v1467_v4, 4  ;;  %v4579_v53 = vpop.permute.xlu1 %1331  ;;  %v1617_v9 = vpack.c.bf16 %v1605_v63, %v1605_v63 }
 0x5e1   :  { %1482 = vst [vmem:[#allocation2 + $0x88] sm:$0xf0] %v1474_v33  ;;  %v1636_v19 = vsel %vm479_vm10, %v1617_v9, 0 }
 0x5e2   :  { %1483 = vst [vmem:[#allocation2 + $0x28] sm:$0xf0] %v1475_v44  ;;  %1672 = vmatpush.bf16.msrb.mxu2 %v1636_v19  ;;  %v4583_v17 = vpop.permute.xlu2 %1297  ;;  %v1602_v16 = vld [vmem:[#allocation2 + $0x60] sm:$0xff] }
 0x5e3   :  { %v4585_v14 = vpop.permute.xlu0 %1519  ;;  %v1614_v28 = vpack.c.bf16 %v1602_v16, %v1598_v0  ;;  %v1307_v0 = vld [vmem:[%s5613_s1] ss:$8 sm:$0xf] }
 0x5e4   :  { %v1523_v22 = vsel %vm368_vm4, %v4585_v14, %v1522_v46 }
 0x5e5   :  { %v1539_v51 = vmul.f32 %v1531_v59, %v1523_v22  ;;  %1686 = vmatpush.bf16.msrb.mxu3 %v1614_v28  ;;  %v1529_v22 = vperm.slane %v4550_v1, 0 }
 0x5e7   :  { %v1547_v3 = vrot.slane %v1539_v51, 4  ;;  %v4590_v24 = vpop.permute.xlu1 %1403 }
 0x5e9   :  { %1555 = vst [vmem:[#allocation2 + $0x98] sm:$0xf0] %v1547_v3 }
 0x5ea   :  { %v4593_v54 = vpop.permute.xlu2 %1369 }
 0x5eb   :  { %v1490_v29 = vpop.permute.xlu0 %1489 }
 0x5ec   :  { %v1493_v30 = vsel %vm336_vm6, %v1490_v29, %v1492_v26  ;;  %v1597_v26 = vld [vmem:[#allocation2 + $0x28] sm:$0xff] }
 0x5ed   :  { %v1509_v34 = vmul.f32 %v1501_v48, %v1493_v30 }
 0x5ef   :  { %1513 = vst [vmem:[#allocation2 + $0x98] sm:$0xf] %v1509_v34  ;;  %v4602_v31 = vpop.permute.xlu1 %1301 }
 0x5f2   :  { %v1560_v60 = vpop.permute.xlu2 %1559 }
 0x5f3   :  { %v1330_v46 = vpop.permute.xlu0 %1329  ;;  %v1566_v47 = vsel %vm412_vm8, %v1560_v60, %v1562_v50  ;;  %v1567_v49 = vsel %vm412_vm8, %v4527_v18, %v1560_v60  ;;  %v4622_v50 = vld [vmem:[%s5613_s1 + $0x3] ss:$8 sm:$0xf]  ;;  %v1312_v60 = vperm.slane %v1307_v0, 3 }
 0x5f4   :  { %v1333_v27 = vsel %vm168_vm3, %v1330_v46, %v4579_v53  ;;  %v1334_v21 = vsel %vm168_vm3, %v4560_v2, %v1330_v46  ;;  %v1579_v37 = vmul.f32 %v1571_v42, %v1567_v49  ;;  %v1580_v56 = vmul.f32 %v1572_v15, %v1566_v47 }
 0x5f5   :  { %v1349_v8 = vmul.f32 %v1341_v7, %v1334_v21  ;;  %v1350_v36 = vmul.f32 %v1342_v43, %v1333_v27  ;;  %v1413_v41 = vperm.slane %v4622_v50, 2  ;;  %v1414_v38 = vperm.slane %v4622_v50, 3 }
 0x5f6   :  { %1583 = vst [vmem:[#allocation2 + $0x20] sm:$0xf] %v1579_v37  ;;  %v1601_v18 = vld [vmem:[#allocation2 + $0x98] sm:$0xff]  ;;  %v1311_v15 = vperm.slane %v1307_v0, 2  ;;  %v1309_v27 = vperm.slane %v1307_v0, 0  ;;  %v1310_v21 = vperm.slane %v1307_v0, 1 }
 0x5f7   :  { %v1357_v32 = vrot.slane %v1349_v8, 4  ;;  %v1358_v6 = vrot.slane %v1350_v36, 4  ;;  %1584 = vst [vmem:[#allocation2 + $0x48] sm:$0xf] %v1580_v56  ;;  %v4624_v20 = vpop.permute.xlu1 %1373  ;;  %v1613_v62 = vpack.c.bf16 %v1601_v18, %v1597_v26  ;;  %v1595_v0 = vld [vmem:[#allocation2 + $0x8] sm:$0xff] }
 0x5f9   :  { %1365 = vst [vmem:[#allocation2 + $0x50] sm:$0xf0] %v1357_v32  ;;  %1673 = vmatpush.bf16.msrb.mxu2 %v1613_v62  ;;  %v1411_v32 = vperm.slane %v4622_v50, 0 }
 0x5fa   :  { %1366 = vst [vmem:[#allocation2 + $0x18] sm:$0xf0] %v1358_v6  ;;  %v1488_v4 = vpop.permute.xlu2 %1487 }
 0x5fb   :  { %v1402_v63 = vpop.permute.xlu0 %1401  ;;  %v1494_v33 = vsel %vm336_vm6, %v1488_v4, %v1490_v29  ;;  %v1495_v44 = vsel %vm336_vm6, %v4545_v52, %v1488_v4  ;;  %v1530_v52 = vperm.slane %v4550_v1, 1 }
 0x5fc   :  { %v1405_v39 = vsel %vm244_vm5, %v1402_v63, %v4590_v24  ;;  %v1406_v9 = vsel %vm244_vm5, %v4573_v57, %v1402_v63  ;;  %v1507_v19 = vmul.f32 %v1499_v45, %v1495_v44  ;;  %v1508_v59 = vmul.f32 %v1500_v61, %v1494_v33 }
 0x5fd   :  { %v1421_v16 = vmul.f32 %v1413_v41, %v1406_v9  ;;  %v1422_v28 = vmul.f32 %v1414_v38, %v1405_v39  ;;  %v1603_v51 = vld [vmem:[#allocation2 + $0x20] sm:$0xf]  ;;  %v1412_v61 = vperm.slane %v4622_v50, 1 }
 0x5fe   :  { %1511 = vst [vmem:[#allocation2 + $0x58] sm:$0xf] %v1507_v19  ;;  %v1615_v3 = vpack.c.bf16 %v1603_v51, %v1603_v51  ;;  %v1604_v48 = vld [vmem:[#allocation2 + $0x48] sm:$0xf] }
 0x5ff   :  { %v1429_v29 = vrot.slane %v1421_v16, 4  ;;  %v1430_v30 = vrot.slane %v1422_v28, 4  ;;  %1512 = vst [vmem:[#allocation2 + $0x10] sm:$0xf] %v1508_v59  ;;  %v1518_v34 = vpop.permute.xlu1 %1517  ;;  %v1616_v42 = vpack.c.bf16 %v1604_v48, %v1604_v48  ;;  %v1339_v48 = vperm.slane %v4600_v58, 0 }
 0x600   :  { %v1524_v7 = vsel %vm368_vm4, %v1518_v34, %v4585_v14  ;;  %v1525_v43 = vsel %vm368_vm4, %v4538_v55, %v1518_v34  ;;  %v1630_v1 = vsel %vm479_vm10, %v1615_v3, 0  ;;  %v3660_v38 = vld [vmem:[%s5613_s1 + $0x2] ss:$8 sm:$0xf] }
 0x601   :  { %1437 = vst [vmem:[#allocation2 + $0x78] sm:$0xf0] %v1429_v29  ;;  %v1537_v46 = vmul.f32 %v1529_v22, %v1525_v43  ;;  %v1538_v47 = vmul.f32 %v1530_v52, %v1524_v7  ;;  %1646 = vmatpush.bf16.msrb.mxu0 %v1630_v1  ;;  %v1633_v49 = vsel %vm479_vm10, %v1616_v42, 0  ;;  %v1383_v33 = vperm.slane %v3660_v38, 2  ;;  %v1596_v52 = vld [vmem:[#allocation2 + $0x88] sm:$0xff] }
 0x602   :  { %1438 = vst [vmem:[#allocation2 + $0x80] sm:$0xf0] %v1430_v30  ;;  %1659 = vmatpush.bf16.msrb.mxu1 %v1633_v49  ;;  %v1296_v37 = vpop.permute.xlu2 %1295  ;;  %v1384_v44 = vperm.slane %v3660_v38, 3  ;;  %v1340_v29 = vperm.slane %v4600_v58, 1  ;;  %v1381_v58 = vperm.slane %v3660_v38, 0 }
 0x603   :  { %v1545_v56 = vrot.slane %v1537_v46, 4  ;;  %v1546_v14 = vrot.slane %v1538_v47, 4  ;;  %v1300_v8 = vpop.permute.xlu0 %1299  ;;  %v1305_v55 = vsel %vm137_vm7, %v1296_v37, %v4583_v17  ;;  %v1306_v36 = vsel %vm137_vm7, %v4602_v31, %v1296_v37 }
 0x604   :  { %v1303_v26 = vsel %vm137_vm7, %v1300_v8, %v4602_v31  ;;  %v1304_v18 = vsel %vm137_vm7, %v4583_v17, %v1300_v8  ;;  %v1317_v45 = vmul.f32 %v1309_v27, %v1306_v36  ;;  %v1318_v41 = vmul.f32 %v1310_v21, %v1305_v55 }
 0x605   :  { %1553 = vst [vmem:[#allocation2 + $0x58] sm:$0xf0] %v1545_v56  ;;  %v1319_v6 = vmul.f32 %v1311_v15, %v1304_v18  ;;  %v1320_v62 = vmul.f32 %v1312_v60, %v1303_v26  ;;  %v1382_v37 = vperm.slane %v3660_v38, 1 }
 0x606   :  { %1554 = vst [vmem:[#allocation2 + $0x10] sm:$0xf0] %v1546_v14 }
 0x607   :  { %1323 = vst [vmem:[#allocation2 + $0x50] sm:$0xf] %v1319_v6  ;;  %v1398_v31 = vpop.permute.xlu1 %1397 }
 0x608   :  { %1324 = vst [vmem:[#allocation2 + $0x18] sm:$0xf] %v1320_v62  ;;  %v1407_v17 = vsel %vm244_vm5, %v1398_v31, %v4573_v57  ;;  %v1408_v4 = vsel %vm244_vm5, %v4590_v24, %v1398_v31 }
 0x609   :  { %1321 = vst [vmem:[#allocation2] sm:$0xf] %v1317_v45  ;;  %v1419_v63 = vmul.f32 %v1411_v32, %v1408_v4  ;;  %v1420_v50 = vmul.f32 %v1412_v61, %v1407_v17 }
 0x60a   :  { %1322 = vst [vmem:[#allocation2 + $0x38] sm:$0xf] %v1318_v41 }
 0x60b   :  { %v1427_v39 = vrot.slane %v1419_v63, 4  ;;  %v1428_v9 = vrot.slane %v1420_v50, 4  ;;  %v1372_v19 = vpop.permute.xlu0 %1371 }
 0x60c   :  { %v1375_v59 = vsel %vm212_vm9, %v1372_v19, %v4624_v20  ;;  %v1376_v57 = vsel %vm212_vm9, %v4593_v54, %v1372_v19  ;;  %v1599_v16 = vld [vmem:[#allocation2 + $0x58] sm:$0xff] }
 0x60d   :  { %1435 = vst [vmem:[#allocation2 + $0x30] sm:$0xf0] %v1427_v39  ;;  %v1391_v24 = vmul.f32 %v1383_v33, %v1376_v57  ;;  %v1392_v28 = vmul.f32 %v1384_v44, %v1375_v59  ;;  %v1611_v22 = vpack.c.bf16 %v1599_v16, %v1595_v0  ;;  %v1600_v51 = vld [vmem:[#allocation2 + $0x10] sm:$0xff]  ;;  %v1213_v44 = vld [vmem:[%s5618_s6 + $0x8] sm:$0xf] }
 0x60e   :  { %1436 = vst [vmem:[#allocation2 + $0x68] sm:$0xf0] %v1428_v9  ;;  %v1612_v3 = vpack.c.bf16 %v1600_v51, %v1596_v52  ;;  %v1589_v43 = vld [vmem:[#allocation2 + $0x50] sm:$0xff]  ;;  %v1781_v0 = vld [vmem:[%s5614_s2 + $0x4] sm:$0xc] }
 0x60f   :  { %1395 = vst [vmem:[#allocation2 + $0x78] sm:$0xf] %v1391_v24  ;;  %1647 = vmatpush.bf16.msrb.mxu0 %v1611_v22  ;;  %v1590_v49 = vld [vmem:[#allocation2 + $0x18] sm:$0xff]  ;;  %v1791_v22 = vunpack.c.l.b16 %v1781_v0 }
 0x610   :  { %1396 = vst [vmem:[#allocation2 + $0x80] sm:$0xf] %v1392_v28  ;;  %1660 = vmatpush.bf16.msrb.mxu1 %v1612_v3 }
 0x611   :  { %v1792_v3 = vpack.c.b16 %v1791_v22, %v1791_v22 }
 0x613   :  { %v1326_v30 = vpop.permute.xlu0 %1325 }
 0x614   :  { %v1335_v34 = vsel %vm168_vm3, %v1326_v30, %v4560_v2  ;;  %v1336_v42 = vsel %vm168_vm3, %v4579_v53, %v1326_v30  ;;  %v1619_v2 = vld [vmem:[%s5616_s4 + $0x4] sm:$0x3] }
 0x615   :  { %v1347_v15 = vmul.f32 %v1339_v48, %v1336_v42  ;;  %v1348_v7 = vmul.f32 %v1340_v29, %v1335_v34  ;;  %v1793_v29 = vrot.slane %v1792_v3, 2 }
 0x616   :  { %v1593_v1 = vld [vmem:[#allocation2 + $0x78] sm:$0xff] }
 0x617   :  { %v1355_v60 = vrot.slane %v1347_v15, 4  ;;  %v1356_v46 = vrot.slane %v1348_v7, 4  ;;  %v1609_v47 = vpack.c.bf16 %v1593_v1, %v1589_v43  ;;  %v1594_v27 = vld [vmem:[#allocation2 + $0x80] sm:$0xff]  ;;  %v1788_v1 = vpop.permute.xlu2 %1787 }
 0x618   :  { %v1610_v21 = vpack.c.bf16 %v1594_v27, %v1590_v49 }
 0x619   :  { %1363 = vst [vmem:[#allocation2] sm:$0xf0] %v1355_v60  ;;  %1674 = vmatpush.bf16.msrb.mxu2 %v1609_v47 }
 0x61a   :  { %1364 = vst [vmem:[#allocation2 + $0x38] sm:$0xf0] %v1356_v46  ;;  %1687 = vmatpush.bf16.msrb.mxu3 %v1610_v21 }
 0x61b   :  { %v1368_v53 = vpop.permute.xlu0 %1367 }
 0x61c   :  { %v1377_v56 = vsel %vm212_vm9, %v1368_v53, %v4593_v54  ;;  %v1378_v14 = vsel %vm212_vm9, %v4624_v20, %v1368_v53  ;;  %3668 = vmatmul.msk.bf16.vlgmr.msrb.gmra.mxu2 %vm475_vm11, %v1619_v2  ;;  %v1624_v54 = vpop.permute.xlu1 %1623 }
 0x61d   :  { %v1389_v8 = vmul.f32 %v1381_v58, %v1378_v14  ;;  %v1390_v55 = vmul.f32 %v1382_v37, %v1377_v56  ;;  %3669 = vmatmul.msk.bf16.vlgmr.msrb.gmra.mxu3 %vm475_vm11, %v1619_v2 }
 0x61f   :  { %1393 = vst [vmem:[#allocation2 + $0x30] sm:$0xf] %v1389_v8 }
 0x620   :  { %1394 = vst [vmem:[#allocation2 + $0x68] sm:$0xf] %v1390_v55  ;;  %v1587_v36 = vld [vmem:[#allocation2] sm:$0xff] }
 0x621   :  { %v1588_v32 = vld [vmem:[#allocation2 + $0x38] sm:$0xff] }
 0x626   :  { %v1591_v26 = vld [vmem:[#allocation2 + $0x30] sm:$0xff] }
 0x627   :  { %v1607_v18 = vpack.c.bf16 %v1591_v26, %v1587_v36  ;;  %v1592_v6 = vld [vmem:[#allocation2 + $0x68] sm:$0xff] }
 0x628   :  { %v1608_v62 = vpack.c.bf16 %v1592_v6, %v1588_v32  ;;  %v2344_v32 = vld [vmem:[%s5615_s3 + $0x10] sm:$0xf]  ;;  %v1784_v6 = vld [vmem:[%s5619_s7 + $0x18] sm:$0xff] }
 0x629   :  { %1648 = vmatpush.bf16.msrb.mxu0 %v1607_v18  ;;  %v2178_v18 = vld [vmem:[%s5617_s5 + $0xc] sm:$0xf] }
 0x62a   :  { %1661 = vmatpush.bf16.msrb.mxu1 %v1608_v62 }
 0x62c   :  { %3666 = vmatmul.msk.bf16.vlgmr.msrb.gmra.mxu0 %vm475_vm11, %v1619_v2 }
 0x62d   :  { %3667 = vmatmul.msk.bf16.vlgmr.msrb.gmra.mxu1 %vm475_vm11, %v1619_v2 }
 0x69f   :  { %v1676_v20 = vpop.f32.mrf.mxu2 }
 0x6a0   :  { %v1677_v45 = vadd.f32 %v1676_v20, %v1624_v54  ;;  %v1689_v61 = vpop.f32.mrf.mxu3 }
 0x6a1   :  { %v1690_v41 = vadd.f32 %v1689_v61, %v1624_v54 }
 0x6a2   :  { %v1695_v38 = vmax.f32 %v1677_v45, 0.0  ;;  %v4778_v45 = vld [vmem:[%s5613_s1 + $0x20] ss:$8 sm:$0xf] }
 0x6a3   :  { %v1696_v31 = vmax.f32 %v1690_v41, 0.0  ;;  %v2131_v61 = vperm.slane %v4778_v45, 2 }
 0x6a4   :  { %v1699_v17 = vpack.c.bf16 %v1695_v38, %v1695_v38 }
 0x6a5   :  { %v1700_v4 = vpack.c.bf16 %v1696_v31, %v1696_v31 }
 0x6a6   :  { %v1716_v63 = vsel %vm479_vm10, %v1699_v17, 0 }
 0x6a7   :  { %v1678_v50 = vpop.f32.mrf.mxu2  ;;  %1754 = vmatpush.bf16.msra.mxu2 %v1716_v63  ;;  %v1719_v33 = vsel %vm479_vm10, %v1700_v4, 0  ;;  %v2132_v4 = vperm.slane %v4778_v45, 3  ;;  %v4790_v63 = vld [vmem:[%s5613_s1 + $0x5] ss:$8 sm:$0xf] }
 0x6a8   :  { %1767 = vmatpush.bf16.msra.mxu3 %v1719_v33  ;;  %v1691_v39 = vpop.f32.mrf.mxu3  ;;  %v2018_v0 = vperm.slane %v4790_v63, 3 }
 0x6a9   :  { %v1650_v9 = vpop.f32.mrf.mxu0  ;;  %v2017_v39 = vperm.slane %v4790_v63, 2 }
 0x6aa   :  { %v1651_v19 = vadd.f32 %v1650_v9, %v1624_v54  ;;  %v1663_v59 = vpop.f32.mrf.mxu1  ;;  %3672 = vmatmul.msk.bf16.vlgmr.msra.gmra.mxu2 %vm557_vm12, %v1213_v44 }
 0x6ab   :  { %1830 = vmatpush.bf16.msrb.mxu2 %v3901_v12  ;;  %v1664_v57 = vadd.f32 %v1663_v59, %v1624_v54  ;;  %3673 = vmatmul.msk.bf16.vlgmr.msra.gmra.mxu3 %vm557_vm12, %v1213_v44 }
 0x6ac   :  { %1843 = vmatpush.bf16.msrb.mxu3 %v3906_v13  ;;  %v1693_v16 = vmax.f32 %v1651_v19, 0.0 }
 0x6ad   :  { %v1694_v24 = vmax.f32 %v1664_v57, 0.0 }
 0x6ae   :  { %v1697_v28 = vpack.c.bf16 %v1693_v16, %v1693_v16 }
 0x6af   :  { %v1698_v12 = vpack.c.bf16 %v1694_v24, %v1694_v24  ;;  %v4809_v24 = vld [vmem:[%s5613_s1 + $0x7] ss:$8 sm:$0xf] }
 0x6b0   :  { %v1710_v52 = vsel %vm479_vm10, %v1697_v28, 0  ;;  %v2089_v3 = vperm.slane %v4809_v24, 2 }
 0x6b1   :  { %v1652_v51 = vpop.f32.mrf.mxu0  ;;  %1728 = vmatpush.bf16.msra.mxu0 %v1710_v52  ;;  %v1713_v13 = vsel %vm479_vm10, %v1698_v12, 0 }
 0x6b2   :  { %1741 = vmatpush.bf16.msra.mxu1 %v1713_v13  ;;  %v1665_v48 = vpop.f32.mrf.mxu1 }
 0x6b4   :  { %3670 = vmatmul.msk.bf16.vlgmr.msra.gmra.mxu0 %vm557_vm12, %v1213_v44 }
 0x6b5   :  { %1804 = vmatpush.bf16.msrb.mxu0 %v3895_v10  ;;  %3671 = vmatmul.msk.bf16.vlgmr.msra.gmra.mxu1 %vm557_vm12, %v1213_v44 }
 0x6b6   :  { %1817 = vmatpush.bf16.msrb.mxu1 %v3898_v11 }
 0x6ba   :  { %3676 = vmatmul.msk.bf16.vlgmr.msrb.gmra.mxu2 %vm54_vm1, %v1793_v29 }
 0x6bb   :  { %3677 = vmatmul.msk.bf16.vlgmr.msrb.gmra.mxu3 %vm54_vm1, %v1793_v29 }
 0x6c4   :  { %3674 = vmatmul.msk.bf16.vlgmr.msrb.gmra.mxu0 %vm54_vm1, %v1793_v29 }
 0x6c5   :  { %3675 = vmatmul.msk.bf16.vlgmr.msrb.gmra.mxu1 %vm54_vm1, %v1793_v29 }
 0x72d   :  { %v4726_v30 = vpop.f32.mrf.mxu2 }
 0x72e   :  { %v4728_v34 = vpop.f32.mrf.mxu3 }
 0x731   :  { %v4730_v10 = vpop.f32.mrf.mxu0 }
 0x732   :  { %v4732_v11 = vpop.f32.mrf.mxu1 }
 0x735   :  { %v1758_v42 = vpop.f32.mrf.mxu2 }
 0x736   :  { %v1771_v15 = vpop.f32.mrf.mxu3 }
 0x739   :  { %v1732_v7 = vpop.f32.mrf.mxu0 }
 0x73a   :  { %v1745_v43 = vpop.f32.mrf.mxu1 }
 0x73d   :  { %v1832_v60 = vpop.f32.mrf.mxu2 }
 0x73e   :  { %v1833_v46 = vadd.f32 %v1832_v60, %v1788_v1  ;;  %v1845_v47 = vpop.f32.mrf.mxu3 }
 0x73f   :  { %v1846_v49 = vadd.f32 %v1845_v47, %v1788_v1  ;;  %v4827_v47 = vld [vmem:[%s5613_s1 + $0x6] ss:$8 sm:$0xf] }
 0x740   :  { %v1851_v27 = vmax.f32 %v1833_v46, 0.0  ;;  %v2090_v46 = vperm.slane %v4809_v24, 3 }
 0x741   :  { %v1852_v21 = vmax.f32 %v1846_v49, 0.0  ;;  %v1806_v58 = vpop.f32.mrf.mxu0 }
 0x742   :  { %1999 = vst [vmem:[#allocation2 + $0x28] sm:$0xf] %v1851_v27  ;;  %v1807_v37 = vadd.f32 %v1806_v58, %v1788_v1  ;;  %v1819_v2 = vpop.f32.mrf.mxu1  ;;  %2119 = vrot.lane.b32.xlu1 %v1851_v27, %s3801_s27 }
 0x743   :  { %2000 = vst [vmem:[#allocation2 + $0x40] sm:$0xf] %v1852_v21  ;;  %v1820_v53 = vadd.f32 %v1819_v2, %v1788_v1  ;;  %2121 = vrot.lane.b32.xlu2 %v1852_v21, %s3801_s27 }
 0x744   :  { %v1849_v56 = vmax.f32 %v1807_v37, 0.0  ;;  %v2059_v37 = vperm.slane %v4827_v47, 2 }
 0x745   :  { %v1850_v14 = vmax.f32 %v1820_v53, 0.0  ;;  %v1834_v8 = vpop.f32.mrf.mxu2 }
 0x746   :  { %1997 = vst [vmem:[#allocation2 + $0x8] sm:$0xf] %v1849_v56  ;;  %2115 = vrot.lane.b32.xlu0 %v1849_v56, %s3801_s27  ;;  %v1847_v55 = vpop.f32.mrf.mxu3 }
 0x747   :  { %1998 = vst [vmem:[#allocation2 + $0x88] sm:$0xf] %v1850_v14  ;;  %v2060_v55 = vperm.slane %v4827_v47, 3 }
 0x749   :  { %v1808_v36 = vpop.f32.mrf.mxu0 }
 0x74a   :  { %2005 = vrot.lane.b32.xlu1 %v1851_v27, %s3800_s26  ;;  %v1821_v26 = vpop.f32.mrf.mxu1  ;;  %v4843_v36 = vld [vmem:[%s5613_s1 + $0x1] ss:$8 sm:$0xf] }
 0x74b   :  { %2007 = vrot.lane.b32.xlu2 %v1852_v21, %s3800_s26 }
 0x74e   :  { %2001 = vrot.lane.b32.xlu0 %v1849_v56, %s3800_s26 }
 0x752   :  { %2077 = vrot.lane.b32.xlu1 %v1851_v27, %s3799_s25 }
 0x753   :  { %2079 = vrot.lane.b32.xlu2 %v1852_v21, %s3799_s25 }
 0x756   :  { %2073 = vrot.lane.b32.xlu0 %v1849_v56, %s3799_s25 }
 0x75a   :  { %2047 = vrot.lane.b32.xlu1 %v1851_v27, %s3802_s28 }
 0x75b   :  { %2049 = vrot.lane.b32.xlu2 %v1852_v21, %s3802_s28 }
 0x75e   :  { %2043 = vrot.lane.b32.xlu0 %v1849_v56, %s3802_s28 }
 0x762   :  { %1887 = vrot.lane.b32.xlu1 %v1851_v27, %s3803_s29 }
 0x763   :  { %1889 = vrot.lane.b32.xlu2 %v1852_v21, %s3803_s29 }
 0x766   :  { %1885 = vrot.lane.b32.xlu0 %v1850_v14, %s3803_s29 }
 0x76a   :  { %1959 = vrot.lane.b32.xlu1 %v1851_v27, %s3804_s30 }
 0x76b   :  { %1961 = vrot.lane.b32.xlu2 %v1852_v21, %s3804_s30 }
 0x76e   :  { %1957 = vrot.lane.b32.xlu0 %v1850_v14, %s3804_s30 }
 0x772   :  { %1857 = vrot.lane.b32.xlu1 %v1851_v27, %s3805_s11 }
 0x773   :  { %1859 = vrot.lane.b32.xlu2 %v1852_v21, %s3805_s11 }
 0x776   :  { %1855 = vrot.lane.b32.xlu0 %v1850_v14, %s3805_s11 }
 0x77a   :  { %1929 = vrot.lane.b32.xlu1 %v1851_v27, %s3806_s12 }
 0x77b   :  { %1931 = vrot.lane.b32.xlu2 %v1852_v21, %s3806_s12 }
 0x77e   :  { %1927 = vrot.lane.b32.xlu0 %v1850_v14, %s3806_s12 }
 0x782   :  { %2003 = vrot.lane.b32.xlu1 %v1850_v14, %s3800_s26 }
 0x783   :  { %2075 = vrot.lane.b32.xlu2 %v1850_v14, %s3799_s25 }
 0x786   :  { %2117 = vrot.lane.b32.xlu0 %v1850_v14, %s3801_s27 }
 0x78a   :  { %1883 = vrot.lane.b32.xlu1 %v1849_v56, %s3803_s29 }
 0x78b   :  { %1955 = vrot.lane.b32.xlu2 %v1849_v56, %s3804_s30 }
 0x78e   :  { %2045 = vrot.lane.b32.xlu0 %v1850_v14, %s3802_s28 }
 0x792   :  { %1925 = vrot.lane.b32.xlu1 %v1849_v56, %s3806_s12 }
 0x793   :  { %2181 = vperm.xlu2 %3747, %v2178_v18  }
 0x796   :  { %1853 = vrot.lane.b32.xlu0 %v1849_v56, %s3805_s11 }
 0x79a   :  { %2353 = vperm.xlu1 %3746, %v2344_v32  }
 0x79d   :  { %v2122_v62 = vpop.permute.xlu2 %2121 }
 0x79e   :  { %2265 = vperm.xlu0 %3745, %v1784_v6   ;;  %v1900_v6 = vperm.slane %v4843_v36, 3 }
 0x7a5   :  { %v2008_v54 = vpop.permute.xlu2 %2007 }
 0x7ad   :  { %v2080_v20 = vpop.permute.xlu2 %2079 }
 0x7b4   :  { %v4781_v41 = vpop.permute.xlu1 %2119 }
 0x7b5   :  { %v2050_v38 = vpop.permute.xlu2 %2049  ;;  %v2123_v31 = vsel %vm412_vm8, %v4781_v41, %v2122_v62 }
 0x7b6   :  { %v2139_v17 = vmul.f32 %v2131_v61, %v2123_v31  ;;  %v1899_v31 = vperm.slane %v4843_v36, 2 }
 0x7b8   :  { %2143 = vst [vmem:[#allocation2 + $0x70] sm:$0xf] %v2139_v17  ;;  %v4792_v50 = vpop.permute.xlu0 %2115 }
 0x7b9   :  { %v2126_v33 = vsel %vm412_vm8, %v2122_v62, %v4792_v50 }
 0x7ba   :  { %v2140_v44 = vmul.f32 %v2132_v4, %v2126_v33 }
 0x7bc   :  { %2144 = vst [vmem:[#allocation2 + $0x90] sm:$0xf] %v2140_v44  ;;  %v4798_v9 = vpop.permute.xlu1 %2005 }
 0x7bd   :  { %v4800_v19 = vpop.permute.xlu2 %1889  ;;  %v2009_v59 = vsel %vm292_vm2, %v4798_v9, %v2008_v54 }
 0x7be   :  { %v2025_v57 = vmul.f32 %v2017_v39, %v2009_v59 }
 0x7bf   :  { %v2163_v16 = vld [vmem:[#allocation2 + $0x70] sm:$0xf] }
 0x7c0   :  { %v2033_v28 = vrot.slane %v2025_v57, 4  ;;  %v4811_v22 = vpop.permute.xlu0 %2001  ;;  %v2175_v12 = vpack.c.bf16 %v2163_v16, %v2163_v16  ;;  %v2087_v16 = vperm.slane %v4809_v24, 0 }
 0x7c1   :  { %v2012_v52 = vsel %vm292_vm2, %v2008_v54, %v4811_v22 }
 0x7c2   :  { %2041 = vst [vmem:[#allocation2 + $0x28] sm:$0xf0] %v2033_v28  ;;  %v2026_v51 = vmul.f32 %v2018_v0, %v2012_v52  ;;  %v2198_v13 = vsel %vm479_vm10, %v2175_v12, 0  ;;  %v2088_v28 = vperm.slane %v4809_v24, 1 }
 0x7c3   :  { %2234 = vmatpush.bf16.msra.mxu2 %v2198_v13  ;;  %v2164_v48 = vld [vmem:[#allocation2 + $0x90] sm:$0xf] }
 0x7c4   :  { %v2034_v29 = vrot.slane %v2026_v51, 4  ;;  %v2078_v42 = vpop.permute.xlu1 %2077  ;;  %v2176_v15 = vpack.c.bf16 %v2164_v48, %v2164_v48 }
 0x7c5   :  { %v4818_v7 = vpop.permute.xlu2 %1961  ;;  %v2081_v43 = vsel %vm368_vm4, %v2078_v42, %v2080_v20 }
 0x7c6   :  { %2042 = vst [vmem:[#allocation2 + $0x40] sm:$0xf0] %v2034_v29  ;;  %v2097_v1 = vmul.f32 %v2089_v3, %v2081_v43  ;;  %v2201_v60 = vsel %vm479_vm10, %v2176_v15, 0 }
 0x7c7   :  { %2247 = vmatpush.bf16.msra.mxu3 %v2201_v60 }
 0x7c8   :  { %v2105_v49 = vrot.slane %v2097_v1, 4  ;;  %v2074_v27 = vpop.permute.xlu0 %2073 }
 0x7c9   :  { %v2084_v21 = vsel %vm368_vm4, %v2080_v20, %v2074_v27  ;;  %v2155_v17 = vld [vmem:[#allocation2 + $0x28] sm:$0xff] }
 0x7ca   :  { %2113 = vst [vmem:[#allocation2 + $0x98] sm:$0xf0] %v2105_v49  ;;  %v2098_v58 = vmul.f32 %v2090_v46, %v2084_v21  ;;  %v4877_v49 = vld [vmem:[%s5613_s1] ss:$8 sm:$0xf] }
 0x7cc   :  { %v2106_v2 = vrot.slane %v2098_v58, 4  ;;  %v4832_v53 = vpop.permute.xlu1 %2047 }
 0x7cd   :  { %v4834_v56 = vpop.permute.xlu2 %1859  ;;  %v2051_v14 = vsel %vm336_vm6, %v4832_v53, %v2050_v38  ;;  %v2156_v12 = vld [vmem:[#allocation2 + $0x40] sm:$0xff] }
 0x7ce   :  { %2114 = vst [vmem:[#allocation2 + $0x60] sm:$0xf0] %v2106_v2  ;;  %v2067_v8 = vmul.f32 %v2059_v37, %v2051_v14 }
 0x7d0   :  { %2071 = vst [vmem:[#allocation2 + $0x98] sm:$0xf] %v2067_v8  ;;  %v4845_v26 = vpop.permute.xlu0 %2043 }
 0x7d1   :  { %v2054_v18 = vsel %vm336_vm6, %v2050_v38, %v4845_v26  ;;  %v3680_v38 = vld [vmem:[%s5613_s1 + $0x3] ss:$8 sm:$0xf] }
 0x7d2   :  { %v2068_v32 = vmul.f32 %v2060_v55, %v2054_v18  ;;  %v1972_v0 = vperm.slane %v3680_v38, 3  ;;  %v1971_v24 = vperm.slane %v3680_v38, 2  ;;  %v1969_v8 = vperm.slane %v3680_v38, 0 }
 0x7d3   :  { %v1970_v55 = vperm.slane %v3680_v38, 1 }
 0x7d4   :  { %2072 = vst [vmem:[#allocation2 + $0x60] sm:$0xf] %v2068_v32  ;;  %v1888_v62 = vpop.permute.xlu1 %1887 }
 0x7d5   :  { %v4851_v54 = vpop.permute.xlu2 %1931  ;;  %v1891_v20 = vsel %vm168_vm3, %v1888_v62, %v4800_v19 }
 0x7d6   :  { %v1908_v61 = vmul.f32 %v1900_v6, %v1891_v20 }
 0x7d7   :  { %v2159_v4 = vld [vmem:[#allocation2 + $0x98] sm:$0xff] }
 0x7d8   :  { %v1916_v33 = vrot.slane %v1908_v61, 4  ;;  %v4860_v44 = vpop.permute.xlu0 %1885  ;;  %v2171_v39 = vpack.c.bf16 %v2159_v4, %v2155_v17  ;;  %v1869_v17 = vperm.slane %v4877_v49, 2 }
 0x7d9   :  { %v1892_v59 = vsel %vm168_vm3, %v4860_v44, %v1888_v62 }
 0x7da   :  { %1924 = vst [vmem:[#allocation2 + $0x18] sm:$0xf0] %v1916_v33  ;;  %v1907_v57 = vmul.f32 %v1899_v31, %v1892_v59  ;;  %2235 = vmatpush.bf16.msra.mxu2 %v2171_v39  ;;  %v4894_v33 = vld [vmem:[%s5613_s1 + $0x2] ss:$8 sm:$0xf] }
 0x7db   :  { %v2160_v52 = vld [vmem:[#allocation2 + $0x60] sm:$0xff] }
 0x7dc   :  { %v1915_v51 = vrot.slane %v1907_v57, 4  ;;  %v1960_v13 = vpop.permute.xlu1 %1959  ;;  %v2172_v3 = vpack.c.bf16 %v2160_v52, %v2156_v12 }
 0x7dd   :  { %v1963_v48 = vsel %vm244_vm5, %v1960_v13, %v4818_v7  ;;  %v2076_v29 = vpop.permute.xlu2 %2075 }
 0x7de   :  { %1923 = vst [vmem:[#allocation2 + $0x50] sm:$0xf0] %v1915_v51  ;;  %v1980_v15 = vmul.f32 %v1972_v0, %v1963_v48  ;;  %v2082_v43 = vsel %vm368_vm4, %v2076_v29, %v2078_v42  ;;  %v2083_v1 = vsel %vm368_vm4, %v2074_v27, %v2076_v29  ;;  %2248 = vmatpush.bf16.msra.mxu3 %v2172_v3  ;;  %v1870_v27 = vperm.slane %v4877_v49, 3 }
 0x7df   :  { %v2095_v60 = vmul.f32 %v2087_v16, %v2083_v1  ;;  %v2096_v46 = vmul.f32 %v2088_v28, %v2082_v43  ;;  %v1941_v51 = vperm.slane %v4894_v33, 2  ;;  %v2015_v43 = vperm.slane %v4790_v63, 0 }
 0x7e0   :  { %v1988_v21 = vrot.slane %v1980_v15, 4  ;;  %v1958_v58 = vpop.permute.xlu0 %1957  ;;  %v2016_v1 = vperm.slane %v4790_v63, 1 }
 0x7e1   :  { %v2103_v37 = vrot.slane %v2095_v60, 4  ;;  %v2104_v2 = vrot.slane %v2096_v46, 4  ;;  %v1964_v14 = vsel %vm244_vm5, %v1958_v58, %v1960_v13  ;;  %v2177_v13 = vld [vmem:[%s5616_s4 + $0x4] sm:$0xc] }
 0x7e2   :  { %1996 = vst [vmem:[#allocation2 + $0x80] sm:$0xf0] %v1988_v21  ;;  %v1979_v42 = vmul.f32 %v1971_v24, %v1964_v14  ;;  %v2185_v29 = vunpack.c.l.b16 %v2177_v13  ;;  %v2130_v14 = vperm.slane %v4778_v45, 1 }
 0x7e3   :  { %2111 = vst [vmem:[#allocation2 + $0x58] sm:$0xf0] %v2103_v37 }
 0x7e4   :  { %2112 = vst [vmem:[#allocation2 + $0x10] sm:$0xf0] %v2104_v2  ;;  %v1987_v18 = vrot.slane %v1979_v42, 4  ;;  %v1858_v32 = vpop.permute.xlu1 %1857  ;;  %v2186_v21 = vpack.c.b16 %v2185_v29, %v2185_v29  ;;  %v2129_v2 = vperm.slane %v4778_v45, 0  ;;  %v1897_v45 = vperm.slane %v4843_v36, 0 }
 0x7e5   :  { %v1861_v6 = vsel %vm137_vm7, %v1858_v32, %v4834_v56  ;;  %v1956_v62 = vpop.permute.xlu2 %1955 }
 0x7e6   :  { %1995 = vst [vmem:[#allocation2 + $0x78] sm:$0xf0] %v1987_v18  ;;  %v1878_v20 = vmul.f32 %v1870_v27, %v1861_v6  ;;  %v1965_v61 = vsel %vm244_vm5, %v1956_v62, %v1958_v58  ;;  %v1966_v31 = vsel %vm244_vm5, %v4818_v7, %v1956_v62  ;;  %v1942_v7 = vperm.slane %v4894_v33, 3 }
 0x7e7   :  { %v1977_v4 = vmul.f32 %v1969_v8, %v1966_v31  ;;  %v1978_v38 = vmul.f32 %v1970_v55, %v1965_v61 }
 0x7e8   :  { %1882 = vst [vmem:[#allocation2 + $0x18] sm:$0xf] %v1878_v20  ;;  %v4896_v39 = vpop.permute.xlu0 %1855  ;;  %v1898_v20 = vperm.slane %v4843_v36, 1 }
 0x7e9   :  { %v1985_v59 = vrot.slane %v1977_v4, 4  ;;  %v1986_v57 = vrot.slane %v1978_v38, 4  ;;  %v1862_v0 = vsel %vm137_vm7, %v4896_v39, %v1858_v32  ;;  %v4930_v32 = vrot.slane %v2186_v21, 2 }
 0x7ea   :  { %v1877_v16 = vmul.f32 %v1869_v17, %v1862_v0 }
 0x7eb   :  { %1993 = vst [vmem:[#allocation2 + $0x30] sm:$0xf0] %v1985_v59  ;;  %v2057_v59 = vperm.slane %v4827_v47, 0 }
 0x7ec   :  { %1994 = vst [vmem:[#allocation2 + $0x68] sm:$0xf0] %v1986_v57  ;;  %v1930_v28 = vpop.permute.xlu1 %1929  ;;  %v2058_v57 = vperm.slane %v4827_v47, 1  ;;  %v1940_v47 = vperm.slane %v4894_v33, 1 }
 0x7ed   :  { %1881 = vst [vmem:[#allocation2 + $0x50] sm:$0xf] %v1877_v16  ;;  %v1933_v12 = vsel %vm212_vm9, %v1930_v28, %v4851_v54 }
 0x7ee   :  { %v1950_v52 = vmul.f32 %v1942_v7, %v1933_v12 }
 0x7ef   :  { %v2148_v42 = vld [vmem:[#allocation2 + $0x18] sm:$0xff] }
 0x7f0   :  { %1954 = vst [vmem:[#allocation2 + $0x80] sm:$0xf] %v1950_v52  ;;  %v4909_v3 = vpop.permute.xlu0 %1927  ;;  %v1939_v52 = vperm.slane %v4894_v33, 0 }
 0x7f1   :  { %v1934_v48 = vsel %vm212_vm9, %v4909_v3, %v1930_v28 }
 0x7f2   :  { %v1949_v15 = vmul.f32 %v1941_v51, %v1934_v48 }
 0x7f4   :  { %1953 = vst [vmem:[#allocation2 + $0x78] sm:$0xf] %v1949_v15  ;;  %v2004_v24 = vpop.permute.xlu1 %2003  ;;  %v2147_v61 = vld [vmem:[#allocation2 + $0x50] sm:$0xff] }
 0x7f5   :  { %v2010_v60 = vsel %vm292_vm2, %v2004_v24, %v4798_v9  ;;  %v2011_v46 = vsel %vm292_vm2, %v4811_v22, %v2004_v24 }
 0x7f6   :  { %v2023_v58 = vmul.f32 %v2015_v43, %v2011_v46  ;;  %v2024_v37 = vmul.f32 %v2016_v1, %v2010_v60  ;;  %v1867_v43 = vperm.slane %v4877_v49, 0  ;;  %v1868_v60 = vperm.slane %v4877_v49, 1 }
 0x7f7   :  { %v2152_v27 = vld [vmem:[#allocation2 + $0x80] sm:$0xff] }
 0x7f8   :  { %v2031_v63 = vrot.slane %v2023_v58, 4  ;;  %v2032_v8 = vrot.slane %v2024_v37, 4  ;;  %v2118_v55 = vpop.permute.xlu0 %2117  ;;  %v2168_v18 = vpack.c.bf16 %v2152_v27, %v2148_v42 }
 0x7f9   :  { %v2124_v9 = vsel %vm412_vm8, %v2118_v55, %v4781_v41  ;;  %v2125_v22 = vsel %vm412_vm8, %v4792_v50, %v2118_v55 }
 0x7fa   :  { %2039 = vst [vmem:[#allocation2 + $0x8] sm:$0xf0] %v2031_v63  ;;  %v2137_v6 = vmul.f32 %v2129_v2, %v2125_v22  ;;  %v2138_v62 = vmul.f32 %v2130_v14, %v2124_v9  ;;  %2249 = vmatpush.bf16.msra.mxu3 %v2168_v18 }
 0x7fb   :  { %2040 = vst [vmem:[#allocation2 + $0x88] sm:$0xf0] %v2032_v8  ;;  %v2151_v31 = vld [vmem:[#allocation2 + $0x78] sm:$0xff] }
 0x7fc   :  { %2141 = vst [vmem:[#allocation2 + $0x20] sm:$0xf] %v2137_v6  ;;  %v1884_v17 = vpop.permute.xlu1 %1883  ;;  %v2167_v41 = vpack.c.bf16 %v2151_v31, %v2147_v61 }
 0x7fd   :  { %2142 = vst [vmem:[#allocation2 + $0x48] sm:$0xf] %v2138_v62  ;;  %v1893_v50 = vsel %vm168_vm3, %v1884_v17, %v4860_v44  ;;  %v1894_v4 = vsel %vm168_vm3, %v4800_v19, %v1884_v17  ;;  %3688 = vmatmul.msk.bf16.vlgmr.msra.gmra.mxu3 %vm475_vm11, %v4930_v32 }
 0x7fe   :  { %v1905_v38 = vmul.f32 %v1897_v45, %v1894_v4  ;;  %v1906_v36 = vmul.f32 %v1898_v20, %v1893_v50  ;;  %2236 = vmatpush.bf16.msra.mxu2 %v2167_v41  ;;  %v1783_v4 = vld [vmem:[%s5618_s6 + $0xc] sm:$0xf] }
 0x800   :  { %v1913_v0 = vrot.slane %v1905_v38, 4  ;;  %v1914_v16 = vrot.slane %v1906_v36, 4  ;;  %v2046_v7 = vpop.permute.xlu0 %2045 }
 0x801   :  { %v2052_v44 = vsel %vm336_vm6, %v2046_v7, %v4832_v53  ;;  %v2053_v19 = vsel %vm336_vm6, %v4845_v26, %v2046_v7  ;;  %3687 = vmatmul.msk.bf16.vlgmr.msra.gmra.mxu2 %vm475_vm11, %v4930_v32  ;;  %v2153_v2 = vld [vmem:[#allocation2 + $0x8] sm:$0xff] }
 0x802   :  { %1921 = vst [vmem:[#allocation2] sm:$0xf0] %v1913_v0  ;;  %v2065_v28 = vmul.f32 %v2057_v59, %v2053_v19  ;;  %v2066_v12 = vmul.f32 %v2058_v57, %v2052_v44  ;;  %v2154_v42 = vld [vmem:[#allocation2 + $0x88] sm:$0xff] }
 0x803   :  { %1922 = vst [vmem:[#allocation2 + $0x38] sm:$0xf0] %v1914_v16  ;;  %v2161_v51 = vld [vmem:[#allocation2 + $0x20] sm:$0xf] }
 0x804   :  { %2069 = vst [vmem:[#allocation2 + $0x58] sm:$0xf] %v2065_v28  ;;  %v1926_v13 = vpop.permute.xlu1 %1925  ;;  %v2173_v48 = vpack.c.bf16 %v2161_v51, %v2161_v51  ;;  %v2162_v53 = vld [vmem:[#allocation2 + $0x48] sm:$0xf] }
 0x805   :  { %2070 = vst [vmem:[#allocation2 + $0x10] sm:$0xf] %v2066_v12  ;;  %v1935_v26 = vsel %vm212_vm9, %v1926_v13, %v4909_v3  ;;  %v1936_v29 = vsel %vm212_vm9, %v4851_v54, %v1926_v13  ;;  %v2174_v15 = vpack.c.bf16 %v2162_v53, %v2162_v53 }
 0x806   :  { %v1947_v1 = vmul.f32 %v1939_v52, %v1936_v29  ;;  %v1948_v33 = vmul.f32 %v1940_v47, %v1935_v26  ;;  %v2192_v24 = vsel %vm479_vm10, %v2173_v48, 0  ;;  %v3764_v26 = vld [vmem:[%s5612_s0 + $0x18] sm:$0xff] }
 0x807   :  { %2208 = vmatpush.bf16.msra.mxu0 %v2192_v24  ;;  %v2195_v46 = vsel %vm479_vm10, %v2174_v15, 0  ;;  %v3765_v24 = vld [vmem:[%s5612_s0 + $0x10] sm:$0xff] }
 0x808   :  { %1951 = vst [vmem:[#allocation2 + $0x30] sm:$0xf] %v1947_v1  ;;  %2221 = vmatpush.bf16.msra.mxu1 %v2195_v46  ;;  %v1854_v21 = vpop.permute.xlu0 %1853 }
 0x809   :  { %1952 = vst [vmem:[#allocation2 + $0x68] sm:$0xf] %v1948_v33  ;;  %v1863_v54 = vsel %vm137_vm7, %v1854_v21, %v4896_v39  ;;  %v1864_v3 = vsel %vm137_vm7, %v4834_v56, %v1854_v21  ;;  %v2182_v56 = vpop.permute.xlu2 %2181 }
 0x80a   :  { %v1875_v58 = vmul.f32 %v1867_v43, %v1864_v3  ;;  %v1876_v37 = vmul.f32 %v1868_v60, %v1863_v54  ;;  %v2343_v3 = vld [vmem:[%s5614_s2 + $0x8] sm:$0x3] }
 0x80b   :  { %v2157_v14 = vld [vmem:[#allocation2 + $0x58] sm:$0xff] }
 0x80c   :  { %1879 = vst [vmem:[#allocation2] sm:$0xf] %v1875_v58  ;;  %v2169_v49 = vpack.c.bf16 %v2157_v14, %v2153_v2  ;;  %v2158_v27 = vld [vmem:[#allocation2 + $0x10] sm:$0xff] }
 0x80d   :  { %1880 = vst [vmem:[#allocation2 + $0x38] sm:$0xf] %v1876_v37  ;;  %v2170_v63 = vpack.c.bf16 %v2158_v27, %v2154_v42 }
 0x80e   :  { %2209 = vmatpush.bf16.msra.mxu0 %v2169_v49 }
 0x80f   :  { %2222 = vmatpush.bf16.msra.mxu1 %v2170_v63  ;;  %v2149_v55 = vld [vmem:[#allocation2 + $0x30] sm:$0xff]  ;;  %v3766_v63 = vld [vmem:[%s5612_s0] sm:$0xff] }
 0x810   :  { %v2150_v9 = vld [vmem:[#allocation2 + $0x68] sm:$0xff]  ;;  %v2266_v13 = vpop.permute.xlu0 %2265 }
 0x813   :  { %v2145_v8 = vld [vmem:[#allocation2] sm:$0xff] }
 0x814   :  { %v2165_v18 = vpack.c.bf16 %v2149_v55, %v2145_v8  ;;  %v2146_v39 = vld [vmem:[#allocation2 + $0x38] sm:$0xff]  ;;  %v3767_v55 = vld [vmem:[%s5612_s0 + $0x8] sm:$0xff] }
 0x815   :  { %v2166_v22 = vpack.c.bf16 %v2150_v9, %v2146_v39 }
 0x816   :  { %2210 = vmatpush.bf16.msra.mxu0 %v2165_v18 }
 0x817   :  { %2223 = vmatpush.bf16.msra.mxu1 %v2166_v22 }
 0x819   :  { %3685 = vmatmul.msk.bf16.vlgmr.msra.gmra.mxu0 %vm475_vm11, %v4930_v32 }
 0x81a   :  { %3686 = vmatmul.msk.bf16.vlgmr.msra.gmra.mxu1 %vm475_vm11, %v4930_v32 }
 0x880   :  { %v2251_v6 = vpop.f32.mrf.mxu3 }
 0x881   :  { %v2252_v62 = vadd.f32 %v2251_v6, %v2182_v56 }
 0x883   :  { %v2258_v45 = vmax.f32 %v2252_v62, 0.0 }
 0x884   :  { %v2238_v20 = vpop.f32.mrf.mxu2 }
 0x885   :  { %v2262_v61 = vpack.c.bf16 %v2258_v45, %v2258_v45  ;;  %v2239_v31 = vadd.f32 %v2238_v20, %v2182_v56 }
 0x887   :  { %v2257_v17 = vmax.f32 %v2239_v31, 0.0  ;;  %v2281_v41 = vsel %vm479_vm10, %v2262_v61, 0  ;;  %v2354_v61 = vpop.permute.xlu1 %2353 }
 0x888   :  { %2329 = vmatpush.bf16.msrb.mxu3 %v2281_v41  ;;  %v2253_v50 = vpop.f32.mrf.mxu3 }
 0x889   :  { %v2261_v38 = vpack.c.bf16 %v2257_v17, %v2257_v17 }
 0x88b   :  { %3692 = vmatmul.msk.bf16.vlgmr.msrb.gmra.mxu3 %vm557_vm12, %v1783_v4  ;;  %v2278_v32 = vsel %vm479_vm10, %v2261_v38, 0 }
 0x88c   :  { %v2240_v36 = vpop.f32.mrf.mxu2  ;;  %2316 = vmatpush.bf16.msrb.mxu2 %v2278_v32 }
 0x88f   :  { %3691 = vmatmul.msk.bf16.vlgmr.msrb.gmra.mxu2 %vm557_vm12, %v1783_v4 }
 0x896   :  { %v2212_v59 = vpop.f32.mrf.mxu0 }
 0x897   :  { %v2213_v57 = vadd.f32 %v2212_v59, %v2182_v56  ;;  %v2225_v0 = vpop.f32.mrf.mxu1 }
 0x898   :  { %v2226_v16 = vadd.f32 %v2225_v0, %v2182_v56 }
 0x899   :  { %v2255_v7 = vmax.f32 %v2213_v57, 0.0 }
 0x89a   :  { %v2256_v44 = vmax.f32 %v2226_v16, 0.0 }
 0x89b   :  { %v2259_v19 = vpack.c.bf16 %v2255_v7, %v2255_v7 }
 0x89c   :  { %v2260_v28 = vpack.c.bf16 %v2256_v44, %v2256_v44 }
 0x89d   :  { %v2272_v12 = vsel %vm479_vm10, %v2259_v19, 0 }
 0x89e   :  { %2290 = vmatpush.bf16.msrb.mxu0 %v2272_v12  ;;  %v2275_v52 = vsel %vm479_vm10, %v2260_v28, 0  ;;  %v2214_v47 = vpop.f32.mrf.mxu0  ;;  %v2752_v12 = vld [vmem:[%s5617_s5 + $0x10] sm:$0xf] }
 0x89f   :  { %2303 = vmatpush.bf16.msrb.mxu1 %v2275_v52  ;;  %v2227_v51 = vpop.f32.mrf.mxu1  ;;  %v2914_v52 = vld [vmem:[%s5615_s3 + $0x14] sm:$0xf]  ;;  %v2346_v47 = vld [vmem:[%s5619_s7 + $0x20] sm:$0xff] }
 0x8a1   :  { %3689 = vmatmul.msk.bf16.vlgmr.msrb.gmra.mxu0 %vm557_vm12, %v1783_v4 }
 0x8a2   :  { %3690 = vmatmul.msk.bf16.vlgmr.msrb.gmra.mxu1 %vm557_vm12, %v1783_v4 }
 0x90e   :  { %v2331_v48 = vpop.f32.mrf.mxu3 }
 0x90f   :  { %v2332_v53 = vadd.f32 %v2331_v48, %v2266_v13  ;;  %v5072_v48 = vld [vmem:[%s5613_s1 + $0x20] ss:$8 sm:$0xf] }
 0x911   :  { %v2338_v29 = vadd.f32 %v3764_v26, %v2332_v53  ;;  %v2706_v53 = vperm.slane %v5072_v48, 3 }
 0x912   :  { %v2318_v15 = vpop.f32.mrf.mxu2 }
 0x913   :  { %v4988_v43 = vmax.f32 %v2338_v29, 0.0  ;;  %v2319_v1 = vadd.f32 %v2318_v15, %v2266_v13 }
 0x915   :  { %v2350_v33 = vpack.c.bf16 %v4988_v43, %v4988_v43  ;;  %v2337_v60 = vadd.f32 %v3765_v24, %v2319_v1  ;;  %v5084_v24 = vld [vmem:[%s5613_s1 + $0x5] ss:$8 sm:$0xf] }
 0x916   :  { %v2333_v46 = vpop.f32.mrf.mxu3 }
 0x917   :  { %v4995_v21 = vmax.f32 %v2337_v60, 0.0  ;;  %v2369_v54 = vsel %vm58_vm0, %v2350_v33, 0  ;;  %v2705_v33 = vperm.slane %v5072_v48, 2 }
 0x918   :  { %2417 = vmatpush.bf16.msra.mxu3 %v2369_v54 }
 0x919   :  { %v2349_v58 = vpack.c.bf16 %v4995_v21, %v4995_v21 }
 0x91a   :  { %v2320_v37 = vpop.f32.mrf.mxu2 }
 0x91b   :  { %3696 = vmatmul.msk.bf16.vlgmr.msra.gmra.mxu3 %vm54_vm1, %v2343_v3  ;;  %v2366_v2 = vsel %vm58_vm0, %v2349_v58, 0 }
 0x91c   :  { %2404 = vmatpush.bf16.msra.mxu2 %v2366_v2 }
 0x91e   :  { %v2292_v14 = vpop.f32.mrf.mxu0 }
 0x91f   :  { %v2293_v49 = vadd.f32 %v2292_v14, %v2266_v13  ;;  %v2305_v42 = vpop.f32.mrf.mxu1  ;;  %3695 = vmatmul.msk.bf16.vlgmr.msra.gmra.mxu2 %vm54_vm1, %v2343_v3 }
 0x920   :  { %v2306_v27 = vadd.f32 %v2305_v42, %v2266_v13 }
 0x921   :  { %v2335_v8 = vadd.f32 %v3766_v63, %v2293_v49  ;;  %v2591_v49 = vperm.slane %v5084_v24, 2 }
 0x922   :  { %v2336_v18 = vadd.f32 %v3767_v55, %v2306_v27  ;;  %v5101_v27 = vld [vmem:[%s5613_s1 + $0x7] ss:$8 sm:$0xf] }
 0x923   :  { %v5012_v39 = vmax.f32 %v2335_v8, 0.0 }
 0x924   :  { %v5014_v9 = vmax.f32 %v2336_v18, 0.0 }
 0x925   :  { %v2347_v22 = vpack.c.bf16 %v5012_v39, %v5012_v39 }
 0x926   :  { %v2348_v56 = vpack.c.bf16 %v5014_v9, %v5014_v9  ;;  %v2294_v6 = vpop.f32.mrf.mxu0 }
 0x927   :  { %v2360_v62 = vsel %vm58_vm0, %v2347_v22, 0  ;;  %v2307_v45 = vpop.f32.mrf.mxu1  ;;  %v2664_v6 = vperm.slane %v5101_v27, 3 }
 0x928   :  { %2378 = vmatpush.bf16.msra.mxu0 %v2360_v62  ;;  %v2363_v20 = vsel %vm58_vm0, %v2348_v56, 0 }
 0x929   :  { %2391 = vmatpush.bf16.msra.mxu1 %v2363_v20 }
 0x92b   :  { %3693 = vmatmul.msk.bf16.vlgmr.msra.gmra.mxu0 %vm54_vm1, %v2343_v3 }
 0x92c   :  { %3694 = vmatmul.msk.bf16.vlgmr.msra.gmra.mxu1 %vm54_vm1, %v2343_v3  ;;  %v2592_v3 = vperm.slane %v5084_v24, 3 }
 0x99e   :  { %v2419_v31 = vpop.f32.mrf.mxu3 }
 0x99f   :  { %v2420_v17 = vadd.f32 %v2419_v31, %v2354_v61 }
 0x9a1   :  { %v2426_v41 = vmax.f32 %v2420_v17, 0.0 }
 0x9a2   :  { %v2406_v50 = vpop.f32.mrf.mxu2 }
 0x9a3   :  { %2574 = vst [vmem:[#allocation2 + $0x40] sm:$0xf] %v2426_v41  ;;  %v2407_v4 = vadd.f32 %v2406_v50, %v2354_v61  ;;  %2695 = vrot.lane.b32.xlu1 %v2426_v41, %s3801_s27 }
 0x9a5   :  { %v2425_v38 = vmax.f32 %v2407_v4, 0.0  ;;  %v2663_v4 = vperm.slane %v5101_v27, 2 }
 0x9a6   :  { %v2421_v32 = vpop.f32.mrf.mxu3 }
 0x9a7   :  { %2573 = vst [vmem:[#allocation2 + $0x28] sm:$0xf] %v2425_v38  ;;  %2693 = vrot.lane.b32.xlu0 %v2425_v38, %s3801_s27 }
 0x9a8   :  { %v2380_v36 = vpop.f32.mrf.mxu0 }
 0x9a9   :  { %v2381_v59 = vadd.f32 %v2380_v36, %v2354_v61  ;;  %v2393_v57 = vpop.f32.mrf.mxu1 }
 0x9aa   :  { %v2394_v0 = vadd.f32 %v2393_v57, %v2354_v61  ;;  %v2408_v16 = vpop.f32.mrf.mxu2 }
 0x9ab   :  { %v2423_v7 = vmax.f32 %v2381_v59, 0.0  ;;  %2581 = vrot.lane.b32.xlu1 %v2426_v41, %s3800_s26 }
 0x9ac   :  { %v2424_v44 = vmax.f32 %v2394_v0, 0.0 }
 0x9ad   :  { %2571 = vst [vmem:[#allocation2 + $0x8] sm:$0xf] %v2423_v7  ;;  %2689 = vrot.lane.b32.xlu2 %v2423_v7, %s3801_s27 }
 0x9ae   :  { %2572 = vst [vmem:[#allocation2 + $0x88] sm:$0xf] %v2424_v44 }
 0x9af   :  { %2579 = vrot.lane.b32.xlu0 %v2425_v38, %s3800_s26 }
 0x9b0   :  { %v2382_v19 = vpop.f32.mrf.mxu0 }
 0x9b1   :  { %v2395_v28 = vpop.f32.mrf.mxu1 }
 0x9b3   :  { %2653 = vrot.lane.b32.xlu1 %v2426_v41, %s3799_s25 }
 0x9b5   :  { %2575 = vrot.lane.b32.xlu2 %v2423_v7, %s3800_s26 }
 0x9b7   :  { %2651 = vrot.lane.b32.xlu0 %v2425_v38, %s3799_s25 }
 0x9bb   :  { %2623 = vrot.lane.b32.xlu1 %v2426_v41, %s3802_s28 }
 0x9bd   :  { %2647 = vrot.lane.b32.xlu2 %v2423_v7, %s3799_s25 }
 0x9bf   :  { %2621 = vrot.lane.b32.xlu0 %v2425_v38, %s3802_s28 }
 0x9c3   :  { %2463 = vrot.lane.b32.xlu1 %v2426_v41, %s3803_s29 }
 0x9c5   :  { %2617 = vrot.lane.b32.xlu2 %v2423_v7, %s3802_s28 }
 0x9c7   :  { %2461 = vrot.lane.b32.xlu0 %v2425_v38, %s3803_s29 }
 0x9cb   :  { %2535 = vrot.lane.b32.xlu1 %v2426_v41, %s3804_s30 }
 0x9cd   :  { %2459 = vrot.lane.b32.xlu2 %v2424_v44, %s3803_s29 }
 0x9cf   :  { %2533 = vrot.lane.b32.xlu0 %v2425_v38, %s3804_s30 }
 0x9d3   :  { %2433 = vrot.lane.b32.xlu1 %v2426_v41, %s3805_s11 }
 0x9d5   :  { %2531 = vrot.lane.b32.xlu2 %v2424_v44, %s3804_s30 }
 0x9d7   :  { %2431 = vrot.lane.b32.xlu0 %v2425_v38, %s3805_s11 }
 0x9db   :  { %2505 = vrot.lane.b32.xlu1 %v2426_v41, %s3806_s12 }
 0x9dd   :  { %2429 = vrot.lane.b32.xlu2 %v2424_v44, %s3805_s11 }
 0x9df   :  { %2503 = vrot.lane.b32.xlu0 %v2425_v38, %s3806_s12  ;;  %v5120_v38 = vld [vmem:[%s5613_s1 + $0x6] ss:$8 sm:$0xf] }
 0x9e0   :  { %v2634_v0 = vperm.slane %v5120_v38, 3 }
 0x9e3   :  { %2649 = vrot.lane.b32.xlu1 %v2424_v44, %s3799_s25 }
 0x9e5   :  { %2501 = vrot.lane.b32.xlu2 %v2424_v44, %s3806_s12 }
 0x9e7   :  { %2577 = vrot.lane.b32.xlu0 %v2424_v44, %s3800_s26 }
 0x9eb   :  { %2529 = vrot.lane.b32.xlu1 %v2423_v7, %s3804_s30 }
 0x9ed   :  { %2691 = vrot.lane.b32.xlu2 %v2424_v44, %s3801_s27 }
 0x9ef   :  { %2457 = vrot.lane.b32.xlu0 %v2423_v7, %s3803_s29 }
 0x9f3   :  { %2755 = vperm.xlu1 %3746, %v2752_v12   ;;  %v2633_v12 = vperm.slane %v5120_v38, 2 }
 0x9f5   :  { %2619 = vrot.lane.b32.xlu2 %v2424_v44, %s3802_s28 }
 0x9f7   :  { %2499 = vrot.lane.b32.xlu0 %v2423_v7, %s3806_s12 }
 0x9fd   :  { %2427 = vrot.lane.b32.xlu2 %v2423_v7, %s3805_s11 }
 0x9ff   :  { %2923 = vperm.xlu0 %3745, %v2914_v52  }
 0xa05   :  { %2835 = vperm.xlu2 %3747, %v2346_v47  }
 0xa07   :  { %v5065_v51 = vpop.permute.xlu2 %2689 }
 0xa0f   :  { %v5067_v13 = vpop.permute.xlu2 %2575 }
 0xa15   :  { %v2696_v26 = vpop.permute.xlu1 %2695 }
 0xa16   :  { %v2700_v29 = vsel %vm412_vm8, %v2696_v26, %v5065_v51 }
 0xa17   :  { %v2714_v15 = vmul.f32 %v2706_v53, %v2700_v29  ;;  %v5078_v1 = vpop.permute.xlu2 %2647 }
 0xa19   :  { %2718 = vst [vmem:[#allocation2 + $0x90] sm:$0xf] %v2714_v15  ;;  %v5086_v60 = vpop.permute.xlu0 %2693 }
 0xa1a   :  { %v2697_v46 = vsel %vm412_vm8, %v5086_v60, %v2696_v26  ;;  %v5142_v26 = vld [vmem:[%s5613_s1 + $0x1] ss:$8 sm:$0xf] }
 0xa1b   :  { %v2713_v54 = vmul.f32 %v2705_v33, %v2697_v46  ;;  %v2473_v33 = vperm.slane %v5142_v26, 2  ;;  %v2474_v46 = vperm.slane %v5142_v26, 3 }
 0xa1d   :  { %2717 = vst [vmem:[#allocation2 + $0x70] sm:$0xf] %v2713_v54  ;;  %v2582_v58 = vpop.permute.xlu1 %2581 }
 0xa1e   :  { %v2586_v37 = vsel %vm292_vm2, %v2582_v58, %v5067_v13 }
 0xa1f   :  { %v2600_v2 = vmul.f32 %v2592_v3, %v2586_v37  ;;  %v5095_v14 = vpop.permute.xlu2 %2617 }
 0xa20   :  { %v2738_v42 = vld [vmem:[#allocation2 + $0x90] sm:$0xf] }
 0xa21   :  { %v2608_v63 = vrot.slane %v2600_v2, 4  ;;  %v5103_v8 = vpop.permute.xlu0 %2579  ;;  %v2750_v55 = vpack.c.bf16 %v2738_v42, %v2738_v42 }
 0xa22   :  { %v2583_v18 = vsel %vm292_vm2, %v5103_v8, %v2582_v58 }
 0xa23   :  { %2616 = vst [vmem:[#allocation2 + $0x40] sm:$0xf0] %v2608_v63  ;;  %v2599_v22 = vmul.f32 %v2591_v49, %v2583_v18  ;;  %v2771_v56 = vsel %vm479_vm10, %v2750_v55, 0 }
 0xa24   :  { %2817 = vmatpush.bf16.msrb.mxu3 %v2771_v56  ;;  %v2737_v62 = vld [vmem:[#allocation2 + $0x70] sm:$0xf] }
 0xa25   :  { %v2607_v45 = vrot.slane %v2599_v22, 4  ;;  %v2654_v20 = vpop.permute.xlu1 %2653  ;;  %v2749_v61 = vpack.c.bf16 %v2737_v62, %v2737_v62  ;;  %v5159_v22 = vld [vmem:[%s5613_s1 + $0x3] ss:$8 sm:$0xf] }
 0xa26   :  { %v2658_v31 = vsel %vm368_vm4, %v2654_v20, %v5078_v1 }
 0xa27   :  { %2615 = vst [vmem:[#allocation2 + $0x28] sm:$0xf0] %v2607_v45  ;;  %v2672_v17 = vmul.f32 %v2664_v6, %v2658_v31  ;;  %v5113_v41 = vpop.permute.xlu2 %2459  ;;  %v2768_v50 = vsel %vm479_vm10, %v2749_v61, 0  ;;  %v2545_v61 = vperm.slane %v5159_v22, 2  ;;  %v2546_v31 = vperm.slane %v5159_v22, 3 }
 0xa28   :  { %2804 = vmatpush.bf16.msrb.mxu2 %v2768_v50 }
 0xa29   :  { %v2680_v32 = vrot.slane %v2672_v17, 4  ;;  %v5122_v36 = vpop.permute.xlu0 %2651 }
 0xa2a   :  { %v2655_v59 = vsel %vm368_vm4, %v5122_v36, %v2654_v20  ;;  %v2730_v54 = vld [vmem:[#allocation2 + $0x40] sm:$0xff] }
 0xa2b   :  { %2688 = vst [vmem:[#allocation2 + $0x60] sm:$0xf0] %v2680_v32  ;;  %v2671_v57 = vmul.f32 %v2663_v4, %v2655_v59 }
 0xa2d   :  { %v2679_v16 = vrot.slane %v2671_v57, 4  ;;  %v2624_v7 = vpop.permute.xlu1 %2623  ;;  %v5176_v57 = vld [vmem:[%s5613_s1] ss:$8 sm:$0xf] }
 0xa2e   :  { %v2628_v44 = vsel %vm336_vm6, %v2624_v7, %v5095_v14  ;;  %v2729_v55 = vld [vmem:[#allocation2 + $0x28] sm:$0xff] }
 0xa2f   :  { %2687 = vst [vmem:[#allocation2 + $0x98] sm:$0xf0] %v2679_v16  ;;  %v2642_v19 = vmul.f32 %v2634_v0, %v2628_v44  ;;  %v5131_v28 = vpop.permute.xlu2 %2531  ;;  %v2703_v44 = vperm.slane %v5072_v48, 0 }
 0xa31   :  { %2646 = vst [vmem:[#allocation2 + $0x60] sm:$0xf] %v2642_v19  ;;  %v5134_v52 = vpop.permute.xlu0 %2621  ;;  %v2704_v19 = vperm.slane %v5072_v48, 1 }
 0xa32   :  { %v2625_v47 = vsel %vm336_vm6, %v5134_v52, %v2624_v7 }
 0xa33   :  { %v2641_v53 = vmul.f32 %v2633_v12, %v2625_v47  ;;  %v2443_v47 = vperm.slane %v5176_v57, 2 }
 0xa35   :  { %2645 = vst [vmem:[#allocation2 + $0x98] sm:$0xf] %v2641_v53  ;;  %v5144_v29 = vpop.permute.xlu1 %2463  ;;  %v2444_v53 = vperm.slane %v5176_v57, 3 }
 0xa37   :  { %v5146_v15 = vpop.permute.xlu2 %2429 }
 0xa38   :  { %v2734_v3 = vld [vmem:[#allocation2 + $0x60] sm:$0xff] }
 0xa39   :  { %v2462_v58 = vpop.permute.xlu0 %2461  ;;  %v2746_v37 = vpack.c.bf16 %v2734_v3, %v2730_v54 }
 0xa3a   :  { %v2465_v2 = vsel %vm168_vm3, %v2462_v58, %v5144_v29  ;;  %v2466_v49 = vsel %vm168_vm3, %v5113_v41, %v2462_v58 }
 0xa3b   :  { %v2481_v42 = vmul.f32 %v2473_v33, %v2466_v49  ;;  %v2482_v63 = vmul.f32 %v2474_v46, %v2465_v2  ;;  %2818 = vmatpush.bf16.msrb.mxu3 %v2746_v37 }
 0xa3c   :  { %v2733_v18 = vld [vmem:[#allocation2 + $0x98] sm:$0xff] }
 0xa3d   :  { %v2489_v56 = vrot.slane %v2481_v42, 4  ;;  %v2490_v6 = vrot.slane %v2482_v63, 4  ;;  %v5161_v62 = vpop.permute.xlu1 %2535  ;;  %v2745_v45 = vpack.c.bf16 %v2733_v18, %v2729_v55  ;;  %v2631_v42 = vperm.slane %v5120_v38, 0 }
 0xa3e   :  { %v2632_v63 = vperm.slane %v5120_v38, 1 }
 0xa3f   :  { %2497 = vst [vmem:[#allocation2 + $0x50] sm:$0xf0] %v2489_v56  ;;  %2805 = vmatpush.bf16.msrb.mxu2 %v2745_v45  ;;  %v5163_v20 = vpop.permute.xlu2 %2501 }
 0xa40   :  { %2498 = vst [vmem:[#allocation2 + $0x18] sm:$0xf0] %v2490_v6 }
 0xa41   :  { %v2534_v17 = vpop.permute.xlu0 %2533 }
 0xa42   :  { %v2537_v50 = vsel %vm244_vm5, %v2534_v17, %v5161_v62  ;;  %v2538_v4 = vsel %vm244_vm5, %v5131_v28, %v2534_v17 }
 0xa43   :  { %v2553_v32 = vmul.f32 %v2545_v61, %v2538_v4  ;;  %v2554_v59 = vmul.f32 %v2546_v31, %v2537_v50  ;;  %v2661_v4 = vperm.slane %v5101_v27, 0 }
 0xa45   :  { %v2561_v0 = vrot.slane %v2553_v32, 4  ;;  %v2562_v16 = vrot.slane %v2554_v59, 4  ;;  %v5178_v7 = vpop.permute.xlu1 %2433 }
 0xa47   :  { %2569 = vst [vmem:[#allocation2 + $0x78] sm:$0xf0] %v2561_v0  ;;  %v2692_v12 = vpop.permute.xlu2 %2691  ;;  %v2662_v0 = vperm.slane %v5101_v27, 1 }
 0xa48   :  { %2570 = vst [vmem:[#allocation2 + $0x80] sm:$0xf0] %v2562_v16  ;;  %v2698_v33 = vsel %vm412_vm8, %v2692_v12, %v5086_v60  ;;  %v2699_v46 = vsel %vm412_vm8, %v5065_v51, %v2692_v12  ;;  %v5199_v60 = vld [vmem:[%s5613_s1 + $0x2] ss:$8 sm:$0xf] }
 0xa49   :  { %v2711_v54 = vmul.f32 %v2703_v44, %v2699_v46  ;;  %v2712_v3 = vmul.f32 %v2704_v19, %v2698_v33  ;;  %v2432_v58 = vpop.permute.xlu0 %2431  ;;  %v2515_v18 = vperm.slane %v5199_v60, 2  ;;  %v2516_v56 = vperm.slane %v5199_v60, 3 }
 0xa4a   :  { %v2435_v48 = vsel %vm137_vm7, %v2432_v58, %v5178_v7  ;;  %v2436_v37 = vsel %vm137_vm7, %v5146_v15, %v2432_v58  ;;  %v2442_v46 = vperm.slane %v5176_v57, 1 }
 0xa4b   :  { %2715 = vst [vmem:[#allocation2 + $0x20] sm:$0xf] %v2711_v54  ;;  %v2451_v2 = vmul.f32 %v2443_v47, %v2436_v37  ;;  %v2452_v49 = vmul.f32 %v2444_v53, %v2435_v48  ;;  %v2441_v47 = vperm.slane %v5176_v57, 0  ;;  %v2589_v48 = vperm.slane %v5084_v24, 0 }
 0xa4c   :  { %2716 = vst [vmem:[#allocation2 + $0x48] sm:$0xf] %v2712_v3  ;;  %v2590_v37 = vperm.slane %v5084_v24, 1 }
 0xa4d   :  { %2455 = vst [vmem:[#allocation2 + $0x50] sm:$0xf] %v2451_v2  ;;  %v5201_v51 = vpop.permute.xlu1 %2505 }
 0xa4e   :  { %2456 = vst [vmem:[#allocation2 + $0x18] sm:$0xf] %v2452_v49 }
 0xa4f   :  { %v2620_v55 = vpop.permute.xlu2 %2619 }
 0xa50   :  { %v2626_v6 = vsel %vm336_vm6, %v2620_v55, %v5134_v52  ;;  %v2627_v45 = vsel %vm336_vm6, %v5095_v14, %v2620_v55 }
 0xa51   :  { %v2639_v61 = vmul.f32 %v2631_v42, %v2627_v45  ;;  %v2640_v31 = vmul.f32 %v2632_v63, %v2626_v6  ;;  %v2504_v17 = vpop.permute.xlu0 %2503 }
 0xa52   :  { %v2507_v38 = vsel %vm212_vm9, %v2504_v17, %v5201_v51  ;;  %v2508_v50 = vsel %vm212_vm9, %v5163_v20, %v2504_v17  ;;  %v2735_v32 = vld [vmem:[#allocation2 + $0x20] sm:$0xf] }
 0xa53   :  { %2643 = vst [vmem:[#allocation2 + $0x58] sm:$0xf] %v2639_v61  ;;  %v2523_v52 = vmul.f32 %v2515_v18, %v2508_v50  ;;  %v2524_v59 = vmul.f32 %v2516_v56, %v2507_v38  ;;  %v2747_v14 = vpack.c.bf16 %v2735_v32, %v2735_v32  ;;  %v2736_v16 = vld [vmem:[#allocation2 + $0x48] sm:$0xf]  ;;  %v2543_v56 = vperm.slane %v5159_v22, 0 }
 0xa54   :  { %2644 = vst [vmem:[#allocation2 + $0x10] sm:$0xf] %v2640_v31  ;;  %v2748_v44 = vpack.c.bf16 %v2736_v16, %v2736_v16  ;;  %v2721_v6 = vld [vmem:[#allocation2 + $0x50] sm:$0xff] }
 0xa55   :  { %2527 = vst [vmem:[#allocation2 + $0x78] sm:$0xf] %v2523_v52  ;;  %v2650_v19 = vpop.permute.xlu1 %2649  ;;  %v2762_v12 = vsel %vm479_vm10, %v2747_v14, 0  ;;  %v2751_v14 = vld [vmem:[%s5616_s4 + $0x8] sm:$0x3] }
 0xa56   :  { %2528 = vst [vmem:[#allocation2 + $0x80] sm:$0xf] %v2524_v59  ;;  %v2656_v53 = vsel %vm368_vm4, %v2650_v19, %v5122_v36  ;;  %v2657_v33 = vsel %vm368_vm4, %v5078_v1, %v2650_v19  ;;  %2778 = vmatpush.bf16.msrb.mxu0 %v2762_v12  ;;  %v2765_v27 = vsel %vm479_vm10, %v2748_v44, 0  ;;  %v2471_v59 = vperm.slane %v5142_v26, 0 }
 0xa57   :  { %v2669_v54 = vmul.f32 %v2661_v4, %v2657_v33  ;;  %v2670_v3 = vmul.f32 %v2662_v0, %v2656_v53  ;;  %2791 = vmatpush.bf16.msrb.mxu1 %v2765_v27  ;;  %v2428_v58 = vpop.permute.xlu2 %2427  ;;  %v2472_v0 = vperm.slane %v5142_v26, 1 }
 0xa58   :  { %v2437_v36 = vsel %vm137_vm7, %v2428_v58, %v5146_v15  ;;  %v2438_v1 = vsel %vm137_vm7, %v5178_v7, %v2428_v58  ;;  %v2544_v7 = vperm.slane %v5159_v22, 1 }
 0xa59   :  { %v2677_v2 = vrot.slane %v2669_v54, 4  ;;  %v2678_v49 = vrot.slane %v2670_v3, 4  ;;  %v2449_v42 = vmul.f32 %v2441_v47, %v2438_v1  ;;  %v2578_v57 = vpop.permute.xlu0 %2577  ;;  %v2450_v63 = vmul.f32 %v2442_v46, %v2437_v36 }
 0xa5a   :  { %v2584_v55 = vsel %vm292_vm2, %v2578_v57, %v5103_v8  ;;  %v2585_v24 = vsel %vm292_vm2, %v5067_v13, %v2578_v57  ;;  %v2722_v8 = vld [vmem:[#allocation2 + $0x18] sm:$0xff]  ;;  %v2513_v46 = vperm.slane %v5199_v60, 0 }
 0xa5b   :  { %2685 = vst [vmem:[#allocation2 + $0x58] sm:$0xf0] %v2677_v2  ;;  %v2597_v18 = vmul.f32 %v2589_v48, %v2585_v24  ;;  %v2598_v15 = vmul.f32 %v2590_v37, %v2584_v55 }
 0xa5c   :  { %2686 = vst [vmem:[#allocation2 + $0x10] sm:$0xf0] %v2678_v49  ;;  %v2725_v45 = vld [vmem:[#allocation2 + $0x78] sm:$0xff] }
 0xa5d   :  { %2453 = vst [vmem:[#allocation2] sm:$0xf] %v2449_v42  ;;  %v2605_v61 = vrot.slane %v2597_v18, 4  ;;  %v2606_v31 = vrot.slane %v2598_v15, 4  ;;  %v2530_v17 = vpop.permute.xlu1 %2529  ;;  %v2741_v38 = vpack.c.bf16 %v2725_v45, %v2721_v6  ;;  %v2726_v50 = vld [vmem:[#allocation2 + $0x80] sm:$0xff] }
 0xa5e   :  { %2454 = vst [vmem:[#allocation2 + $0x38] sm:$0xf] %v2450_v63  ;;  %v2539_v13 = vsel %vm244_vm5, %v2530_v17, %v5131_v28  ;;  %v2540_v4 = vsel %vm244_vm5, %v5161_v62, %v2530_v17  ;;  %v2742_v22 = vpack.c.bf16 %v2726_v50, %v2722_v8  ;;  %v2345_v17 = vld [vmem:[%s5618_s6 + $0x10] sm:$0xf] }
 0xa5f   :  { %2613 = vst [vmem:[#allocation2 + $0x8] sm:$0xf0] %v2605_v61  ;;  %v2551_v32 = vmul.f32 %v2543_v56, %v2540_v4  ;;  %v2552_v52 = vmul.f32 %v2544_v7, %v2539_v13  ;;  %2806 = vmatpush.bf16.msrb.mxu2 %v2741_v38 }
 0xa60   :  { %2614 = vst [vmem:[#allocation2 + $0x88] sm:$0xf0] %v2606_v31  ;;  %2819 = vmatpush.bf16.msrb.mxu3 %v2742_v22 }
 0xa61   :  { %v2559_v28 = vrot.slane %v2551_v32, 4  ;;  %v2560_v16 = vrot.slane %v2552_v52, 4  ;;  %v2458_v44 = vpop.permute.xlu0 %2457 }
 0xa62   :  { %v2467_v62 = vsel %vm168_vm3, %v2458_v44, %v5113_v41  ;;  %v2468_v19 = vsel %vm168_vm3, %v5144_v29, %v2458_v44  ;;  %3706 = vmatmul.msk.bf16.vlgmr.msrb.gmra.mxu2 %vm475_vm11, %v2751_v14  ;;  %v2731_v27 = vld [vmem:[#allocation2 + $0x58] sm:$0xff]  ;;  %v2514_v41 = vperm.slane %v5199_v60, 1 }
 0xa63   :  { %2567 = vst [vmem:[#allocation2 + $0x30] sm:$0xf0] %v2559_v28  ;;  %v2479_v26 = vmul.f32 %v2471_v59, %v2468_v19  ;;  %v2480_v12 = vmul.f32 %v2472_v0, %v2467_v62  ;;  %3707 = vmatmul.msk.bf16.vlgmr.msrb.gmra.mxu3 %vm475_vm11, %v2751_v14  ;;  %v2732_v29 = vld [vmem:[#allocation2 + $0x10] sm:$0xff]  ;;  %v2913_v62 = vld [vmem:[%s5614_s2 + $0x8] sm:$0xc]  ;;  %v2836_v19 = vpop.permute.xlu2 %2835 }
 0xa64   :  { %2568 = vst [vmem:[#allocation2 + $0x68] sm:$0xf0] %v2560_v16 }
 0xa65   :  { %v2487_v47 = vrot.slane %v2479_v26, 4  ;;  %v2488_v53 = vrot.slane %v2480_v12, 4 }
 0xa66   :  { %v2727_v33 = vld [vmem:[#allocation2 + $0x8] sm:$0xff] }
 0xa67   :  { %2495 = vst [vmem:[#allocation2] sm:$0xf0] %v2487_v47  ;;  %v2743_v54 = vpack.c.bf16 %v2731_v27, %v2727_v33  ;;  %v2728_v3 = vld [vmem:[#allocation2 + $0x88] sm:$0xff] }
 0xa68   :  { %2496 = vst [vmem:[#allocation2 + $0x38] sm:$0xf0] %v2488_v53  ;;  %v2744_v58 = vpack.c.bf16 %v2732_v29, %v2728_v3  ;;  %v2927_v53 = vunpack.c.l.b16 %v2913_v62 }
 0xa69   :  { %v2500_v48 = vpop.permute.xlu0 %2499  ;;  %2779 = vmatpush.bf16.msrb.mxu0 %v2743_v54 }
 0xa6a   :  { %v2509_v37 = vsel %vm212_vm9, %v2500_v48, %v5163_v20  ;;  %v2510_v36 = vsel %vm212_vm9, %v5201_v51, %v2500_v48  ;;  %2792 = vmatpush.bf16.msrb.mxu1 %v2744_v58  ;;  %v2756_v20 = vpop.permute.xlu1 %2755  ;;  %v2928_v54 = vpack.c.b16 %v2927_v53, %v2927_v53 }
 0xa6b   :  { %v2521_v1 = vmul.f32 %v2513_v46, %v2510_v36  ;;  %v2522_v2 = vmul.f32 %v2514_v41, %v2509_v37 }
 0xa6d   :  { %2525 = vst [vmem:[#allocation2 + $0x30] sm:$0xf] %v2521_v1  ;;  %v2929_v1 = vrot.slane %v2928_v54, 2  ;;  %v5383_v54 = vld [vmem:[%s5613_s1 + $0x5] ss:$8 sm:$0xf] }
 0xa6e   :  { %2526 = vst [vmem:[#allocation2 + $0x68] sm:$0xf] %v2522_v2  ;;  %v2719_v60 = vld [vmem:[#allocation2] sm:$0xff] }
 0xa6f   :  { %v2720_v57 = vld [vmem:[#allocation2 + $0x38] sm:$0xff] }
 0xa74   :  { %v2723_v49 = vld [vmem:[#allocation2 + $0x30] sm:$0xff] }
 0xa75   :  { %v2739_v42 = vpack.c.bf16 %v2723_v49, %v2719_v60  ;;  %v2724_v63 = vld [vmem:[#allocation2 + $0x68] sm:$0xff] }
 0xa76   :  { %v2740_v55 = vpack.c.bf16 %v2724_v63, %v2720_v57 }
 0xa77   :  { %2780 = vmatpush.bf16.msrb.mxu0 %v2739_v42 }
 0xa78   :  { %2793 = vmatpush.bf16.msrb.mxu1 %v2740_v55 }
 0xa7a   :  { %3704 = vmatmul.msk.bf16.vlgmr.msrb.gmra.mxu0 %vm475_vm11, %v2751_v14 }
 0xa7b   :  { %3705 = vmatmul.msk.bf16.vlgmr.msrb.gmra.mxu1 %vm475_vm11, %v2751_v14 }
 0xae5   :  { %v2808_v24 = vpop.f32.mrf.mxu2 }
 0xae6   :  { %v2809_v51 = vadd.f32 %v2808_v24, %v2756_v20  ;;  %v2821_v18 = vpop.f32.mrf.mxu3 }
 0xae7   :  { %v2822_v15 = vadd.f32 %v2821_v18, %v2756_v20 }
 0xae8   :  { %v2827_v56 = vmax.f32 %v2809_v51, 0.0 }
 0xae9   :  { %v2828_v7 = vmax.f32 %v2822_v15, 0.0 }
 0xaea   :  { %v2831_v6 = vpack.c.bf16 %v2827_v56, %v2827_v56 }
 0xaeb   :  { %v2832_v45 = vpack.c.bf16 %v2828_v7, %v2828_v7 }
 0xaec   :  { %v2848_v61 = vsel %vm479_vm10, %v2831_v6, 0 }
 0xaed   :  { %2886 = vmatpush.bf16.msra.mxu2 %v2848_v61  ;;  %v2851_v31 = vsel %vm479_vm10, %v2832_v45, 0  ;;  %v2810_v38 = vpop.f32.mrf.mxu2 }
 0xaee   :  { %2899 = vmatpush.bf16.msra.mxu3 %v2851_v31  ;;  %v2823_v8 = vpop.f32.mrf.mxu3 }
 0xaf0   :  { %3710 = vmatmul.msk.bf16.vlgmr.msra.gmra.mxu2 %vm557_vm12, %v2345_v17 }
 0xaf1   :  { %3711 = vmatmul.msk.bf16.vlgmr.msra.gmra.mxu3 %vm557_vm12, %v2345_v17 }
 0xaf7   :  { %v2782_v50 = vpop.f32.mrf.mxu0 }
 0xaf8   :  { %v2783_v13 = vadd.f32 %v2782_v50, %v2756_v20  ;;  %v2795_v4 = vpop.f32.mrf.mxu1 }
 0xaf9   :  { %v2796_v22 = vadd.f32 %v2795_v4, %v2756_v20 }
 0xafa   :  { %v2825_v32 = vmax.f32 %v2783_v13, 0.0 }
 0xafb   :  { %v2826_v52 = vmax.f32 %v2796_v22, 0.0 }
 0xafc   :  { %v2829_v59 = vpack.c.bf16 %v2825_v32, %v2825_v32 }
 0xafd   :  { %v2830_v0 = vpack.c.bf16 %v2826_v52, %v2826_v52 }
 0xafe   :  { %v2842_v14 = vsel %vm479_vm10, %v2829_v59, 0 }
 0xaff   :  { %v2784_v28 = vpop.f32.mrf.mxu0  ;;  %2860 = vmatpush.bf16.msra.mxu0 %v2842_v14  ;;  %v2845_v16 = vsel %vm479_vm10, %v2830_v0, 0  ;;  %v3326_v0 = vld [vmem:[%s5617_s5 + $0x14] sm:$0xf]  ;;  %v3496_v14 = vld [vmem:[%s5621_s9] sm:$0xff]  ;;  %s3608_s9 = sshll.u32 %s5622_s10, 4  ;;  %s3609_s9 = int_to_ptr.hbm [resolvable:$true] %s3608_s9 }
 0xb00   :  { %2873 = vmatpush.bf16.msra.mxu1 %v2845_v16  ;;  %v2797_v44 = vpop.f32.mrf.mxu1  ;;  %v1214_v28 = vld [vmem:[%s5619_s7 + $0x10] sm:$0xff] }
 0xb01   :  { %v2916_v44 = vld [vmem:[%s5619_s7 + $0x28] sm:$0xff] }
 0xb02   :  { %3708 = vmatmul.msk.bf16.vlgmr.msra.gmra.mxu0 %vm557_vm12, %v2345_v17 }
 0xb03   :  { %3709 = vmatmul.msk.bf16.vlgmr.msra.gmra.mxu1 %vm557_vm12, %v2345_v17 }
 0xb73   :  { %v2888_v26 = vpop.f32.mrf.mxu2 }
 0xb74   :  { %v2889_v12 = vadd.f32 %v2888_v26, %v2836_v19  ;;  %v2901_v47 = vpop.f32.mrf.mxu3  ;;  %v5371_v26 = vld [vmem:[%s5613_s1 + $0x20] ss:$8 sm:$0xf] }
 0xb75   :  { %v2902_v33 = vadd.f32 %v2901_v47, %v2836_v19 }
 0xb76   :  { %v2907_v27 = vadd.f32 %v2889_v12, %v4995_v21  ;;  %v3279_v12 = vperm.slane %v5371_v26, 2 }
 0xb77   :  { %v2908_v46 = vadd.f32 %v2902_v33, %v4988_v43 }
 0xb78   :  { %v5292_v41 = vmax.f32 %v2907_v27, 0.0 }
 0xb79   :  { %v5294_v3 = vmax.f32 %v2908_v46, 0.0  ;;  %v3280_v46 = vperm.slane %v5371_v26, 3 }
 0xb7a   :  { %v2919_v29 = vpack.c.bf16 %v5292_v41, %v5292_v41 }
 0xb7b   :  { %v2920_v58 = vpack.c.bf16 %v5294_v3, %v5294_v3  ;;  %v2890_v48 = vpop.f32.mrf.mxu2 }
 0xb7c   :  { %v2940_v37 = vsel %vm58_vm0, %v2919_v29, 0  ;;  %v2903_v36 = vpop.f32.mrf.mxu3  ;;  %v3165_v48 = vperm.slane %v5383_v54, 2 }
 0xb7d   :  { %2978 = vmatpush.bf16.msrb.mxu2 %v2940_v37  ;;  %v2943_v21 = vsel %vm58_vm0, %v2920_v58, 0 }
 0xb7e   :  { %2991 = vmatpush.bf16.msrb.mxu3 %v2943_v21 }
 0xb7f   :  { %v2862_v43 = vpop.f32.mrf.mxu0 }
 0xb80   :  { %v2863_v2 = vadd.f32 %v2862_v43, %v2836_v19  ;;  %v2875_v60 = vpop.f32.mrf.mxu1  ;;  %3714 = vmatmul.msk.bf16.vlgmr.msrb.gmra.mxu2 %vm54_vm1, %v2929_v1 }
 0xb81   :  { %v2876_v49 = vadd.f32 %v2875_v60, %v2836_v19  ;;  %3715 = vmatmul.msk.bf16.vlgmr.msrb.gmra.mxu3 %vm54_vm1, %v2929_v1 }
 0xb82   :  { %v2905_v42 = vadd.f32 %v2863_v2, %v5012_v39  ;;  %v2924_v39 = vpop.permute.xlu0 %2923  ;;  %v3166_v2 = vperm.slane %v5383_v54, 3 }
 0xb83   :  { %v2906_v57 = vadd.f32 %v2876_v49, %v5014_v9  ;;  %v5400_v49 = vld [vmem:[%s5613_s1 + $0x7] ss:$8 sm:$0xf] }
 0xb84   :  { %v5306_v63 = vmax.f32 %v2905_v42, 0.0 }
 0xb85   :  { %v5308_v55 = vmax.f32 %v2906_v57, 0.0 }
 0xb86   :  { %v2917_v20 = vpack.c.bf16 %v5306_v63, %v5306_v63 }
 0xb87   :  { %v2918_v24 = vpack.c.bf16 %v5308_v55, %v5308_v55  ;;  %v2864_v51 = vpop.f32.mrf.mxu0 }
 0xb88   :  { %v2934_v18 = vsel %vm58_vm0, %v2917_v20, 0  ;;  %v2877_v15 = vpop.f32.mrf.mxu1 }
 0xb89   :  { %2952 = vmatpush.bf16.msrb.mxu0 %v2934_v18  ;;  %v2937_v56 = vsel %vm58_vm0, %v2918_v24, 0  ;;  %v3237_v18 = vperm.slane %v5400_v49, 2 }
 0xb8a   :  { %2965 = vmatpush.bf16.msrb.mxu1 %v2937_v56 }
 0xb8c   :  { %3712 = vmatmul.msk.bf16.vlgmr.msrb.gmra.mxu0 %vm54_vm1, %v2929_v1 }
 0xb8d   :  { %3713 = vmatmul.msk.bf16.vlgmr.msrb.gmra.mxu1 %vm54_vm1, %v2929_v1 }
 0xc03   :  { %v2980_v9 = vpop.f32.mrf.mxu2 }
 0xc04   :  { %v2981_v7 = vadd.f32 %v2980_v9, %v2924_v39  ;;  %v2993_v6 = vpop.f32.mrf.mxu3 }
 0xc05   :  { %v2994_v45 = vadd.f32 %v2993_v6, %v2924_v39 }
 0xc06   :  { %v2999_v61 = vmax.f32 %v2981_v7, 0.0 }
 0xc07   :  { %v3000_v31 = vmax.f32 %v2994_v45, 0.0 }
 0xc08   :  { %3147 = vst [vmem:[#allocation2 + $0x28] sm:$0xf] %v2999_v61  ;;  %3267 = vrot.lane.b32.xlu2 %v2999_v61, %s3801_s27 }
 0xc09   :  { %3148 = vst [vmem:[#allocation2 + $0x40] sm:$0xf] %v3000_v31  ;;  %3269 = vrot.lane.b32.xlu0 %v3000_v31, %s3801_s27  ;;  %v2954_v17 = vpop.f32.mrf.mxu0 }
 0xc0a   :  { %v2955_v38 = vadd.f32 %v2954_v17, %v2924_v39  ;;  %v2967_v8 = vpop.f32.mrf.mxu1 }
 0xc0b   :  { %v2968_v50 = vadd.f32 %v2967_v8, %v2924_v39  ;;  %v2982_v13 = vpop.f32.mrf.mxu2 }
 0xc0c   :  { %v2997_v4 = vmax.f32 %v2955_v38, 0.0  ;;  %v2995_v22 = vpop.f32.mrf.mxu3  ;;  %v5416_v38 = vld [vmem:[%s5613_s1 + $0x6] ss:$8 sm:$0xf] }
 0xc0d   :  { %v2998_v32 = vmax.f32 %v2968_v50, 0.0 }
 0xc0e   :  { %3145 = vst [vmem:[#allocation2 + $0x8] sm:$0xf] %v2997_v4  ;;  %3263 = vrot.lane.b32.xlu1 %v2997_v4, %s3801_s27 }
 0xc0f   :  { %3146 = vst [vmem:[#allocation2 + $0x88] sm:$0xf] %v2998_v32 }
 0xc10   :  { %3153 = vrot.lane.b32.xlu2 %v2999_v61, %s3800_s26 }
 0xc11   :  { %3155 = vrot.lane.b32.xlu0 %v3000_v31, %s3800_s26  ;;  %v2956_v52 = vpop.f32.mrf.mxu0 }
 0xc12   :  { %v2969_v59 = vpop.f32.mrf.mxu1 }
 0xc16   :  { %3149 = vrot.lane.b32.xlu1 %v2997_v4, %s3800_s26 }
 0xc18   :  { %3225 = vrot.lane.b32.xlu2 %v2999_v61, %s3799_s25 }
 0xc19   :  { %3227 = vrot.lane.b32.xlu0 %v3000_v31, %s3799_s25 }
 0xc1e   :  { %3221 = vrot.lane.b32.xlu1 %v2997_v4, %s3799_s25 }
 0xc20   :  { %3195 = vrot.lane.b32.xlu2 %v2999_v61, %s3802_s28 }
 0xc21   :  { %3197 = vrot.lane.b32.xlu0 %v3000_v31, %s3802_s28 }
 0xc26   :  { %3191 = vrot.lane.b32.xlu1 %v2997_v4, %s3802_s28 }
 0xc28   :  { %3035 = vrot.lane.b32.xlu2 %v2999_v61, %s3803_s29 }
 0xc29   :  { %3037 = vrot.lane.b32.xlu0 %v3000_v31, %s3803_s29 }
 0xc2e   :  { %3033 = vrot.lane.b32.xlu1 %v2998_v32, %s3803_s29 }
 0xc30   :  { %3107 = vrot.lane.b32.xlu2 %v2999_v61, %s3804_s30 }
 0xc31   :  { %3109 = vrot.lane.b32.xlu0 %v3000_v31, %s3804_s30 }
 0xc36   :  { %3105 = vrot.lane.b32.xlu1 %v2998_v32, %s3804_s30 }
 0xc38   :  { %3005 = vrot.lane.b32.xlu2 %v2999_v61, %s3805_s11 }
 0xc39   :  { %3007 = vrot.lane.b32.xlu0 %v3000_v31, %s3805_s11 }
 0xc3e   :  { %3003 = vrot.lane.b32.xlu1 %v2998_v32, %s3805_s11 }
 0xc40   :  { %3077 = vrot.lane.b32.xlu2 %v2999_v61, %s3806_s12 }
 0xc41   :  { %3079 = vrot.lane.b32.xlu0 %v3000_v31, %s3806_s12  ;;  %v3238_v31 = vperm.slane %v5400_v49, 3 }
 0xc46   :  { %3075 = vrot.lane.b32.xlu1 %v2998_v32, %s3806_s12 }
 0xc48   :  { %3151 = vrot.lane.b32.xlu2 %v2998_v32, %s3800_s26  ;;  %s3807_s26 = smov [#allocation3]  }
 0xc49   :  { %3223 = vrot.lane.b32.xlu0 %v2998_v32, %s3799_s25 }
 0xc4e   :  { %3265 = vrot.lane.b32.xlu1 %v2998_v32, %s3801_s27  ;;  %s3606_s27 = sshll.u32 %s3807_s26, 4  ;;  %s3607_s27 = int_to_ptr.vmem [resolvable:$true] %s3606_s27 }
 0xc50   :  { %3031 = vrot.lane.b32.xlu2 %v2997_v4, %s3803_s29 }
 0xc51   :  { %3103 = vrot.lane.b32.xlu0 %v2997_v4, %s3804_s30 }
 0xc56   :  { %3193 = vrot.lane.b32.xlu1 %v2998_v32, %s3802_s28 }
 0xc58   :  { %3073 = vrot.lane.b32.xlu2 %v2997_v4, %s3806_s12 }
 0xc59   :  { %3329 = vperm.xlu0 %3745, %v3326_v0  }
 0xc5e   :  { %3001 = vrot.lane.b32.xlu1 %v2997_v4, %s3805_s11  ;;  %v3207_v4 = vperm.slane %v5416_v38, 2 }
 0xc60   :  { %3499 = vperm.xlu2 %3747, %v3496_v14  }
 0xc61   :  { %1703 = vperm.xlu0 %3745, %v1214_v28   ;;  %v3208_v28 = vperm.slane %v5416_v38, 3 }
 0xc62   :  { %v5359_v16 = vpop.permute.xlu2 %3267 }
 0xc66   :  { %3413 = vperm.xlu1 %3746, %v2916_v44   ;;  %v3716_v44 = vld [vmem:[%s5613_s1 + $0x1] ss:$8 sm:$0xf] }
 0xc6a   :  { %v5364_v62 = vpop.permute.xlu2 %3153 }
 0xc72   :  { %v5366_v19 = vpop.permute.xlu2 %3225 }
 0xc7a   :  { %v5374_v47 = vpop.permute.xlu2 %3195 }
 0xc7b   :  { %v3270_v53 = vpop.permute.xlu0 %3269 }
 0xc7c   :  { %v3271_v33 = vsel %vm412_vm8, %v5359_v16, %v3270_v53 }
 0xc7d   :  { %v3287_v27 = vmul.f32 %v3279_v12, %v3271_v33  ;;  %v3048_v33 = vperm.slane %v3716_v44, 3 }
 0xc7f   :  { %3291 = vst [vmem:[#allocation2 + $0x70] sm:$0xf] %v3287_v27 }
 0xc80   :  { %v5385_v29 = vpop.permute.xlu1 %3263 }
 0xc81   :  { %v3274_v58 = vsel %vm412_vm8, %v3270_v53, %v5385_v29 }
 0xc82   :  { %v3288_v37 = vmul.f32 %v3280_v46, %v3274_v58  ;;  %v5391_v36 = vpop.permute.xlu2 %3035 }
 0xc83   :  { %v3156_v1 = vpop.permute.xlu0 %3155 }
 0xc84   :  { %3292 = vst [vmem:[#allocation2 + $0x90] sm:$0xf] %v3288_v37  ;;  %v3157_v21 = vsel %vm292_vm2, %v5364_v62, %v3156_v1 }
 0xc85   :  { %v3173_v43 = vmul.f32 %v3165_v48, %v3157_v21 }
 0xc86   :  { %v3311_v60 = vld [vmem:[#allocation2 + $0x70] sm:$0xf] }
 0xc87   :  { %v3181_v42 = vrot.slane %v3173_v43, 4  ;;  %v3323_v57 = vpack.c.bf16 %v3311_v60, %v3311_v60  ;;  %v3047_v43 = vperm.slane %v3716_v44, 2 }
 0xc88   :  { %v3150_v20 = vpop.permute.xlu1 %3149 }
 0xc89   :  { %3189 = vst [vmem:[#allocation2 + $0x28] sm:$0xf0] %v3181_v42  ;;  %v3160_v24 = vsel %vm292_vm2, %v3156_v1, %v3150_v20  ;;  %v3346_v51 = vsel %vm479_vm10, %v3323_v57, 0 }
 0xc8a   :  { %v3174_v15 = vmul.f32 %v3166_v2, %v3160_v24  ;;  %3382 = vmatpush.bf16.msra.mxu2 %v3346_v51  ;;  %v5406_v56 = vpop.permute.xlu2 %3107  ;;  %v5446_v2 = vld [vmem:[%s5613_s1 + $0x3] ss:$8 sm:$0xf]  ;;  %v3163_v24 = vperm.slane %v5383_v54, 0  ;;  %v3164_v51 = vperm.slane %v5383_v54, 1 }
 0xc8b   :  { %v3228_v39 = vpop.permute.xlu0 %3227  ;;  %v3312_v9 = vld [vmem:[#allocation2 + $0x90] sm:$0xf] }
 0xc8c   :  { %v3182_v7 = vrot.slane %v3174_v15, 4  ;;  %v3229_v6 = vsel %vm368_vm4, %v5366_v19, %v3228_v39  ;;  %v3324_v45 = vpack.c.bf16 %v3312_v9, %v3312_v9  ;;  %v3120_v15 = vperm.slane %v5446_v2, 3 }
 0xc8d   :  { %v3245_v61 = vmul.f32 %v3237_v18, %v3229_v6 }
 0xc8e   :  { %3190 = vst [vmem:[#allocation2 + $0x40] sm:$0xf0] %v3182_v7  ;;  %v3349_v17 = vsel %vm479_vm10, %v3324_v45, 0 }
 0xc8f   :  { %v3253_v8 = vrot.slane %v3245_v61, 4  ;;  %3395 = vmatpush.bf16.msra.mxu3 %v3349_v17 }
 0xc90   :  { %v5418_v50 = vpop.permute.xlu1 %3221  ;;  %v3303_v1 = vld [vmem:[#allocation2 + $0x28] sm:$0xff] }
 0xc91   :  { %3261 = vst [vmem:[#allocation2 + $0x98] sm:$0xf0] %v3253_v8  ;;  %v3232_v13 = vsel %vm368_vm4, %v3228_v39, %v5418_v50 }
 0xc92   :  { %v3246_v22 = vmul.f32 %v3238_v31, %v3232_v13  ;;  %v5424_v32 = vpop.permute.xlu2 %3005 }
 0xc93   :  { %v3198_v52 = vpop.permute.xlu0 %3197 }
 0xc94   :  { %v3254_v59 = vrot.slane %v3246_v22, 4  ;;  %v3199_v0 = vsel %vm336_vm6, %v5374_v47, %v3198_v52  ;;  %v5468_v22 = vld [vmem:[%s5613_s1] ss:$8 sm:$0xf] }
 0xc95   :  { %v3215_v14 = vmul.f32 %v3207_v4, %v3199_v0  ;;  %v3304_v8 = vld [vmem:[#allocation2 + $0x40] sm:$0xff] }
 0xc96   :  { %3262 = vst [vmem:[#allocation2 + $0x60] sm:$0xf0] %v3254_v59 }
 0xc97   :  { %3219 = vst [vmem:[#allocation2 + $0x98] sm:$0xf] %v3215_v14  ;;  %v3045_v14 = vperm.slane %v3716_v44, 0 }
 0xc98   :  { %v5433_v12 = vpop.permute.xlu1 %3191 }
 0xc99   :  { %v3202_v53 = vsel %vm336_vm6, %v3198_v52, %v5433_v12  ;;  %v3119_v52 = vperm.slane %v5446_v2, 2 }
 0xc9a   :  { %v3216_v27 = vmul.f32 %v3208_v28, %v3202_v53  ;;  %v5438_v46 = vpop.permute.xlu2 %3077  ;;  %v3046_v28 = vperm.slane %v3716_v44, 1 }
 0xc9b   :  { %v3038_v58 = vpop.permute.xlu0 %3037 }
 0xc9c   :  { %3220 = vst [vmem:[#allocation2 + $0x60] sm:$0xf] %v3216_v27  ;;  %v3039_v48 = vsel %vm168_vm3, %v5391_v36, %v3038_v58 }
 0xc9d   :  { %v3056_v37 = vmul.f32 %v3048_v33, %v3039_v48  ;;  %v3018_v33 = vperm.slane %v5468_v22, 3 }
 0xc9e   :  { %v3307_v21 = vld [vmem:[#allocation2 + $0x98] sm:$0xff] }
 0xc9f   :  { %v3064_v60 = vrot.slane %v3056_v37, 4  ;;  %v3319_v42 = vpack.c.bf16 %v3307_v21, %v3303_v1 }
 0xca0   :  { %v3034_v57 = vpop.permute.xlu1 %3033 }
 0xca1   :  { %3072 = vst [vmem:[#allocation2 + $0x18] sm:$0xf0] %v3064_v60  ;;  %3383 = vmatpush.bf16.msra.mxu2 %v3319_v42  ;;  %v3040_v18 = vsel %vm168_vm3, %v3034_v57, %v5391_v36 }
 0xca2   :  { %v3055_v39 = vmul.f32 %v3047_v43, %v3040_v18  ;;  %v3152_v9 = vpop.permute.xlu2 %3151 }
 0xca3   :  { %v5454_v7 = vpop.permute.xlu0 %3109  ;;  %v3158_v6 = vsel %vm292_vm2, %v3152_v9, %v5364_v62  ;;  %v3159_v45 = vsel %vm292_vm2, %v3150_v20, %v3152_v9  ;;  %v3308_v54 = vld [vmem:[#allocation2 + $0x60] sm:$0xff] }
 0xca4   :  { %v3063_v61 = vrot.slane %v3055_v39, 4  ;;  %v3111_v36 = vsel %vm244_vm5, %v5406_v56, %v5454_v7  ;;  %v3171_v31 = vmul.f32 %v3163_v24, %v3159_v45  ;;  %v3172_v17 = vmul.f32 %v3164_v51, %v3158_v6  ;;  %v3717_v24 = vld [vmem:[%s5613_s1 + $0x2] ss:$8 sm:$0xf] }
 0xca5   :  { %v3128_v13 = vmul.f32 %v3120_v15, %v3111_v36  ;;  %v3320_v4 = vpack.c.bf16 %v3308_v54, %v3304_v8  ;;  %v3090_v39 = vperm.slane %v3717_v24, 3  ;;  %v3087_v9 = vperm.slane %v3717_v24, 0  ;;  %v3325_v8 = vld [vmem:[%s5616_s4 + $0x8] sm:$0xc] }
 0xca6   :  { %3071 = vst [vmem:[#allocation2 + $0x50] sm:$0xf0] %v3063_v61  ;;  %v3179_v62 = vrot.slane %v3171_v31, 4  ;;  %v3180_v20 = vrot.slane %v3172_v17, 4 }
 0xca7   :  { %v3136_v59 = vrot.slane %v3128_v13, 4  ;;  %3396 = vmatpush.bf16.msra.mxu3 %v3320_v4  ;;  %v3089_v13 = vperm.slane %v3717_v24, 2 }
 0xca8   :  { %3187 = vst [vmem:[#allocation2 + $0x8] sm:$0xf0] %v3179_v62  ;;  %v5471_v0 = vpop.permute.xlu1 %3105  ;;  %v3333_v62 = vunpack.c.l.b16 %v3325_v8 }
 0xca9   :  { %3144 = vst [vmem:[#allocation2 + $0x80] sm:$0xf0] %v3136_v59  ;;  %v3112_v53 = vsel %vm244_vm5, %v5471_v0, %v5406_v56  ;;  %v3235_v59 = vperm.slane %v5400_v49, 0 }
 0xcaa   :  { %3188 = vst [vmem:[#allocation2 + $0x88] sm:$0xf0] %v3180_v20  ;;  %v3127_v27 = vmul.f32 %v3119_v52, %v3112_v53  ;;  %v3032_v48 = vpop.permute.xlu2 %3031 }
 0xcab   :  { %v5478_v37 = vpop.permute.xlu0 %3007  ;;  %v3041_v1 = vsel %vm168_vm3, %v3032_v48, %v3034_v57  ;;  %v3042_v21 = vsel %vm168_vm3, %v3038_v58, %v3032_v48  ;;  %v3017_v57 = vperm.slane %v5468_v22, 2 }
 0xcac   :  { %v3135_v44 = vrot.slane %v3127_v27, 4  ;;  %v3009_v43 = vsel %vm137_vm7, %v5424_v32, %v5478_v37  ;;  %v3053_v56 = vmul.f32 %v3045_v14, %v3042_v21  ;;  %v3054_v60 = vmul.f32 %v3046_v28, %v3041_v1 }
 0xcad   :  { %v3026_v42 = vmul.f32 %v3018_v33, %v3009_v43  ;;  %v3236_v14 = vperm.slane %v5400_v49, 1  ;;  %v3277_v49 = vperm.slane %v5371_v26, 0 }
 0xcae   :  { %3143 = vst [vmem:[#allocation2 + $0x78] sm:$0xf0] %v3135_v44  ;;  %v3061_v51 = vrot.slane %v3053_v56, 4  ;;  %v3062_v18 = vrot.slane %v3054_v60, 4  ;;  %v3278_v56 = vperm.slane %v5371_v26, 1  ;;  %v3118_v26 = vperm.slane %v5446_v2, 1 }
 0xcaf   :  { %3030 = vst [vmem:[#allocation2 + $0x18] sm:$0xf] %v3026_v42 }
 0xcb0   :  { %3069 = vst [vmem:[#allocation2] sm:$0xf0] %v3061_v51  ;;  %v5492_v58 = vpop.permute.xlu1 %3003 }
 0xcb1   :  { %3070 = vst [vmem:[#allocation2 + $0x38] sm:$0xf0] %v3062_v18  ;;  %v3010_v15 = vsel %vm137_vm7, %v5492_v58, %v5424_v32  ;;  %v3088_v32 = vperm.slane %v3717_v24, 1 }
 0xcb2   :  { %v3025_v6 = vmul.f32 %v3017_v57, %v3010_v15  ;;  %v3074_v45 = vpop.permute.xlu2 %3073  ;;  %v3117_v57 = vperm.slane %v5446_v2, 0 }
 0xcb3   :  { %v3080_v54 = vpop.permute.xlu0 %3079 }
 0xcb4   :  { %3029 = vst [vmem:[#allocation2 + $0x50] sm:$0xf] %v3025_v6  ;;  %v3081_v61 = vsel %vm212_vm9, %v5438_v46, %v3080_v54  ;;  %v3084_v36 = vsel %vm212_vm9, %v3080_v54, %v3074_v45 }
 0xcb5   :  { %v3098_v31 = vmul.f32 %v3090_v39, %v3081_v61  ;;  %v3095_v17 = vmul.f32 %v3087_v9, %v3084_v36  ;;  %v3205_v36 = vperm.slane %v5416_v38, 0 }
 0xcb6   :  { %v3296_v44 = vld [vmem:[#allocation2 + $0x18] sm:$0xff] }
 0xcb7   :  { %3102 = vst [vmem:[#allocation2 + $0x80] sm:$0xf] %v3098_v31  ;;  %v3206_v31 = vperm.slane %v5416_v38, 1 }
 0xcb8   :  { %3099 = vst [vmem:[#allocation2 + $0x30] sm:$0xf] %v3095_v17  ;;  %v3076_v4 = vpop.permute.xlu1 %3075 }
 0xcb9   :  { %v3082_v20 = vsel %vm212_vm9, %v3076_v4, %v5438_v46  ;;  %v3083_v52 = vsel %vm212_vm9, %v3074_v45, %v3076_v4  ;;  %v3334_v46 = vpack.c.b16 %v3333_v62, %v3333_v62 }
 0xcba   :  { %v3096_v28 = vmul.f32 %v3088_v32, %v3083_v52  ;;  %v3097_v53 = vmul.f32 %v3089_v13, %v3082_v20 }
 0xcbb   :  { %v3224_v33 = vpop.permute.xlu0 %3223  ;;  %v5521_v18 = vrot.slane %v3334_v46, 2 }
 0xcbc   :  { %3100 = vst [vmem:[#allocation2 + $0x68] sm:$0xf] %v3096_v28  ;;  %v3230_v27 = vsel %vm368_vm4, %v3224_v33, %v5366_v19  ;;  %v3231_v48 = vsel %vm368_vm4, %v5418_v50, %v3224_v33 }
 0xcbd   :  { %3101 = vst [vmem:[#allocation2 + $0x78] sm:$0xf] %v3097_v53  ;;  %v3243_v1 = vmul.f32 %v3235_v59, %v3231_v48  ;;  %v3244_v21 = vmul.f32 %v3236_v14, %v3230_v27  ;;  %v3016_v14 = vperm.slane %v5468_v22, 1 }
 0xcbe   :  { %v3300_v43 = vld [vmem:[#allocation2 + $0x80] sm:$0xff] }
 0xcbf   :  { %v3251_v60 = vrot.slane %v3243_v1, 4  ;;  %v3252_v42 = vrot.slane %v3244_v21, 4  ;;  %v3316_v24 = vpack.c.bf16 %v3300_v43, %v3296_v44  ;;  %v3301_v1 = vld [vmem:[#allocation2 + $0x8] sm:$0xff] }
 0xcc0   :  { %v3266_v51 = vpop.permute.xlu1 %3265  ;;  %v3302_v21 = vld [vmem:[#allocation2 + $0x88] sm:$0xff] }
 0xcc1   :  { %3259 = vst [vmem:[#allocation2 + $0x58] sm:$0xf0] %v3251_v60  ;;  %3397 = vmatpush.bf16.msra.mxu3 %v3316_v24  ;;  %v3272_v19 = vsel %vm412_vm8, %v3266_v51, %v5359_v16  ;;  %v3273_v50 = vsel %vm412_vm8, %v5385_v29, %v3266_v51  ;;  %v3295_v29 = vld [vmem:[#allocation2 + $0x50] sm:$0xff] }
 0xcc2   :  { %3260 = vst [vmem:[#allocation2 + $0x10] sm:$0xf0] %v3252_v42  ;;  %v3285_v15 = vmul.f32 %v3277_v49, %v3273_v50  ;;  %v3286_v39 = vmul.f32 %v3278_v56, %v3272_v19 }
 0xcc3   :  { %v3104_v9 = vpop.permute.xlu0 %3103 }
 0xcc4   :  { %3289 = vst [vmem:[#allocation2 + $0x20] sm:$0xf] %v3285_v15  ;;  %v3113_v6 = vsel %vm244_vm5, %v3104_v9, %v5471_v0  ;;  %v3114_v16 = vsel %vm244_vm5, %v5454_v7, %v3104_v9  ;;  %3726 = vmatmul.msk.bf16.vlgmr.msra.gmra.mxu3 %vm475_vm11, %v5521_v18  ;;  %v3299_v45 = vld [vmem:[#allocation2 + $0x78] sm:$0xff] }
 0xcc5   :  { %3290 = vst [vmem:[#allocation2 + $0x48] sm:$0xf] %v3286_v39  ;;  %v3125_v2 = vmul.f32 %v3117_v57, %v3114_v16  ;;  %v3126_v54 = vmul.f32 %v3118_v26, %v3113_v6  ;;  %v3315_v61 = vpack.c.bf16 %v3299_v45, %v3295_v29  ;;  %v2915_v39 = vld [vmem:[%s5618_s6 + $0x14] sm:$0xf] }
 0xcc7   :  { %v3133_v17 = vrot.slane %v3125_v2, 4  ;;  %v3134_v8 = vrot.slane %v3126_v54, 4  ;;  %3384 = vmatpush.bf16.msra.mxu2 %v3315_v61 }
 0xcc8   :  { %v3194_v0 = vpop.permute.xlu1 %3193 }
 0xcc9   :  { %3141 = vst [vmem:[#allocation2 + $0x30] sm:$0xf0] %v3133_v17  ;;  %v3200_v7 = vsel %vm336_vm6, %v3194_v0, %v5374_v47  ;;  %v3201_v32 = vsel %vm336_vm6, %v5433_v12, %v3194_v0  ;;  %v3015_v47 = vperm.slane %v5468_v22, 0 }
 0xcca   :  { %3142 = vst [vmem:[#allocation2 + $0x68] sm:$0xf0] %v3134_v8  ;;  %v3213_v13 = vmul.f32 %v3205_v36, %v3201_v32  ;;  %v3214_v4 = vmul.f32 %v3206_v31, %v3200_v7  ;;  %3725 = vmatmul.msk.bf16.vlgmr.msra.gmra.mxu2 %vm475_vm11, %v5521_v18 }
 0xccb   :  { %v3309_v38 = vld [vmem:[#allocation2 + $0x20] sm:$0xf]  ;;  %v3330_v40 = vpop.permute.xlu0 %3329 }
 0xccc   :  { %3217 = vst [vmem:[#allocation2 + $0x58] sm:$0xf] %v3213_v13  ;;  %v3321_v62 = vpack.c.bf16 %v3309_v38, %v3309_v38  ;;  %v3310_v20 = vld [vmem:[#allocation2 + $0x48] sm:$0xf] }
 0xccd   :  { %3218 = vst [vmem:[#allocation2 + $0x10] sm:$0xf] %v3214_v4  ;;  %v3322_v52 = vpack.c.bf16 %v3310_v20, %v3310_v20 }
 0xcce   :  { %v3340_v59 = vsel %vm479_vm10, %v3321_v62, 0 }
 0xccf   :  { %3356 = vmatpush.bf16.msra.mxu0 %v3340_v59  ;;  %v3343_v12 = vsel %vm479_vm10, %v3322_v52, 0 }
 0xcd0   :  { %3369 = vmatpush.bf16.msra.mxu1 %v3343_v12  ;;  %v3002_v28 = vpop.permute.xlu1 %3001  ;;  %v3297_v56 = vld [vmem:[#allocation2 + $0x30] sm:$0xff] }
 0xcd1   :  { %v3011_v53 = vsel %vm137_vm7, %v3002_v28, %v5492_v58  ;;  %v3012_v33 = vsel %vm137_vm7, %v5478_v37, %v3002_v28  ;;  %v3298_v42 = vld [vmem:[#allocation2 + $0x68] sm:$0xff] }
 0xcd2   :  { %v3023_v27 = vmul.f32 %v3015_v47, %v3012_v33  ;;  %v3024_v48 = vmul.f32 %v3016_v14, %v3011_v53  ;;  %v3491_v33 = vld [vmem:[%s5620_s8] sm:$0xf] }
 0xcd3   :  { %v3305_v46 = vld [vmem:[#allocation2 + $0x58] sm:$0xff] }
 0xcd4   :  { %3027 = vst [vmem:[#allocation2] sm:$0xf] %v3023_v27  ;;  %v3306_v22 = vld [vmem:[#allocation2 + $0x10] sm:$0xff]  ;;  %v3317_v44 = vpack.c.bf16 %v3305_v46, %v3301_v1 }
 0xcd5   :  { %3028 = vst [vmem:[#allocation2 + $0x38] sm:$0xf] %v3024_v48  ;;  %v3318_v43 = vpack.c.bf16 %v3306_v22, %v3302_v21 }
 0xcd6   :  { %3357 = vmatpush.bf16.msra.mxu0 %v3317_v44 }
 0xcd7   :  { %3370 = vmatpush.bf16.msra.mxu1 %v3318_v43 }
 0xcd8   :  { %v3414_v4 = vpop.permute.xlu1 %3413 }
 0xcdb   :  { %v3293_v49 = vld [vmem:[#allocation2] sm:$0xff] }
 0xcdc   :  { %v3313_v60 = vpack.c.bf16 %v3297_v56, %v3293_v49  ;;  %v3294_v58 = vld [vmem:[#allocation2 + $0x38] sm:$0xff] }
 0xcdd   :  { %v3314_v24 = vpack.c.bf16 %v3298_v42, %v3294_v58 }
 0xcde   :  { %3358 = vmatpush.bf16.msra.mxu0 %v3313_v60 }
 0xcdf   :  { %3371 = vmatpush.bf16.msra.mxu1 %v3314_v24 }
 0xce1   :  { %3723 = vmatmul.msk.bf16.vlgmr.msra.gmra.mxu0 %vm475_vm11, %v5521_v18 }
 0xce2   :  { %3724 = vmatmul.msk.bf16.vlgmr.msra.gmra.mxu1 %vm475_vm11, %v5521_v18 }
 0xd47   :  { %v3399_v37 = vpop.f32.mrf.mxu3 }
 0xd48   :  { %v3400_v51 = vadd.f32 %v3399_v37, %v3330_v40 }
 0xd4a   :  { %v3406_v19 = vmax.f32 %v3400_v51, 0.0  ;;  %v3500_v51 = vpop.permute.xlu2 %3499 }
 0xd4c   :  { %v3410_v50 = vpack.c.bf16 %v3406_v19, %v3406_v19 }
 0xd4d   :  { %v3386_v57 = vpop.f32.mrf.mxu2 }
 0xd4e   :  { %v3387_v26 = vadd.f32 %v3386_v57, %v3330_v40  ;;  %v3429_v15 = vsel %vm479_vm10, %v3410_v50, 0 }
 0xd4f   :  { %3477 = vmatpush.bf16.msrb.mxu3 %v3429_v15  ;;  %v3401_v9 = vpop.f32.mrf.mxu3 }
 0xd50   :  { %v3405_v6 = vmax.f32 %v3387_v26, 0.0  ;;  %v1704_v9 = vpop.permute.xlu0 %1703 }
 0xd52   :  { %v3409_v16 = vpack.c.bf16 %v3405_v6, %v3405_v6  ;;  %3730 = vmatmul.msk.bf16.vlgmr.msrb.gmra.mxu3 %vm557_vm12, %v2915_v39 }
 0xd54   :  { %v3426_v18 = vsel %vm479_vm10, %v3409_v16, 0 }
 0xd55   :  { %v3388_v29 = vpop.f32.mrf.mxu2  ;;  %3464 = vmatpush.bf16.msrb.mxu2 %v3426_v18 }
 0xd58   :  { %3729 = vmatmul.msk.bf16.vlgmr.msrb.gmra.mxu2 %vm557_vm12, %v2915_v39 }
 0xd5e   :  { %v3360_v45 = vpop.f32.mrf.mxu0 }
 0xd5f   :  { %v3361_v2 = vadd.f32 %v3360_v45, %v3330_v40  ;;  %v3373_v54 = vpop.f32.mrf.mxu1 }
 0xd60   :  { %v3374_v61 = vadd.f32 %v3373_v54, %v3330_v40 }
 0xd61   :  { %v3403_v36 = vmax.f32 %v3361_v2, 0.0  ;;  %v1770_v2 = vadd.f32 %v4728_v34, %v1704_v9 }
 0xd62   :  { %v3404_v31 = vmax.f32 %v3374_v61, 0.0 }
 0xd63   :  { %v3407_v17 = vpack.c.bf16 %v3403_v36, %v3403_v36 }
 0xd64   :  { %v3408_v8 = vpack.c.bf16 %v3404_v31, %v3404_v31 }
 0xd65   :  { %v3420_v0 = vsel %vm479_vm10, %v3407_v17, 0 }
 0xd66   :  { %v3362_v7 = vpop.f32.mrf.mxu0  ;;  %3438 = vmatpush.bf16.msrb.mxu0 %v3420_v0  ;;  %v3423_v32 = vsel %vm479_vm10, %v3408_v8, 0  ;;  %v1776_v0 = vadd.f32 %v1770_v2, %v4459_v23  ;;  %v1744_v23 = vadd.f32 %v4732_v11, %v1704_v9  ;;  %v3769_v11 = vld [vmem:[%s5612_s0 + $0x10] sm:$0xff] }
 0xd67   :  { %v3375_v13 = vpop.f32.mrf.mxu1  ;;  %3451 = vmatpush.bf16.msrb.mxu1 %v3423_v32 }
 0xd68   :  { %v1757_v13 = vadd.f32 %v4726_v30, %v1704_v9  ;;  %v1780_v34 = vmax.f32 %v1776_v0, 0.0  ;;  %v3768_v30 = vld [vmem:[%s5612_s0 + $0x18] sm:$0xff] }
 0xd69   :  { %3727 = vmatmul.msk.bf16.vlgmr.msrb.gmra.mxu0 %vm557_vm12, %v2915_v39 }
 0xd6a   :  { %3728 = vmatmul.msk.bf16.vlgmr.msrb.gmra.mxu1 %vm557_vm12, %v2915_v39 }
 0xdd5   :  { %v3479_v38 = vpop.f32.mrf.mxu3 }
 0xdd6   :  { %v3480_v62 = vadd.f32 %v3479_v38, %v3414_v4 }
 0xdd8   :  { %v3486_v20 = vadd.f32 %v3480_v62, %v5294_v3 }
 0xdda   :  { %v3490_v52 = vmax.f32 %v3486_v20, 0.0 }
 0xddb   :  { %v3466_v59 = vpop.f32.mrf.mxu2 }
 0xddc   :  { %v3495_v47 = vpack.c.bf16 %v3490_v52, %v3490_v52  ;;  %v3467_v14 = vadd.f32 %v3466_v59, %v3414_v4  ;;  %v1775_v52 = vadd.f32 %v1757_v13, %v4465_v25 }
 0xddd   :  { %v3481_v12 = vpop.f32.mrf.mxu3 }
 0xdde   :  { %v3485_v28 = vadd.f32 %v3467_v14, %v5292_v41  ;;  %v3515_v53 = vsel %vm58_vm0, %v3495_v47, 0  ;;  %v1731_v14 = vadd.f32 %v4730_v10, %v1704_v9 }
 0xddf   :  { %3563 = vmatpush.bf16.msra.mxu3 %v3515_v53 }
 0xde0   :  { %v3489_v27 = vmax.f32 %v3485_v28, 0.0  ;;  %v1773_v25 = vadd.f32 %v1731_v14, %v4477_v35 }
 0xde2   :  { %v3494_v48 = vpack.c.bf16 %v3489_v27, %v3489_v27  ;;  %3734 = vmatmul.msk.bf16.vlgmr.msra.gmra.mxu3 %vm54_vm1, %v3491_v33  ;;  %v1779_v27 = vmax.f32 %v1775_v52, 0.0 }
 0xde3   :  { %v3468_v46 = vpop.f32.mrf.mxu2 }
 0xde4   :  { %v3512_v3 = vsel %vm58_vm0, %v3494_v48, 0  ;;  %v1774_v46 = vadd.f32 %v1744_v23, %v4479_v5  ;;  %v3770_v5 = vld [vmem:[%s5612_s0] sm:$0xff] }
 0xde5   :  { %3550 = vmatpush.bf16.msra.mxu2 %v3512_v3 }
 0xde6   :  { %v3440_v1 = vpop.f32.mrf.mxu0 }
 0xde7   :  { %v3441_v21 = vadd.f32 %v3440_v1, %v3414_v4  ;;  %v3453_v22 = vpop.f32.mrf.mxu1  ;;  %v1777_v1 = vmax.f32 %v1773_v25, 0.0 }
 0xde8   :  { %v3454_v44 = vadd.f32 %v3453_v22, %v3414_v4  ;;  %3733 = vmatmul.msk.bf16.vlgmr.msra.gmra.mxu2 %vm54_vm1, %v3491_v33  ;;  %v1778_v22 = vmax.f32 %v1774_v46, 0.0 }
 0xde9   :  { %v3483_v41 = vadd.f32 %v3441_v21, %v5306_v63 }
 0xdea   :  { %v3484_v43 = vadd.f32 %v3454_v44, %v5308_v55 }
 0xdeb   :  { %v3487_v49 = vmax.f32 %v3483_v41, 0.0 }
 0xdec   :  { %v3488_v56 = vmax.f32 %v3484_v43, 0.0 }
 0xded   :  { %v3492_v60 = vpack.c.bf16 %v3487_v49, %v3487_v49  ;;  %v3771_v49 = vld [vmem:[%s5612_s0 + $0x8] sm:$0xff] }
 0xdee   :  { %v3493_v58 = vpack.c.bf16 %v3488_v56, %v3488_v56  ;;  %v3442_v42 = vpop.f32.mrf.mxu0 }
 0xdef   :  { %v3455_v24 = vpop.f32.mrf.mxu1  ;;  %v3506_v40 = vsel %vm58_vm0, %v3492_v60, 0 }
 0xdf0   :  { %3524 = vmatpush.bf16.msra.mxu0 %v3506_v40  ;;  %v3509_v37 = vsel %vm58_vm0, %v3493_v58, 0 }
 0xdf1   :  { %3537 = vmatpush.bf16.msra.mxu1 %v3509_v37 }
 0xdf3   :  { %3731 = vmatmul.msk.bf16.vlgmr.msra.gmra.mxu0 %vm54_vm1, %v3491_v33 }
 0xdf4   :  { %3732 = vmatmul.msk.bf16.vlgmr.msra.gmra.mxu1 %vm54_vm1, %v3491_v33 }
 0xe65   :  { %v3565_v63 = vpop.f32.mrf.mxu3 }
 0xe66   :  { %v3566_v19 = vadd.f32 %v3565_v63, %v3500_v51 }
 0xe68   :  { %v3572_v55 = vsub.f32 0.0, %v3566_v19 }
 0xe6a   :  { %v3579_v50 = vmul.f32 1.442695, %v3572_v55 }
 0xe6b   :  { %v3552_v57 = vpop.f32.mrf.mxu2 }
 0xe6c   :  { %3748 = vpow2.f32 %v3579_v50  ;;  %v3553_v26 = vadd.f32 %v3552_v57, %v3500_v51 }
 0xe6d   :  { %v3567_v15 = vpop.f32.mrf.mxu3 }
 0xe6e   :  { %v3571_v39 = vsub.f32 0.0, %v3553_v26 }
 0xe70   :  { %v3577_v6 = vmul.f32 1.442695, %v3571_v39  ;;  %v3526_v16 = vpop.f32.mrf.mxu0 }
 0xe71   :  { %v3527_v18 = vadd.f32 %v3526_v16, %v3500_v51  ;;  %v3539_v29 = vpop.f32.mrf.mxu1 }
 0xe72   :  { %v3749_v45 = vpop.eup %3748  ;;  %3750 = vpow2.f32 %v3577_v6  ;;  %v3540_v54 = vadd.f32 %v3539_v29, %v3500_v51 }
 0xe73   :  { %v3584_v61 = vadd.f32 1.0, %v3749_v45  ;;  %v3569_v36 = vsub.f32 0.0, %v3527_v18  ;;  %v3554_v31 = vpop.f32.mrf.mxu2 }
 0xe74   :  { %v3570_v17 = vsub.f32 0.0, %v3540_v54 }
 0xe75   :  { %3752 = vrcp.f32 %v3584_v61  ;;  %v3573_v8 = vmul.f32 1.442695, %v3569_v36 }
 0xe76   :  { %v3575_v7 = vmul.f32 1.442695, %v3570_v17 }
 0xe77   :  { %3754 = vpow2.f32 %v3573_v8 }
 0xe78   :  { %v3751_v32 = vpop.eup %3750  ;;  %3756 = vpow2.f32 %v3575_v7  ;;  %v3528_v4 = vpop.f32.mrf.mxu0 }
 0xe79   :  { %v3583_v38 = vadd.f32 1.0, %v3751_v32  ;;  %v3541_v62 = vpop.f32.mrf.mxu1 }
 0xe7b   :  { %v3753_v20 = vpop.eup %3752  ;;  %3758 = vrcp.f32 %v3583_v38 }
 0xe7c   :  { %v3592_v59 = vmul.f32 %v3753_v20, %v1780_v34 }
 0xe7d   :  { %v3755_v47 = vpop.eup %3754 }
 0xe7e   :  { %v3757_v12 = vpop.eup %3756  ;;  %v3581_v28 = vadd.f32 1.0, %v3755_v47  ;;  %v3596_v53 = vadd.f32 %v3768_v30, %v3592_v59 }
 0xe7f   :  { %v3582_v33 = vadd.f32 1.0, %v3757_v12 }
 0xe80   :  { %3760 = vrcp.f32 %v3581_v28  ;;  %3600 = vst [vmem:[#allocation3 + $0x18] sm:$0xff] %v3596_v53 }
 0xe81   :  { %v3759_v48 = vpop.eup %3758  ;;  %3762 = vrcp.f32 %v3582_v33 }
 0xe82   :  { %v3591_v10 = vmul.f32 %v3759_v48, %v1779_v27 }
 0xe84   :  { %v3595_v3 = vadd.f32 %v3769_v11, %v3591_v10 }
 0xe86   :  { %v3761_v21 = vpop.eup %3760  ;;  %3599 = vst [vmem:[#allocation3 + $0x10] sm:$0xff] %v3595_v3 }
 0xe87   :  { %v3763_v44 = vpop.eup %3762  ;;  %v3589_v41 = vmul.f32 %v3761_v21, %v1777_v1 }
 0xe88   :  { %v3590_v35 = vmul.f32 %v3763_v44, %v1778_v22 }
 0xe89   :  { %v3593_v43 = vadd.f32 %v3770_v5, %v3589_v41 }
 0xe8a   :  { %v3594_v56 = vadd.f32 %v3771_v49, %v3590_v35 }
 0xe8b   :  { %3597 = vst [vmem:[#allocation3] sm:$0xff] %v3593_v43 }
 0xe8c   :  { %3598 = vst [vmem:[#allocation3 + $0x8] sm:$0xff] %v3594_v56 }
 0xe8d   :  { %3611 = dma.vmem_to_hbm [thread:$0]  %s3607_s27, 512, %s3609_s9, [#allocation4]  }
 0xe8e   :  { %3796 = dma.done.wait [#allocation4], 512  }
 0xe8f   :  { %3797 = vsyncadd [#allocation4], 4294966784 }
 0xe90   :  { %3616 = vsyncpa [#allocation4], 1 }

</bundles_post_ra>
